<compile_context>
chip_gen: v5e
topology: v5e:2x2
jax: 0.10.0
libtpu: 0.0.40
codegen_flags: <defaults>
</compile_context>

<pallas_src>
import functools
import math

import jax
import jax.numpy as jnp
from jax import lax
from jax.experimental import pallas as pl
from jax.experimental.pallas import tpu as pltpu

KHS = (10, 20, 30, 40, 50)   # MultiKernelConv2D kernel heights (width is 3)
KW = 3
BN_EPS = 1e-5


def _round_up(x, m):
    return (x + m - 1) // m * m


# ---------------------------------------------------------------------------
# Pallas kernels
# ---------------------------------------------------------------------------
def _fused_mm_kernel(a_ref, w_ref, s_ref, b_ref, o_ref, *, apply_elu):
    """out = [ELU]((A @ W) * scale + bias); single K block, bf16 in / f32 acc."""
    y = jnp.dot(a_ref[...], w_ref[...], preferred_element_type=jnp.float32)
    y = y * s_ref[...] + b_ref[...]
    if apply_elu:  # ELU(alpha=1.0)
        y = jnp.where(y > 0, y, jnp.exp(jnp.minimum(y, 0.0)) - 1.0)
    o_ref[...] = y


def _mlp_head_kernel(a_ref, w1_ref, b1_ref, w2_ref, b2_ref, lin1_ref, out_ref):
    """lin1 = A@W1+b1 ; logits = ELU(lin1)@W2+b2  (both emitted)."""
    lin1 = jnp.dot(a_ref[...], w1_ref[...],
                   preferred_element_type=jnp.float32) + b1_ref[...]
    lin1_ref[...] = lin1
    h = jnp.where(lin1 > 0, lin1, jnp.exp(jnp.minimum(lin1, 0.0)) - 1.0)
    out_ref[...] = jnp.dot(h.astype(w2_ref.dtype), w2_ref[...],
                           preferred_element_type=jnp.float32) + b2_ref[...]


def fused_matmul(a, layer, *, apply_elu, tm_cap=512):
    """act((a @ layer.w) * scale + bias); weights are pre-padded (Kp, Np)."""
    w, s, b = layer['w'], layer['s'], layer['b']
    M, K = a.shape
    Kp, Np = w.shape

    a = a.astype(jnp.bfloat16)
    if Kp > K:
        a = jnp.pad(a, ((0, 0), (0, Kp - K)))
    tm = min(_round_up(M, 16), tm_cap)          # multiple of 16 for bf16 tiles
    Mp = _round_up(M, tm)
    if Mp > M:
        a = jnp.pad(a, ((0, Mp - M), (0, 0)))
    tn = min(Np, 512)
    while Np % tn:
        tn -= 128

    grid = (Mp // tm, Np // tn)                 # no K axis: Kp is one block
    out = pl.pallas_call(
        functools.partial(_fused_mm_kernel, apply_elu=apply_elu),
        out_shape=jax.ShapeDtypeStruct((Mp, Np), jnp.float32),
        grid_spec=pltpu.PrefetchScalarGridSpec(
            num_scalar_prefetch=0,
            grid=grid,
            in_specs=[
                pl.BlockSpec((tm, Kp), lambda i, j: (i, 0)),
                pl.BlockSpec((Kp, tn), lambda i, j: (0, j)),   # resident over i
                pl.BlockSpec((1, tn), lambda i, j: (0, j)),    # scale
                pl.BlockSpec((1, tn), lambda i, j: (0, j)),    # bias
            ],
            out_specs=pl.BlockSpec((tm, tn), lambda i, j: (i, j)),
        ),
        compiler_params=pltpu.CompilerParams(
            dimension_semantics=("parallel", "parallel"),
            vmem_limit_bytes=32 * 1024 * 1024,
        ),
    )(a, w, s, b)
    return out[:M, :layer['n']]


def mlp_head(feat, fc):
    """Fused Linear(256,128) -> ELU -> Linear(128,n_classes); returns (logits, lin1)."""
    B, K = feat.shape
    K1, N1 = fc['w1'].shape
    K2, N2p = fc['w2'].shape
    Mp = _round_up(max(B, 8), 16)
    a = jnp.pad(feat.astype(jnp.bfloat16), ((0, Mp - B), (0, K1 - K)))

    lin1, logits = pl.pallas_call(
        _mlp_head_kernel,
        out_shape=(jax.ShapeDtypeStruct((Mp, N1), jnp.float32),
                   jax.ShapeDtypeStruct((Mp, N2p), jnp.float32)),
        grid_spec=pltpu.PrefetchScalarGridSpec(
            num_scalar_prefetch=0,
            grid=(1,),
            in_specs=[
                pl.BlockSpec((Mp, K1), lambda i: (0, 0)),
                pl.BlockSpec((K1, N1), lambda i: (0, 0)),
                pl.BlockSpec((1, N1), lambda i: (0, 0)),
                pl.BlockSpec((K2, N2p), lambda i: (0, 0)),
                pl.BlockSpec((1, N2p), lambda i: (0, 0)),
            ],
            out_specs=[pl.BlockSpec((Mp, N1), lambda i: (0, 0)),
                       pl.BlockSpec((Mp, N2p), lambda i: (0, 0))],
        ),
        compiler_params=pltpu.CompilerParams(
            dimension_semantics=("arbitrary",),
            vmem_limit_bytes=32 * 1024 * 1024,
        ),
    )(a, fc['w1'], fc['b1'], fc['w2'], fc['b2'])
    return logits[:B, :fc['n2']], lin1[:B, :fc['n1']]


# ---------------------------------------------------------------------------
# Layout plumbing (XLA data movement around the Pallas matmuls)
# ---------------------------------------------------------------------------
def _im2col_nhwc(x, kh, kw):
    """(B,H,W,C) -> (B*Ho*Wo, kh*kw*C); K ordered (di, dj, c) = HWIO flatten."""
    B, H, W, C = x.shape
    Ho, Wo = H - kh + 1, W - kw + 1
    cols = [x[:, di:di + Ho, dj:dj + Wo, :] for di in range(kh) for dj in range(kw)]
    p = jnp.stack(cols, axis=3)                   # (B, Ho, Wo, kh*kw, C)
    return p.reshape(B * Ho * Wo, kh * kw * C), (B, Ho, Wo)


def circular8_pad(x, pad=2):
    """Conv2d_Circular8 padding on NCHW: circular-pad the first 8 W-columns."""
    circ, other = x[..., 0:8], x[..., 8:]
    circ = jnp.concatenate([circ[..., -pad:], circ, circ[..., :pad]], axis=-1)
    return jnp.concatenate([circ, other], axis=-1)


def maxpool2d_nhwc(x, kh, kw):
    B, H, W, C = x.shape
    Ho, Wo = H // kh, W // kw
    x = x[:, :Ho * kh, :Wo * kw, :].reshape(B, Ho, kh, Wo, kw, C)
    return x.max(axis=(2, 4))


def adaptive_maxpool2d_nhwc(x, oh, ow):
    B, H, W, C = x.shape
    rows = []
    for i in range(oh):
        h0, h1 = (i * H) // oh, -((-(i + 1) * H) // oh)
        cols = []
        for j in range(ow):
            w0, w1 = (j * W) // ow, -((-(j + 1) * W) // ow)
            cols.append(x[:, h0:h1, w0:w1, :].max(axis=(1, 2)))
        rows.append(jnp.stack(cols, axis=1))
    return jnp.stack(rows, axis=1)


def conv3x3_fused(x, layer, *, apply_elu):
    """3x3, stride 1, padding 1 conv (NHWC) as one fused Pallas matmul."""
    x = jnp.pad(x, ((0, 0), (1, 1), (1, 1), (0, 0)))
    a, (B, Ho, Wo) = _im2col_nhwc(x, 3, 3)
    out = fused_matmul(a, layer, apply_elu=apply_elu)
    return out.reshape(B, Ho, Wo, layer['n'])


def conv1x1_fused(x, layer, *, apply_elu):
    B, H, W, C = x.shape
    out = fused_matmul(x.reshape(B * H * W, C), layer, apply_elu=apply_elu)
    return out.reshape(B, H, W, layer['n'])


def bn_fold(gamma, beta, mean, var, eps=BN_EPS):
    """Eval-mode BatchNorm2d as  y * s + t  (per channel)."""
    s = gamma / jnp.sqrt(var + eps)
    return s, beta - mean * s


# ---------------------------------------------------------------------------
# One-time weight preparation (runs eagerly, outside the jitted forward)
# ---------------------------------------------------------------------------
def prepare_params(p):
    f32 = jnp.float32

    def layer(wmat, scale, bias):
        K, N = wmat.shape
        Kp, Np = _round_up(K, 128), _round_up(N, 128)
        return dict(
            w=jnp.pad(wmat.astype(f32), ((0, Kp - K), (0, Np - N))).astype(jnp.bfloat16),
            s=jnp.pad(scale.astype(f32), (0, Np - N)).reshape(1, Np),
            b=jnp.pad(bias.astype(f32), (0, Np - N)).reshape(1, Np),
            n=N)

    prep = {}
    branches = p['branches']
    nb = len(branches)
    c0 = branches[0]['conv_w'].shape[0]
    prep['c0'] = c0

    # --- grouped branch conv1 (per-branch column blocks of one weight) ------
    Kg = _round_up(max(KHS) * KW, 128)                      # 256
    Wg = jnp.zeros((Kg, c0 * nb), f32)
    sg, bg = [], []
    for i, (bp, kh) in enumerate(zip(branches, KHS)):
        wmat = jnp.transpose(bp['conv_w'], (2, 3, 1, 0)).reshape(kh * KW, c0)
        Wg = Wg.at[:kh * KW, c0 * i:c0 * (i + 1)].set(wmat)
        s, t = bn_fold(**bp['bn1'])
        sg.append(s)
        bg.append(bp['conv_b'] * s + t)
    prep['conv1'] = layer(Wg, jnp.concatenate(sg), jnp.concatenate(bg))

    # --- grouped branch SeparableConv2d (dw∘pw composed, block-diag over C) --
    Cin0, Cout0 = c0 * nb, 2 * c0 * nb
    Wsep = jnp.zeros((Cout0, Cin0, 3, 3), f32)
    s2, b2 = [], []
    for i, bp in enumerate(branches):
        fused = bp['pw_w'][:, :, 0, 0][:, :, None, None] * bp['dw_w'][:, 0][None, :, :, :]
        Wsep = Wsep.at[2 * c0 * i:2 * c0 * (i + 1), c0 * i:c0 * (i + 1)].set(fused)
        s, t = bn_fold(**bp['bn2'])
        s2.append(s)
        b2.append(t)
    wmat = jnp.transpose(Wsep, (2, 3, 1, 0)).reshape(9 * Cin0, Cout0)
    prep['sep0'] = layer(wmat, jnp.concatenate(s2), jnp.concatenate(b2))

    # --- trunk ---------------------------------------------------------------
    c1 = p['conv2_w'].shape[0]
    wmat = jnp.transpose(p['conv2_w'], (2, 3, 1, 0)).reshape(Cout0, c1)
    prep['conv2'] = layer(wmat, jnp.ones((c1,), f32), p['conv2_b'])

    c2 = p['sep1_pw_w'].shape[0]
    fused = p['sep1_pw_w'][:, :, 0, 0][:, :, None, None] * p['sep1_dw_w'][:, 0][None]
    wmat = jnp.transpose(fused, (2, 3, 1, 0)).reshape(9 * c1, c2)
    s, t = bn_fold(**p['bn3'])
    prep['sep1'] = layer(wmat, s, t)

    c3 = p['sep2_pw_w'].shape[0]
    fused = p['sep2_pw_w'][:, :, 0, 0][:, :, None, None] * p['sep2_dw_w'][:, 0][None]
    wmat = jnp.transpose(fused, (2, 3, 1, 0)).reshape(9 * c2, c3)
    s, t = bn_fold(**p['bn4'])
    prep['sep2'] = layer(wmat, s, t)

    # --- fc head: permute fc1 columns from NCHW-flatten to NHWC-flatten -----
    n1 = p['fc1_w'].shape[0]
    n2 = p['fc2_w'].shape[0]
    # final feature map is (B, 2, 1, c3) NHWC; torch flattens (B, c3, 2, 1).
    w1 = p['fc1_w'].reshape(n1, c3, 2, 1).transpose(0, 2, 3, 1).reshape(n1, 2 * c3).T
    K1p, N1p = _round_up(w1.shape[0], 128), _round_up(n1, 128)
    w2 = p['fc2_w'].T
    N2p = _round_up(n2, 128)
    prep['fc'] = dict(
        w1=jnp.pad(w1.astype(f32), ((0, K1p - w1.shape[0]), (0, N1p - n1))).astype(jnp.bfloat16),
        b1=jnp.pad(p['fc1_b'].astype(f32), (0, N1p - n1)).reshape(1, N1p),
        w2=jnp.pad(w2.astype(f32), ((0, N1p - n1), (0, N2p - n2))).astype(jnp.bfloat16),
        b2=jnp.pad(p['fc2_b'].astype(f32), (0, N2p - n2)).reshape(1, N2p),
        n1=n1, n2=n2)
    return prep


# ---------------------------------------------------------------------------
# MKCNN forward (Pallas path, NHWC activations)
# ---------------------------------------------------------------------------
def mkcnn_forward(x, prep):
    """MKCNN.forward -> (logits, linear1_output), inference mode."""
    B = x.shape[0]
    c0 = prep['c0']

    # Conv2d_Circular8 padding (shared by all branches: kw=3 -> pad (2,2,0,0)).
    xp = circular8_pad(x, pad=2).transpose(0, 2, 3, 1).astype(jnp.bfloat16)  # NHWC

    # --- all five branch convs in ONE Pallas launch --------------------------
    Kg = prep['conv1']['w'].shape[0]
    a_list, meta, off = [], [], 0
    for kh in KHS:
        a, (_, Ho, Wo) = _im2col_nhwc(xp, kh, KW)
        a = jnp.pad(a, ((0, 0), (0, Kg - a.shape[1])))
        a_list.append(a)
        meta.append((off, Ho, Wo))
        off += a.shape[0]
    y = fused_matmul(jnp.concatenate(a_list, axis=0), prep['conv1'], apply_elu=True)

    feats = []
    for i, (kh, (o, Ho, Wo)) in enumerate(zip(KHS, meta)):
        yi = y[o:o + B * Ho * Wo, c0 * i:c0 * (i + 1)].reshape(B, Ho, Wo, c0)
        pt, pb = (kh // 2, kh // 2 - 1) if kh % 2 == 0 else ((kh - 1) // 2, (kh - 1) // 2)
        yi = jnp.pad(yi, ((0, 0), (pt, pb), (0, 0), (0, 0)))   # ZeroPad2d (H); ELU(0)=0 so exact
        feats.append(maxpool2d_nhwc(yi, 20, 1))                # MaxPool2d((20,1)); Dropout2d=id
    z = jnp.concatenate(feats, axis=-1)                        # (B, 10, 14, 5*c0)

    # --- grouped branch SeparableConv2d + BN2 + ELU, one launch --------------
    z = conv3x3_fused(z, prep['sep0'], apply_elu=True)
    z = maxpool2d_nhwc(z, 2, 2)                                # (B, 5, 7, 10*c0)

    # --- trunk ---------------------------------------------------------------
    z = conv1x1_fused(z, prep['conv2'], apply_elu=True)        # Conv2d(.,.,1)+ELU
    z = conv3x3_fused(z, prep['sep1'], apply_elu=True)         # SeparableConv2d+BN3+ELU
    z = adaptive_maxpool2d_nhwc(z, 5, 3)                       # AdaptiveMaxPool2d((5,3))
    z = conv3x3_fused(z, prep['sep2'], apply_elu=True)         # SeparableConv2d+BN4+ELU
    z = maxpool2d_nhwc(z, 2, 2)                                # (B, 2, 1, c3)

    feat = z.reshape(B, -1)                                    # NHWC flatten (fc1 pre-permuted)
    logits, lin1 = mlp_head(feat, prep['fc'])                  # fc1+ELU+fc2 fused
    return logits, lin1


# ---------------------------------------------------------------------------
# Pure-JAX reference (mirrors the PyTorch op ordering exactly, f32 HIGHEST)
# ---------------------------------------------------------------------------
def _elu(x):
    return jnp.where(x > 0, x, jnp.exp(jnp.minimum(x, 0.0)) - 1.0)


def maxpool2d(x, kh, kw):
    B, C, H, W = x.shape
    Ho, Wo = H // kh, W // kw
    x = x[:, :, :Ho * kh, :Wo * kw].reshape(B, C, Ho, kh, Wo, kw)
    return x.max(axis=(3, 5))


def adaptive_maxpool2d(x, oh, ow):
    B, C, H, W = x.shape
    rows = []
    for i in range(oh):
        h0, h1 = (i * H) // oh, -((-(i + 1) * H) // oh)
        cols = []
        for j in range(ow):
            w0, w1 = (j * W) // ow, -((-(j + 1) * W) // ow)
            cols.append(x[:, :, h0:h1, w0:w1].max(axis=(2, 3)))
        rows.append(jnp.stack(cols, axis=-1))
    return jnp.stack(rows, axis=-2)


def _ref_conv(x, w, b=None, *, groups=1, padding=0):
    dn = lax.conv_dimension_numbers(x.shape, w.shape, ('NCHW', 'OIHW', 'NCHW'))
    pad = ((padding, padding), (padding, padding))
    y = lax.conv_general_dilated(x, w, (1, 1), pad, dimension_numbers=dn,
                                 feature_group_count=groups,
                                 precision=lax.Precision.HIGHEST)
    if b is not None:
        y = y + b[None, :, None, None]
    return y


def _ref_bn(x, gamma, beta, mean, var, eps=BN_EPS):
    inv = gamma / jnp.sqrt(var + eps)
    return (x - mean[None, :, None, None]) * inv[None, :, None, None] + beta[None, :, None, None]


def _ref_branch(x, p, kh):
    y = circular8_pad(x, pad=2)
    y = _ref_conv(y, p['conv_w'], p['conv_b'])
    y = _ref_bn(y, **p['bn1'])
    pt, pb = (kh // 2, kh // 2 - 1) if kh % 2 == 0 else ((kh - 1) // 2, (kh - 1) // 2)
    y = jnp.pad(y, ((0, 0), (0, 0), (pt, pb), (0, 0)))
    y = _elu(y)
    y = maxpool2d(y, 20, 1)
    y = _ref_conv(y, p['dw_w'], None, groups=y.shape[1], padding=1)
    y = _ref_conv(y, p['pw_w'], None)
    y = _elu(_ref_bn(y, **p['bn2']))
    return maxpool2d(y, 2, 2)


def ref_forward(x, params):
    y = jnp.concatenate(
        [_ref_branch(x, b, kh) for b, kh in zip(params['branches'], KHS)], axis=1)
    y = _elu(_ref_conv(y, params['conv2_w'], params['conv2_b']))
    y = _ref_conv(y, params['sep1_dw_w'], None, groups=y.shape[1], padding=1)
    y = _ref_conv(y, params['sep1_pw_w'], None)
    y = _elu(_ref_bn(y, **params['bn3']))
    y = adaptive_maxpool2d(y, 5, 3)
    y = _ref_conv(y, params['sep2_dw_w'], None, groups=y.shape[1], padding=1)
    y = _ref_conv(y, params['sep2_pw_w'], None)
    y = _elu(_ref_bn(y, **params['bn4']))
    y = maxpool2d(y, 2, 2)
    y = y.reshape(y.shape[0], -1)
    lin1 = jnp.dot(y, params['fc1_w'].T, precision=lax.Precision.HIGHEST) + params['fc1_b']
    out = jnp.dot(_elu(lin1), params['fc2_w'].T, precision=lax.Precision.HIGHEST) + params['fc2_b']
    return out, lin1


# ---------------------------------------------------------------------------
# Deterministic parameter construction (eval-mode BN statistics included)
# ---------------------------------------------------------------------------
def init_params(key, in_ch=1, out_ch=(4, 8, 8, 128), n_classes=14):
    keys = iter(jax.random.split(key, 128))

    def nrm(shape, scale):
        return jax.random.normal(next(keys), shape, jnp.float32) * scale

    def bn(c):
        return dict(gamma=1.0 + 0.1 * nrm((c,), 1.0), beta=0.1 * nrm((c,), 1.0),
                    mean=0.1 * nrm((c,), 1.0), var=0.5 + jnp.abs(nrm((c,), 0.5)))

    c0, c1, c2, c3 = out_ch
    branches = []
    for kh in KHS:
        branches.append(dict(
            conv_w=nrm((c0, in_ch, kh, KW), 1.0 / math.sqrt(in_ch * kh * KW)),
            conv_b=nrm((c0,), 0.1),
            bn1=bn(c0),
            dw_w=nrm((c0, 1, 3, 3), 1.0 / 3.0),
            pw_w=nrm((2 * c0, c0, 1, 1), 1.0 / math.sqrt(c0)),
            bn2=bn(2 * c0),
        ))
    return dict(
        branches=branches,
        conv2_w=nrm((c1, 2 * c0 * len(KHS), 1, 1), 1.0 / math.sqrt(2 * c0 * len(KHS))),
        conv2_b=nrm((c1,), 0.1),
        sep1_dw_w=nrm((c1, 1, 3, 3), 1.0 / 3.0),
        sep1_pw_w=nrm((c2, c1, 1, 1), 1.0 / math.sqrt(c1)),
        bn3=bn(c2),
        sep2_dw_w=nrm((c2, 1, 3, 3), 1.0 / 3.0),
        sep2_pw_w=nrm((c3, c2, 1, 1), 1.0 / math.sqrt(c2)),
        bn4=bn(c3),
        fc1_w=nrm((128, 256), 1.0 / 16.0),
        fc1_b=nrm((128,), 0.1),
        fc2_w=nrm((n_classes, 128), 1.0 / math.sqrt(128)),
        fc2_b=nrm((n_classes,), 0.1),
    )


if __name__ == "__main__":
    # Shapes consistent with MKCNN: Flatten -> Linear(256,128) forces
    # out_ch[3] = 128 (final spatial (2,1)); kernels up to height 50 and the
    # MaxPool2d((20,1)) imply H >= 200 for the AdaptiveMaxPool2d((5,3)) input,
    # and Conv2d_Circular8 needs W >= 8.  Keep everything else small.
    B, H, W = 2, 200, 12
    out_ch = (4, 8, 8, 128)
    n_classes = 14

    key = jax.random.PRNGKey(0)
    kx, kp = jax.random.split(key)
    x = jax.random.normal(kx, (B, 1, H, W), dtype=jnp.float32)
    params = init_params(kp, in_ch=1, out_ch=out_ch, n_classes=n_classes)

    prep = prepare_params(params)               # weight prep done ONCE, outside jit
    fwd = jax.jit(lambda inp: mkcnn_forward(inp, prep))
    logits, lin1 = fwd(x)
    logits, lin1 = jax.block_until_ready((logits, lin1))

    assert logits.shape == (B, n_classes) and lin1.shape == (B, 128)

    ref_logits, ref_lin1 = jax.jit(ref_forward)(x, params)

    # bf16 MXU inputs with f32 accumulation across a ~7-matmul-deep pipeline:
    # compare with a normalized (relative-to-max-magnitude) error metric.
    def nrel(a, b):
        return float(jnp.max(jnp.abs(a - b)) / (jnp.max(jnp.abs(b)) + 1e-6))

    err_logits = nrel(logits, ref_logits)
    err_lin1 = nrel(lin1, ref_lin1)
    assert err_logits < 7e-2 and err_lin1 < 7e-2, (err_logits, err_lin1)

    print("KERNEL_OK")
</pallas_src>

<mosaic_0001>
module attributes {stable_mosaic.version = 11 : i64} {
  func.func @_fused_mm_kernel(%arg0: i32, %arg1: i32, %arg2: memref<512x256xbf16, #tpu.memory_space<vmem>>, %arg3: memref<256x128xbf16, #tpu.memory_space<vmem>>, %arg4: memref<1x128xf32, #tpu.memory_space<vmem>>, %arg5: memref<1x128xf32, #tpu.memory_space<vmem>>, %arg6: memref<512x128xf32, #tpu.memory_space<vmem>>) attributes {dimension_semantics = [#tpu.dimension_semantics<parallel>, #tpu.dimension_semantics<parallel>], iteration_bounds = array<i64: 47, 1>, scalar_prefetch = 0 : i64, scratch_operands = 0 : i64, tpu.core_type = #tpu.core_type<tc>, window_params = [{transform_indices = @transform_0, window_bounds = array<i64: 512, 256>}, {transform_indices = @transform_1, window_bounds = array<i64: 256, 128>}, {transform_indices = @transform_2, window_bounds = array<i64: 1, 128>}, {transform_indices = @transform_3, window_bounds = array<i64: 1, 128>}, {transform_indices = @transform_4, window_bounds = array<i64: 512, 128>}]} {
    %c0 = arith.constant 0 : index
    %c0_0 = arith.constant 0 : index
    %0 = vector.load %arg2[%c0, %c0_0] : memref<512x256xbf16, #tpu.memory_space<vmem>>, vector<512x256xbf16>
    %c0_1 = arith.constant 0 : index
    %c0_2 = arith.constant 0 : index
    %1 = vector.load %arg3[%c0_1, %c0_2] : memref<256x128xbf16, #tpu.memory_space<vmem>>, vector<256x128xbf16>
    %cst = arith.constant dense<0.000000e+00> : vector<512x128xf32>
    %2 = tpu.matmul %0, %1, %cst {dimension_numbers = #tpu.dot_dimension_numbers<[1], [0], [0], [1], [0, 0, 1, 1], [], []>} : vector<512x256xbf16>, vector<256x128xbf16>, vector<512x128xf32> -> vector<512x128xf32>
    %c0_3 = arith.constant 0 : index
    %c0_4 = arith.constant 0 : index
    %3 = vector.load %arg4[%c0_3, %c0_4] : memref<1x128xf32, #tpu.memory_space<vmem>>, vector<1x128xf32>
    %4 = vector.broadcast %3 : vector<1x128xf32> to vector<512x128xf32>
    %5 = arith.mulf %2, %4 : vector<512x128xf32>
    %c0_5 = arith.constant 0 : index
    %c0_6 = arith.constant 0 : index
    %6 = vector.load %arg5[%c0_5, %c0_6] : memref<1x128xf32, #tpu.memory_space<vmem>>, vector<1x128xf32>
    %7 = vector.broadcast %6 : vector<1x128xf32> to vector<512x128xf32>
    %8 = arith.addf %5, %7 : vector<512x128xf32>
    %cst_7 = arith.constant 0.000000e+00 : f32
    %9 = vector.broadcast %cst_7 : f32 to vector<512x128xf32>
    %10 = arith.cmpf ogt, %8, %9 : vector<512x128xf32>
    %cst_8 = arith.constant 0.000000e+00 : f32
    %11 = vector.broadcast %cst_8 : f32 to vector<512x128xf32>
    %12 = arith.minimumf %8, %11 : vector<512x128xf32>
    %13 = math.exp %12 : vector<512x128xf32>
    %cst_9 = arith.constant 1.000000e+00 : f32
    %14 = vector.broadcast %cst_9 : f32 to vector<512x128xf32>
    %15 = arith.subf %13, %14 : vector<512x128xf32>
    %16 = arith.select %10, %8, %15 : vector<512x128xi1>, vector<512x128xf32>
    %c0_10 = arith.constant 0 : index
    %c0_11 = arith.constant 0 : index
    %17 = vector.load %arg6[%c0_10, %c0_11] : memref<512x128xf32, #tpu.memory_space<vmem>>, vector<512x128xf32>
    tpu.vector_store %arg6[%c0_10, %c0_11], %16 {strides = array<i32>} : memref<512x128xf32, #tpu.memory_space<vmem>>, vector<512x128xf32>,
    return
  }
  func.func @transform_0(%arg0: i32, %arg1: i32) -> (i32, i32) {
    %c0_i32 = arith.constant 0 : i32
    %c0_i32_0 = arith.constant 0 : i32
    return %arg0, %c0_i32 : i32, i32
  }
  func.func @transform_1(%arg0: i32, %arg1: i32) -> (i32, i32) {
    %c0_i32 = arith.constant 0 : i32
    %c0_i32_0 = arith.constant 0 : i32
    return %c0_i32, %arg1 : i32, i32
  }
  func.func @transform_2(%arg0: i32, %arg1: i32) -> (i32, i32) {
    %c0_i32 = arith.constant 0 : i32
    %c0_i32_0 = arith.constant 0 : i32
    return %c0_i32, %arg1 : i32, i32
  }
  func.func @transform_3(%arg0: i32, %arg1: i32) -> (i32, i32) {
    %c0_i32 = arith.constant 0 : i32
    %c0_i32_0 = arith.constant 0 : i32
    return %c0_i32, %arg1 : i32, i32
  }
  func.func @transform_4(%arg0: i32, %arg1: i32) -> (i32, i32) {
    %c0_i32 = arith.constant 0 : i32
    return %arg0, %arg1 : i32, i32
  }
}

module attributes {stable_mosaic.version = 11 : i64} {
  func.func @_fused_mm_kernel(%arg0: i32, %arg1: i32, %arg2: memref<288x256xbf16, #tpu.memory_space<vmem>>, %arg3: memref<256x128xbf16, #tpu.memory_space<vmem>>, %arg4: memref<1x128xf32, #tpu.memory_space<vmem>>, %arg5: memref<1x128xf32, #tpu.memory_space<vmem>>, %arg6: memref<288x128xf32, #tpu.memory_space<vmem>>) attributes {dimension_semantics = [#tpu.dimension_semantics<parallel>, #tpu.dimension_semantics<parallel>], iteration_bounds = array<i64: 1, 1>, scalar_prefetch = 0 : i64, scratch_operands = 0 : i64, tpu.core_type = #tpu.core_type<tc>, window_params = [{transform_indices = @transform_0, window_bounds = array<i64: 288, 256>}, {transform_indices = @transform_1, window_bounds = array<i64: 256, 128>}, {transform_indices = @transform_2, window_bounds = array<i64: 1, 128>}, {transform_indices = @transform_3, window_bounds = array<i64: 1, 128>}, {transform_indices = @transform_4, window_bounds = array<i64: 288, 128>}]} {
    %c0 = arith.constant 0 : index
    %c0_0 = arith.constant 0 : index
    %0 = vector.load %arg2[%c0, %c0_0] : memref<288x256xbf16, #tpu.memory_space<vmem>>, vector<288x256xbf16>
    %c0_1 = arith.constant 0 : index
    %c0_2 = arith.constant 0 : index
    %1 = vector.load %arg3[%c0_1, %c0_2] : memref<256x128xbf16, #tpu.memory_space<vmem>>, vector<256x128xbf16>
    %cst = arith.constant dense<0.000000e+00> : vector<288x128xf32>
    %2 = tpu.matmul %0, %1, %cst {dimension_numbers = #tpu.dot_dimension_numbers<[1], [0], [0], [1], [0, 0, 1, 1], [], []>} : vector<288x256xbf16>, vector<256x128xbf16>, vector<288x128xf32> -> vector<288x128xf32>
    %c0_3 = arith.constant 0 : index
    %c0_4 = arith.constant 0 : index
    %3 = vector.load %arg4[%c0_3, %c0_4] : memref<1x128xf32, #tpu.memory_space<vmem>>, vector<1x128xf32>
    %4 = vector.broadcast %3 : vector<1x128xf32> to vector<288x128xf32>
    %5 = arith.mulf %2, %4 : vector<288x128xf32>
    %c0_5 = arith.constant 0 : index
    %c0_6 = arith.constant 0 : index
    %6 = vector.load %arg5[%c0_5, %c0_6] : memref<1x128xf32, #tpu.memory_space<vmem>>, vector<1x128xf32>
    %7 = vector.broadcast %6 : vector<1x128xf32> to vector<288x128xf32>
    %8 = arith.addf %5, %7 : vector<288x128xf32>
    %cst_7 = arith.constant 0.000000e+00 : f32
    %9 = vector.broadcast %cst_7 : f32 to vector<288x128xf32>
    %10 = arith.cmpf ogt, %8, %9 : vector<288x128xf32>
    %cst_8 = arith.constant 0.000000e+00 : f32
    %11 = vector.broadcast %cst_8 : f32 to vector<288x128xf32>
    %12 = arith.minimumf %8, %11 : vector<288x128xf32>
    %13 = math.exp %12 : vector<288x128xf32>
    %cst_9 = arith.constant 1.000000e+00 : f32
    %14 = vector.broadcast %cst_9 : f32 to vector<288x128xf32>
    %15 = arith.subf %13, %14 : vector<288x128xf32>
    %16 = arith.select %10, %8, %15 : vector<288x128xi1>, vector<288x128xf32>
    %c0_10 = arith.constant 0 : index
    %c0_11 = arith.constant 0 : index
    %17 = vector.load %arg6[%c0_10, %c0_11] : memref<288x128xf32, #tpu.memory_space<vmem>>, vector<288x128xf32>
    tpu.vector_store %arg6[%c0_10, %c0_11], %16 {strides = array<i32>} : memref<288x128xf32, #tpu.memory_space<vmem>>, vector<288x128xf32>,
    return
  }
  func.func @transform_0(%arg0: i32, %arg1: i32) -> (i32, i32) {
    %c0_i32 = arith.constant 0 : i32
    %c0_i32_0 = arith.constant 0 : i32
    return %arg0, %c0_i32 : i32, i32
  }
  func.func @transform_1(%arg0: i32, %arg1: i32) -> (i32, i32) {
    %c0_i32 = arith.constant 0 : i32
    %c0_i32_0 = arith.constant 0 : i32
    return %c0_i32, %arg1 : i32, i32
  }
  func.func @transform_2(%arg0: i32, %arg1: i32) -> (i32, i32) {
    %c0_i32 = arith.constant 0 : i32
    %c0_i32_0 = arith.constant 0 : i32
    return %c0_i32, %arg1 : i32, i32
  }
  func.func @transform_3(%arg0: i32, %arg1: i32) -> (i32, i32) {
    %c0_i32 = arith.constant 0 : i32
    %c0_i32_0 = arith.constant 0 : i32
    return %c0_i32, %arg1 : i32, i32
  }
  func.func @transform_4(%arg0: i32, %arg1: i32) -> (i32, i32) {
    %c0_i32 = arith.constant 0 : i32
    return %arg0, %arg1 : i32, i32
  }
}

module attributes {stable_mosaic.version = 11 : i64} {
  func.func @_fused_mm_kernel(%arg0: i32, %arg1: i32, %arg2: memref<80x128xbf16, #tpu.memory_space<vmem>>, %arg3: memref<128x128xbf16, #tpu.memory_space<vmem>>, %arg4: memref<1x128xf32, #tpu.memory_space<vmem>>, %arg5: memref<1x128xf32, #tpu.memory_space<vmem>>, %arg6: memref<80x128xf32, #tpu.memory_space<vmem>>) attributes {dimension_semantics = [#tpu.dimension_semantics<parallel>, #tpu.dimension_semantics<parallel>], iteration_bounds = array<i64: 1, 1>, scalar_prefetch = 0 : i64, scratch_operands = 0 : i64, tpu.core_type = #tpu.core_type<tc>, window_params = [{transform_indices = @transform_0, window_bounds = array<i64: 80, 128>}, {transform_indices = @transform_1, window_bounds = array<i64: 128, 128>}, {transform_indices = @transform_2, window_bounds = array<i64: 1, 128>}, {transform_indices = @transform_3, window_bounds = array<i64: 1, 128>}, {transform_indices = @transform_4, window_bounds = array<i64: 80, 128>}]} {
    %c0 = arith.constant 0 : index
    %c0_0 = arith.constant 0 : index
    %0 = vector.load %arg2[%c0, %c0_0] : memref<80x128xbf16, #tpu.memory_space<vmem>>, vector<80x128xbf16>
    %c0_1 = arith.constant 0 : index
    %c0_2 = arith.constant 0 : index
    %1 = vector.load %arg3[%c0_1, %c0_2] : memref<128x128xbf16, #tpu.memory_space<vmem>>, vector<128x128xbf16>
    %cst = arith.constant dense<0.000000e+00> : vector<80x128xf32>
    %2 = tpu.matmul %0, %1, %cst {dimension_numbers = #tpu.dot_dimension_numbers<[1], [0], [0], [1], [0, 0, 1, 1], [], []>} : vector<80x128xbf16>, vector<128x128xbf16>, vector<80x128xf32> -> vector<80x128xf32>
    %c0_3 = arith.constant 0 : index
    %c0_4 = arith.constant 0 : index
    %3 = vector.load %arg4[%c0_3, %c0_4] : memref<1x128xf32, #tpu.memory_space<vmem>>, vector<1x128xf32>
    %4 = vector.broadcast %3 : vector<1x128xf32> to vector<80x128xf32>
    %5 = arith.mulf %2, %4 : vector<80x128xf32>
    %c0_5 = arith.constant 0 : index
    %c0_6 = arith.constant 0 : index
    %6 = vector.load %arg5[%c0_5, %c0_6] : memref<1x128xf32, #tpu.memory_space<vmem>>, vector<1x128xf32>
    %7 = vector.broadcast %6 : vector<1x128xf32> to vector<80x128xf32>
    %8 = arith.addf %5, %7 : vector<80x128xf32>
    %cst_7 = arith.constant 0.000000e+00 : f32
    %9 = vector.broadcast %cst_7 : f32 to vector<80x128xf32>
    %10 = arith.cmpf ogt, %8, %9 : vector<80x128xf32>
    %cst_8 = arith.constant 0.000000e+00 : f32
    %11 = vector.broadcast %cst_8 : f32 to vector<80x128xf32>
    %12 = arith.minimumf %8, %11 : vector<80x128xf32>
    %13 = math.exp %12 : vector<80x128xf32>
    %cst_9 = arith.constant 1.000000e+00 : f32
    %14 = vector.broadcast %cst_9 : f32 to vector<80x128xf32>
    %15 = arith.subf %13, %14 : vector<80x128xf32>
    %16 = arith.select %10, %8, %15 : vector<80x128xi1>, vector<80x128xf32>
    %c0_10 = arith.constant 0 : index
    %c0_11 = arith.constant 0 : index
    %17 = vector.load %arg6[%c0_10, %c0_11] : memref<80x128xf32, #tpu.memory_space<vmem>>, vector<80x128xf32>
    tpu.vector_store %arg6[%c0_10, %c0_11], %16 {strides = array<i32>} : memref<80x128xf32, #tpu.memory_space<vmem>>, vector<80x128xf32>,
    return
  }
  func.func @transform_0(%arg0: i32, %arg1: i32) -> (i32, i32) {
    %c0_i32 = arith.constant 0 : i32
    %c0_i32_0 = arith.constant 0 : i32
    return %arg0, %c0_i32 : i32, i32
  }
  func.func @transform_1(%arg0: i32, %arg1: i32) -> (i32, i32) {
    %c0_i32 = arith.constant 0 : i32
    %c0_i32_0 = arith.constant 0 : i32
    return %c0_i32, %arg1 : i32, i32
  }
  func.func @transform_2(%arg0: i32, %arg1: i32) -> (i32, i32) {
    %c0_i32 = arith.constant 0 : i32
    %c0_i32_0 = arith.constant 0 : i32
    return %c0_i32, %arg1 : i32, i32
  }
  func.func @transform_3(%arg0: i32, %arg1: i32) -> (i32, i32) {
    %c0_i32 = arith.constant 0 : i32
    %c0_i32_0 = arith.constant 0 : i32
    return %c0_i32, %arg1 : i32, i32
  }
  func.func @transform_4(%arg0: i32, %arg1: i32) -> (i32, i32) {
    %c0_i32 = arith.constant 0 : i32
    return %arg0, %arg1 : i32, i32
  }
}

module attributes {stable_mosaic.version = 11 : i64} {
  func.func @_fused_mm_kernel(%arg0: i32, %arg1: i32, %arg2: memref<32x128xbf16, #tpu.memory_space<vmem>>, %arg3: memref<128x128xbf16, #tpu.memory_space<vmem>>, %arg4: memref<1x128xf32, #tpu.memory_space<vmem>>, %arg5: memref<1x128xf32, #tpu.memory_space<vmem>>, %arg6: memref<32x128xf32, #tpu.memory_space<vmem>>) attributes {dimension_semantics = [#tpu.dimension_semantics<parallel>, #tpu.dimension_semantics<parallel>], iteration_bounds = array<i64: 1, 1>, scalar_prefetch = 0 : i64, scratch_operands = 0 : i64, tpu.core_type = #tpu.core_type<tc>, window_params = [{transform_indices = @transform_0, window_bounds = array<i64: 32, 128>}, {transform_indices = @transform_1, window_bounds = array<i64: 128, 128>}, {transform_indices = @transform_2, window_bounds = array<i64: 1, 128>}, {transform_indices = @transform_3, window_bounds = array<i64: 1, 128>}, {transform_indices = @transform_4, window_bounds = array<i64: 32, 128>}]} {
    %c0 = arith.constant 0 : index
    %c0_0 = arith.constant 0 : index
    %0 = vector.load %arg2[%c0, %c0_0] : memref<32x128xbf16, #tpu.memory_space<vmem>>, vector<32x128xbf16>
    %c0_1 = arith.constant 0 : index
    %c0_2 = arith.constant 0 : index
    %1 = vector.load %arg3[%c0_1, %c0_2] : memref<128x128xbf16, #tpu.memory_space<vmem>>, vector<128x128xbf16>
    %cst = arith.constant dense<0.000000e+00> : vector<32x128xf32>
    %2 = tpu.matmul %0, %1, %cst {dimension_numbers = #tpu.dot_dimension_numbers<[1], [0], [0], [1], [0, 0, 1, 1], [], []>} : vector<32x128xbf16>, vector<128x128xbf16>, vector<32x128xf32> -> vector<32x128xf32>
    %c0_3 = arith.constant 0 : index
    %c0_4 = arith.constant 0 : index
    %3 = vector.load %arg4[%c0_3, %c0_4] : memref<1x128xf32, #tpu.memory_space<vmem>>, vector<1x128xf32>
    %4 = vector.broadcast %3 : vector<1x128xf32> to vector<32x128xf32>
    %5 = arith.mulf %2, %4 : vector<32x128xf32>
    %c0_5 = arith.constant 0 : index
    %c0_6 = arith.constant 0 : index
    %6 = vector.load %arg5[%c0_5, %c0_6] : memref<1x128xf32, #tpu.memory_space<vmem>>, vector<1x128xf32>
    %7 = vector.broadcast %6 : vector<1x128xf32> to vector<32x128xf32>
    %8 = arith.addf %5, %7 : vector<32x128xf32>
    %cst_7 = arith.constant 0.000000e+00 : f32
    %9 = vector.broadcast %cst_7 : f32 to vector<32x128xf32>
    %10 = arith.cmpf ogt, %8, %9 : vector<32x128xf32>
    %cst_8 = arith.constant 0.000000e+00 : f32
    %11 = vector.broadcast %cst_8 : f32 to vector<32x128xf32>
    %12 = arith.minimumf %8, %11 : vector<32x128xf32>
    %13 = math.exp %12 : vector<32x128xf32>
    %cst_9 = arith.constant 1.000000e+00 : f32
    %14 = vector.broadcast %cst_9 : f32 to vector<32x128xf32>
    %15 = arith.subf %13, %14 : vector<32x128xf32>
    %16 = arith.select %10, %8, %15 : vector<32x128xi1>, vector<32x128xf32>
    %c0_10 = arith.constant 0 : index
    %c0_11 = arith.constant 0 : index
    %17 = vector.load %arg6[%c0_10, %c0_11] : memref<32x128xf32, #tpu.memory_space<vmem>>, vector<32x128xf32>
    tpu.vector_store %arg6[%c0_10, %c0_11], %16 {strides = array<i32>} : memref<32x128xf32, #tpu.memory_space<vmem>>, vector<32x128xf32>,
    return
  }
  func.func @transform_0(%arg0: i32, %arg1: i32) -> (i32, i32) {
    %c0_i32 = arith.constant 0 : i32
    %c0_i32_0 = arith.constant 0 : i32
    return %arg0, %c0_i32 : i32, i32
  }
  func.func @transform_1(%arg0: i32, %arg1: i32) -> (i32, i32) {
    %c0_i32 = arith.constant 0 : i32
    %c0_i32_0 = arith.constant 0 : i32
    return %c0_i32, %arg1 : i32, i32
  }
  func.func @transform_2(%arg0: i32, %arg1: i32) -> (i32, i32) {
    %c0_i32 = arith.constant 0 : i32
    %c0_i32_0 = arith.constant 0 : i32
    return %c0_i32, %arg1 : i32, i32
  }
  func.func @transform_3(%arg0: i32, %arg1: i32) -> (i32, i32) {
    %c0_i32 = arith.constant 0 : i32
    %c0_i32_0 = arith.constant 0 : i32
    return %c0_i32, %arg1 : i32, i32
  }
  func.func @transform_4(%arg0: i32, %arg1: i32) -> (i32, i32) {
    %c0_i32 = arith.constant 0 : i32
    return %arg0, %arg1 : i32, i32
  }
}

module attributes {stable_mosaic.version = 11 : i64} {
  func.func @_mlp_head_kernel(%arg0: i32, %arg1: memref<16x256xbf16, #tpu.memory_space<vmem>>, %arg2: memref<256x128xbf16, #tpu.memory_space<vmem>>, %arg3: memref<1x128xf32, #tpu.memory_space<vmem>>, %arg4: memref<128x128xbf16, #tpu.memory_space<vmem>>, %arg5: memref<1x128xf32, #tpu.memory_space<vmem>>, %arg6: memref<16x128xf32, #tpu.memory_space<vmem>>, %arg7: memref<16x128xf32, #tpu.memory_space<vmem>>) attributes {dimension_semantics = [#tpu.dimension_semantics<arbitrary>], iteration_bounds = array<i64: 1>, scalar_prefetch = 0 : i64, scratch_operands = 0 : i64, tpu.core_type = #tpu.core_type<tc>, window_params = [{pipeline_mode = #tpu.pipeline_mode<synchronous>, transform_indices = @transform_0, window_bounds = array<i64: 16, 256>}, {pipeline_mode = #tpu.pipeline_mode<synchronous>, transform_indices = @transform_1, window_bounds = array<i64: 256, 128>}, {pipeline_mode = #tpu.pipeline_mode<synchronous>, transform_indices = @transform_2, window_bounds = array<i64: 1, 128>}, {pipeline_mode = #tpu.pipeline_mode<synchronous>, transform_indices = @transform_3, window_bounds = array<i64: 128, 128>}, {pipeline_mode = #tpu.pipeline_mode<synchronous>, transform_indices = @transform_4, window_bounds = array<i64: 1, 128>}, {pipeline_mode = #tpu.pipeline_mode<synchronous>, transform_indices = @transform_5, window_bounds = array<i64: 16, 128>}, {pipeline_mode = #tpu.pipeline_mode<synchronous>, transform_indices = @transform_6, window_bounds = array<i64: 16, 128>}]} {
    %c0 = arith.constant 0 : index
    %c0_0 = arith.constant 0 : index
    %0 = vector.load %arg1[%c0, %c0_0] : memref<16x256xbf16, #tpu.memory_space<vmem>>, vector<16x256xbf16>
    %c0_1 = arith.constant 0 : index
    %c0_2 = arith.constant 0 : index
    %1 = vector.load %arg2[%c0_1, %c0_2] : memref<256x128xbf16, #tpu.memory_space<vmem>>, vector<256x128xbf16>
    %cst = arith.constant dense<0.000000e+00> : vector<16x128xf32>
    %2 = tpu.matmul %0, %1, %cst {dimension_numbers = #tpu.dot_dimension_numbers<[1], [0], [0], [1], [0, 0, 1, 1], [], []>} : vector<16x256xbf16>, vector<256x128xbf16>, vector<16x128xf32> -> vector<16x128xf32>
    %c0_3 = arith.constant 0 : index
    %c0_4 = arith.constant 0 : index
    %3 = vector.load %arg3[%c0_3, %c0_4] : memref<1x128xf32, #tpu.memory_space<vmem>>, vector<1x128xf32>
    %4 = vector.broadcast %3 : vector<1x128xf32> to vector<16x128xf32>
    %5 = arith.addf %2, %4 : vector<16x128xf32>
    %c0_5 = arith.constant 0 : index
    %c0_6 = arith.constant 0 : index
    %6 = vector.load %arg6[%c0_5, %c0_6] : memref<16x128xf32, #tpu.memory_space<vmem>>, vector<16x128xf32>
    tpu.vector_store %arg6[%c0_5, %c0_6], %5 {strides = array<i32>} : memref<16x128xf32, #tpu.memory_space<vmem>>, vector<16x128xf32>,
    %cst_7 = arith.constant 0.000000e+00 : f32
    %7 = vector.broadcast %cst_7 : f32 to vector<16x128xf32>
    %8 = arith.cmpf ogt, %5, %7 : vector<16x128xf32>
    %cst_8 = arith.constant 0.000000e+00 : f32
    %9 = vector.broadcast %cst_8 : f32 to vector<16x128xf32>
    %10 = arith.minimumf %5, %9 : vector<16x128xf32>
    %11 = math.exp %10 : vector<16x128xf32>
    %cst_9 = arith.constant 1.000000e+00 : f32
    %12 = vector.broadcast %cst_9 : f32 to vector<16x128xf32>
    %13 = arith.subf %11, %12 : vector<16x128xf32>
    %14 = arith.select %8, %5, %13 : vector<16x128xi1>, vector<16x128xf32>
    %15 = arith.truncf %14 : vector<16x128xf32> to vector<16x128xbf16>
    %c0_10 = arith.constant 0 : index
    %c0_11 = arith.constant 0 : index
    %16 = vector.load %arg4[%c0_10, %c0_11] : memref<128x128xbf16, #tpu.memory_space<vmem>>, vector<128x128xbf16>
    %cst_12 = arith.constant dense<0.000000e+00> : vector<16x128xf32>
    %17 = tpu.matmul %15, %16, %cst_12 {dimension_numbers = #tpu.dot_dimension_numbers<[1], [0], [0], [1], [0, 0, 1, 1], [], []>} : vector<16x128xbf16>, vector<128x128xbf16>, vector<16x128xf32> -> vector<16x128xf32>
    %c0_13 = arith.constant 0 : index
    %c0_14 = arith.constant 0 : index
    %18 = vector.load %arg5[%c0_13, %c0_14] : memref<1x128xf32, #tpu.memory_space<vmem>>, vector<1x128xf32>
    %19 = vector.broadcast %18 : vector<1x128xf32> to vector<16x128xf32>
    %20 = arith.addf %17, %19 : vector<16x128xf32>
    %c0_15 = arith.constant 0 : index
    %c0_16 = arith.constant 0 : index
    %21 = vector.load %arg7[%c0_15, %c0_16] : memref<16x128xf32, #tpu.memory_space<vmem>>, vector<16x128xf32>
    tpu.vector_store %arg7[%c0_15, %c0_16], %20 {strides = array<i32>} : memref<16x128xf32, #tpu.memory_space<vmem>>, vector<16x128xf32>,
    return
  }
  func.func @transform_0(%arg0: i32) -> (i32, i32) {
    %c0_i32 = arith.constant 0 : i32
    %c0_i32_0 = arith.constant 0 : i32
    %c0_i32_1 = arith.constant 0 : i32
    return %c0_i32, %c0_i32_0 : i32, i32
  }
  func.func @transform_1(%arg0: i32) -> (i32, i32) {
    %c0_i32 = arith.constant 0 : i32
    %c0_i32_0 = arith.constant 0 : i32
    %c0_i32_1 = arith.constant 0 : i32
    return %c0_i32, %c0_i32_0 : i32, i32
  }
  func.func @transform_2(%arg0: i32) -> (i32, i32) {
    %c0_i32 = arith.constant 0 : i32
    %c0_i32_0 = arith.constant 0 : i32
    %c0_i32_1 = arith.constant 0 : i32
    return %c0_i32, %c0_i32_0 : i32, i32
  }
  func.func @transform_3(%arg0: i32) -> (i32, i32) {
    %c0_i32 = arith.constant 0 : i32
    %c0_i32_0 = arith.constant 0 : i32
    %c0_i32_1 = arith.constant 0 : i32
    return %c0_i32, %c0_i32_0 : i32, i32
  }
  func.func @transform_4(%arg0: i32) -> (i32, i32) {
    %c0_i32 = arith.constant 0 : i32
    %c0_i32_0 = arith.constant 0 : i32
    %c0_i32_1 = arith.constant 0 : i32
    return %c0_i32, %c0_i32_0 : i32, i32
  }
  func.func @transform_5(%arg0: i32) -> (i32, i32) {
    %c0_i32 = arith.constant 0 : i32
    %c0_i32_0 = arith.constant 0 : i32
    %c0_i32_1 = arith.constant 0 : i32
    return %c0_i32, %c0_i32_0 : i32, i32
  }
  func.func @transform_6(%arg0: i32) -> (i32, i32) {
    %c0_i32 = arith.constant 0 : i32
    %c0_i32_0 = arith.constant 0 : i32
    %c0_i32_1 = arith.constant 0 : i32
    return %c0_i32, %c0_i32_0 : i32, i32
  }
}

</mosaic_0001>

<bundles_post_ra>
// kernel: _lambda_.6
= control target key start
LH: loop header
LB: loop body
LE: loop exit
PB: predicated region body
PF: predicated region fallthrough
CT: control target
= control target key end

     0   :  { %s2518_s15 = smov 0   ;;  %s2520_s16 = smov 0   ;;  %s3008_s0 = inlined_call_operand.vmem [shape: bf16[24064,256], index: 0, kind: input, shape index: {}]   ;;  %s3009_s1 = inlined_call_operand.vmem [shape: bf16[256,128], index: 1, kind: input, shape index: {}]   ;;  %s3010_s2 = inlined_call_operand.vmem [shape: f32[1,128], index: 2, kind: input, shape index: {}]   ;;  %s3011_s3 = inlined_call_operand.vmem [shape: f32[1,128], index: 3, kind: input, shape index: {}]   ;;  %s3012_s4 = inlined_call_operand.vmem [shape: f32[24064,128], index: 4, kind: output, shape index: {}]  }
   0x1   :  { %s2522_s17 = smov 0  }
   0x2 LB: > { %s26_s18 = sadd.s32 1, %s2487_s16  ;;  %p1824_p0 = scmp.ge.s32.totalorder %s2491_s17, 1  ;;  %s2491_s17 = sphi %s2522_s17, %s14_s17   ;;  %s2487_s16 = sphi %s2520_s16, %s3014_s16   ;;  %s2483_s15 = sphi %s2518_s15, %s3013_s15  }
   0x3   : > { %p28_p1 = scmp.ge.s32.totalorder %s26_s18, 47  ;;  %p203_p2 = scmp.lt.s32.totalorder %s2491_s17, 48 }
   0x5   : > { %s3016_s18 = smov (%p28_p1, %s26_s18), 0  ;;  %p204_p3 = pnand %p1824_p0, %p203_p2 }
   0x6   : > { %s1825_s5 = sshll.u32 (!%p204_p3), %s2483_s15, 6 }
   0x7   : > { %207 = sbr.rel (%p204_p3) target bundleno = 446 (0x1be), region = 36  ;;  %p244_p4 = scmp.lt.s32.totalorder (!%p204_p3), %s1825_s5, 3007 }
   0xc   : > { %v2288_v0 = vld [vmem:[%s3009_s1 + $0x38] sm:$0xff]  ;;  %v2287_v2 = vld [vmem:[%s3009_s1 + $0x30] sm:$0xff]  ;;  %v2286_v4 = vld [vmem:[%s3009_s1 + $0x28] sm:$0xff]  ;;  %s3018_s5 = smov (!%p244_p4, %s1825_s5), 3007 }
   0xd   : > { %v2296_v1 = vld [vmem:[%s3009_s1 + $0x78] sm:$0xff]  ;;  %781 = vmatpush.bf16.msra.mxu0 %v2288_v0  ;;  %2297 = vmatpush.bf16.msra.mxu2 %v2288_v0  ;;  %v2295_v3 = vld [vmem:[%s3009_s1 + $0x70] sm:$0xff]  ;;  %v2294_v5 = vld [vmem:[%s3009_s1 + $0x68] sm:$0xff]  ;;  %s2216_s21 = sshll.u32 %s3018_s5, 3 }
   0xe   : > { %950 = vmatpush.bf16.msra.mxu1 %v2296_v1  ;;  %2305 = vmatpush.bf16.msra.mxu3 %v2296_v1  ;;  %v2285_v6 = vld [vmem:[%s3009_s1 + $0x20] sm:$0xff]  ;;  %v2284_v8 = vld [vmem:[%s3009_s1 + $0x18] sm:$0xff]  ;;  %v2283_v10 = vld [vmem:[%s3009_s1 + $0x10] sm:$0xff]  ;;  %s2586_s26 = scalar_lea.vmem %s3008_s0, %s2216_s21  ;;  %s2699_s14 = scalar_lea.vmem %s3012_s4, %s2216_s21 }
   0xf   : > { %v2293_v7 = vld [vmem:[%s3009_s1 + $0x60] sm:$0xff]  ;;  %v2292_v9 = vld [vmem:[%s3009_s1 + $0x58] sm:$0xff]  ;;  %v2291_v11 = vld [vmem:[%s3009_s1 + $0x50] sm:$0xff] }
  0x10   : > { %v2282_v12 = vld [vmem:[%s3009_s1 + $0x8] sm:$0xff]  ;;  %v2281_v14 = vld [vmem:[%s3009_s1] sm:$0xff]  ;;  %v1840_v28 = vld [vmem:[%s2586_s26 + $0x10] sm:$0xf] }
  0x11   : > { %782 = vmatpush.bf16.msra.mxu0 %v2287_v2  ;;  %2298 = vmatpush.bf16.msra.mxu2 %v2287_v2  ;;  %v2290_v13 = vld [vmem:[%s3009_s1 + $0x48] sm:$0xff]  ;;  %v2289_v15 = vld [vmem:[%s3009_s1 + $0x40] sm:$0xff]  ;;  %v2220_v29 = vld [vmem:[%s2586_s26 + $0x14] sm:$0xf0] }
  0x12   : > { %951 = vmatpush.bf16.msra.mxu1 %v2295_v3  ;;  %2306 = vmatpush.bf16.msra.mxu3 %v2295_v3  ;;  %v1832_v16 = vld [vmem:[%s2586_s26] sm:$0xf]  ;;  %v2218_v17 = vld [vmem:[%s2586_s26 + $0x4] sm:$0xf0]  ;;  %v2217_v20 = vld [vmem:[%s2586_s26 + $0x4] sm:$0xf]  ;;  %v1841_v36 = vor.u32 %v2220_v29, %v1840_v28 }
  0x13   : > { %v1960_v18 = vld [vmem:[%s2586_s26 + $0x100] sm:$0xf]  ;;  %v2250_v19 = vld [vmem:[%s2586_s26 + $0x104] sm:$0xf0]  ;;  %v1834_v21 = vld [vmem:[%s2586_s26 + $0x8] sm:$0xf0]  ;;  %v1833_v24 = vor.u32 %v2218_v17, %v1832_v16 }
  0x14   : > { %v2249_v22 = vld [vmem:[%s2586_s26 + $0x104] sm:$0xf]  ;;  %v1962_v23 = vld [vmem:[%s2586_s26 + $0x108] sm:$0xf0]  ;;  %v1961_v25 = vor.u32 %v2250_v19, %v1960_v18  ;;  %v1837_v26 = vor.u32 %v2217_v20, %v1834_v21  ;;  %v1968_v30 = vld [vmem:[%s2586_s26 + $0x110] sm:$0xf] }
  0x15   : > { %783 = vmatpush.bf16.msra.mxu0 %v2286_v4  ;;  %2299 = vmatpush.bf16.msra.mxu2 %v2286_v4  ;;  %v1965_v27 = vor.u32 %v2249_v22, %v1962_v23  ;;  %v2252_v31 = vld [vmem:[%s2586_s26 + $0x114] sm:$0xf0]  ;;  %v2219_v32 = vld [vmem:[%s2586_s26 + $0x14] sm:$0xf]  ;;  %v1842_v33 = vld [vmem:[%s2586_s26 + $0x18] sm:$0xf0] }
  0x16   : > { %952 = vmatpush.bf16.msra.mxu1 %v2294_v5  ;;  %2307 = vmatpush.bf16.msra.mxu3 %v2294_v5  ;;  %v2251_v34 = vld [vmem:[%s2586_s26 + $0x114] sm:$0xf]  ;;  %v1970_v35 = vld [vmem:[%s2586_s26 + $0x118] sm:$0xf0]  ;;  %v1969_v37 = vor.u32 %v2252_v31, %v1968_v30  ;;  %v1845_v38 = vor.u32 %v2219_v32, %v1842_v33  ;;  %v1848_v40 = vld [vmem:[%s2586_s26 + $0x20] sm:$0xf] }
  0x17   : > { %v1973_v39 = vor.u32 %v2251_v34, %v1970_v35  ;;  %v2222_v41 = vld [vmem:[%s2586_s26 + $0x24] sm:$0xf0]  ;;  %v1976_v42 = vld [vmem:[%s2586_s26 + $0x120] sm:$0xf]  ;;  %v2221_v44 = vld [vmem:[%s2586_s26 + $0x24] sm:$0xf] }
  0x18   : > { %v2254_v43 = vld [vmem:[%s2586_s26 + $0x124] sm:$0xf0]  ;;  %v1850_v45 = vld [vmem:[%s2586_s26 + $0x28] sm:$0xf0]  ;;  %v2253_v46 = vld [vmem:[%s2586_s26 + $0x124] sm:$0xf]  ;;  %v1849_v48 = vor.u32 %v2222_v41, %v1848_v40 }
  0x19   : > { %784 = vmatpush.bf16.msra.mxu0 %v2285_v6  ;;  %2300 = vmatpush.bf16.msra.mxu2 %v2285_v6  ;;  %v1978_v47 = vld [vmem:[%s2586_s26 + $0x128] sm:$0xf0]  ;;  %v1977_v49 = vor.u32 %v2254_v43, %v1976_v42  ;;  %v1853_v50 = vor.u32 %v2221_v44, %v1850_v45  ;;  %v1856_v52 = vld [vmem:[%s2586_s26 + $0x30] sm:$0xf]  ;;  %v2224_v53 = vld [vmem:[%s2586_s26 + $0x34] sm:$0xf0] }
  0x1a   : > { %953 = vmatpush.bf16.msra.mxu1 %v2293_v7  ;;  %2308 = vmatpush.bf16.msra.mxu3 %v2293_v7  ;;  %v1981_v51 = vor.u32 %v2253_v46, %v1978_v47  ;;  %v1984_v54 = vld [vmem:[%s2586_s26 + $0x130] sm:$0xf]  ;;  %v2256_v55 = vld [vmem:[%s2586_s26 + $0x134] sm:$0xf0]  ;;  %v2223_v56 = vld [vmem:[%s2586_s26 + $0x34] sm:$0xf]  ;;  %v1857_v60 = vor.u32 %v2224_v53, %v1856_v52 }
  0x1b   : > { %v1858_v57 = vld [vmem:[%s2586_s26 + $0x38] sm:$0xf0]  ;;  %v2255_v58 = vld [vmem:[%s2586_s26 + $0x134] sm:$0xf]  ;;  %v1985_v61 = vor.u32 %v2256_v55, %v1984_v54  ;;  %v1864_v0 = vld [vmem:[%s2586_s26 + $0x40] sm:$0xf] }
  0x1c   : > { %v1986_v59 = vld [vmem:[%s2586_s26 + $0x138] sm:$0xf0]  ;;  %v1861_v62 = vor.u32 %v2223_v56, %v1858_v57  ;;  %v2226_v1 = vld [vmem:[%s2586_s26 + $0x44] sm:$0xf0]  ;;  %v1992_v2 = vld [vmem:[%s2586_s26 + $0x140] sm:$0xf] }
  0x1d   : > { %785 = vmatpush.bf16.msra.mxu0 %v2284_v8  ;;  %2301 = vmatpush.bf16.msra.mxu2 %v2284_v8  ;;  %v1989_v63 = vor.u32 %v2255_v58, %v1986_v59  ;;  %v2258_v3 = vld [vmem:[%s2586_s26 + $0x144] sm:$0xf0]  ;;  %v2225_v4 = vld [vmem:[%s2586_s26 + $0x44] sm:$0xf]  ;;  %v1866_v5 = vld [vmem:[%s2586_s26 + $0x48] sm:$0xf0]  ;;  %v1865_v8 = vor.u32 %v2226_v1, %v1864_v0 }
  0x1e   : > { %954 = vmatpush.bf16.msra.mxu1 %v2292_v9  ;;  %2309 = vmatpush.bf16.msra.mxu3 %v2292_v9  ;;  %v2257_v6 = vld [vmem:[%s2586_s26 + $0x144] sm:$0xf]  ;;  %v1994_v7 = vld [vmem:[%s2586_s26 + $0x148] sm:$0xf0]  ;;  %v1993_v9 = vor.u32 %v2258_v3, %v1992_v2  ;;  %v2227_v16 = vld [vmem:[%s2586_s26 + $0x54] sm:$0xf] }
  0x1f   : > { %v1874_v17 = vld [vmem:[%s2586_s26 + $0x58] sm:$0xf0]  ;;  %v2259_v18 = vld [vmem:[%s2586_s26 + $0x154] sm:$0xf]  ;;  %v2229_v28 = vld [vmem:[%s2586_s26 + $0x64] sm:$0xf] }
  0x20   : > { %v2002_v19 = vld [vmem:[%s2586_s26 + $0x158] sm:$0xf0]  ;;  %v1877_v22 = vor.u32 %v2227_v16, %v1874_v17  ;;  %v1882_v29 = vld [vmem:[%s2586_s26 + $0x68] sm:$0xf0]  ;;  %v2261_v30 = vld [vmem:[%s2586_s26 + $0x164] sm:$0xf] }
  0x21   : > { %786 = vmatpush.bf16.msra.mxu0 %v2283_v10  ;;  %2302 = vmatpush.bf16.msra.mxu2 %v2283_v10  ;;  %v1869_v10 = vor.u32 %v2225_v4, %v1866_v5  ;;  %v2005_v23 = vor.u32 %v2259_v18, %v2002_v19  ;;  %v2010_v31 = vld [vmem:[%s2586_s26 + $0x168] sm:$0xf0]  ;;  %v1885_v34 = vor.u32 %v2229_v28, %v1882_v29  ;;  %v2231_v40 = vld [vmem:[%s2586_s26 + $0x74] sm:$0xf]  ;;  %v1890_v41 = vld [vmem:[%s2586_s26 + $0x78] sm:$0xf0] }
  0x22   : > { %955 = vmatpush.bf16.msra.mxu1 %v2291_v11  ;;  %2310 = vmatpush.bf16.msra.mxu3 %v2291_v11  ;;  %v1997_v11 = vor.u32 %v2257_v6, %v1994_v7  ;;  %v2013_v35 = vor.u32 %v2261_v30, %v2010_v31  ;;  %v2263_v42 = vld [vmem:[%s2586_s26 + $0x174] sm:$0xf]  ;;  %v2018_v43 = vld [vmem:[%s2586_s26 + $0x178] sm:$0xf0]  ;;  %v1893_v46 = vor.u32 %v2231_v40, %v1890_v41  ;;  %v2233_v52 = vld [vmem:[%s2586_s26 + $0x84] sm:$0xf] }
  0x23   : > { %v2021_v47 = vor.u32 %v2263_v42, %v2018_v43  ;;  %v1898_v53 = vld [vmem:[%s2586_s26 + $0x88] sm:$0xf0]  ;;  %v2265_v54 = vld [vmem:[%s2586_s26 + $0x184] sm:$0xf]  ;;  %v2672_v59 = vld [vmem:[%s3010_s2] ss:$0 sm:$0xff] }
  0x24   : > { %v2026_v55 = vld [vmem:[%s2586_s26 + $0x188] sm:$0xf0]  ;;  %v2677_v0 = vld [vmem:[%s3011_s3] ss:$0 sm:$0xff]  ;;  %v2268_v17 = vld [vmem:[%s2586_s26 + $0x194] sm:$0xf0] }
  0x25   : > { %787 = vmatpush.bf16.msra.mxu0 %v2282_v12  ;;  %2303 = vmatpush.bf16.msra.mxu2 %v2282_v12  ;;  %v1872_v12 = vld [vmem:[%s2586_s26 + $0x50] sm:$0xf]  ;;  %v2235_v18 = vld [vmem:[%s2586_s26 + $0x94] sm:$0xf]  ;;  %v1906_v19 = vld [vmem:[%s2586_s26 + $0x98] sm:$0xf0] }
  0x26   : > { %956 = vmatpush.bf16.msra.mxu1 %v2290_v13  ;;  %2311 = vmatpush.bf16.msra.mxu3 %v2290_v13  ;;  %v2228_v13 = vld [vmem:[%s2586_s26 + $0x54] sm:$0xf0]  ;;  %v1909_v28 = vor.u32 %v2235_v18, %v1906_v19 }
  0x27   : > { %v1873_v20 = vor.u32 %v2228_v13, %v1872_v12  ;;  %v1904_v12 = vld [vmem:[%s2586_s26 + $0x90] sm:$0xf]  ;;  %v2236_v13 = vld [vmem:[%s2586_s26 + $0x94] sm:$0xf0] }
  0x29   : > { %788 = vmatpush.bf16.msra.mxu0 %v2281_v14  ;;  %2304 = vmatpush.bf16.msra.mxu2 %v2281_v14  ;;  %v2000_v14 = vld [vmem:[%s2586_s26 + $0x150] sm:$0xf] }
  0x2a   : > { %957 = vmatpush.bf16.msra.mxu1 %v2289_v15  ;;  %2312 = vmatpush.bf16.msra.mxu3 %v2289_v15  ;;  %v2260_v15 = vld [vmem:[%s2586_s26 + $0x154] sm:$0xf0] }
  0x2b   : > { %v2001_v21 = vor.u32 %v2260_v15, %v2000_v14  ;;  %v2032_v14 = vld [vmem:[%s2586_s26 + $0x190] sm:$0xf] }
  0x2c   : > { %789 = vmatmul.bf16.vlgmr.msra.gmra.mxu0 %v1833_v24  ;;  %869 = vmatmul.bf16.vlgmr.msra.gmra.mxu2 %v1961_v25  ;;  %v1880_v24 = vld [vmem:[%s2586_s26 + $0x60] sm:$0xf]  ;;  %v2230_v25 = vld [vmem:[%s2586_s26 + $0x64] sm:$0xf0] }
  0x2d   : > { %958 = vmatmul.bf16.vlgmr.msra.gmra.mxu1 %v1837_v26  ;;  %1038 = vmatmul.bf16.vlgmr.msra.gmra.mxu3 %v1965_v27  ;;  %v2008_v26 = vld [vmem:[%s2586_s26 + $0x160] sm:$0xf]  ;;  %v2262_v27 = vld [vmem:[%s2586_s26 + $0x164] sm:$0xf0]  ;;  %v1881_v32 = vor.u32 %v2230_v25, %v1880_v24 }
  0x2e   : > { %v2009_v33 = vor.u32 %v2262_v27, %v2008_v26  ;;  %v1905_v26 = vor.u32 %v2236_v13, %v1904_v12  ;;  %v2033_v27 = vor.u32 %v2268_v17, %v2032_v14 }
  0x3c   : > { %794 = vmatmul.bf16.gmra.mxu0 %v1841_v36  ;;  %874 = vmatmul.bf16.gmra.mxu2 %v1969_v37  ;;  %v1888_v36 = vld [vmem:[%s2586_s26 + $0x70] sm:$0xf]  ;;  %v2232_v37 = vld [vmem:[%s2586_s26 + $0x74] sm:$0xf0] }
  0x3d   : > { %963 = vmatmul.bf16.gmra.mxu1 %v1845_v38  ;;  %1043 = vmatmul.bf16.gmra.mxu3 %v1973_v39  ;;  %v2016_v38 = vld [vmem:[%s2586_s26 + $0x170] sm:$0xf]  ;;  %v2264_v39 = vld [vmem:[%s2586_s26 + $0x174] sm:$0xf0]  ;;  %v1889_v44 = vor.u32 %v2232_v37, %v1888_v36 }
  0x3e   : > { %v2017_v45 = vor.u32 %v2264_v39, %v2016_v38 }
  0x4c   : > { %799 = vmatmul.bf16.gmra.mxu0 %v1849_v48  ;;  %879 = vmatmul.bf16.gmra.mxu2 %v1977_v49  ;;  %v1896_v48 = vld [vmem:[%s2586_s26 + $0x80] sm:$0xf]  ;;  %v2234_v49 = vld [vmem:[%s2586_s26 + $0x84] sm:$0xf0] }
  0x4d   : > { %968 = vmatmul.bf16.gmra.mxu1 %v1853_v50  ;;  %1048 = vmatmul.bf16.gmra.mxu3 %v1981_v51  ;;  %v2024_v50 = vld [vmem:[%s2586_s26 + $0x180] sm:$0xf]  ;;  %v2266_v51 = vld [vmem:[%s2586_s26 + $0x184] sm:$0xf0]  ;;  %v1897_v56 = vor.u32 %v2234_v49, %v1896_v48 }
  0x4e   : > { %v2025_v57 = vor.u32 %v2266_v51, %v2024_v50 }
  0x5c   : > { %804 = vmatmul.bf16.gmra.mxu0 %v1857_v60  ;;  %884 = vmatmul.bf16.gmra.mxu2 %v1985_v61  ;;  %v1901_v60 = vor.u32 %v2233_v52, %v1898_v53  ;;  %v2029_v61 = vor.u32 %v2265_v54, %v2026_v55 }
  0x5d   : > { %973 = vmatmul.bf16.gmra.mxu1 %v1861_v62  ;;  %1053 = vmatmul.bf16.gmra.mxu3 %v1989_v63 }
  0x6c   : > { %809 = vmatmul.bf16.gmra.mxu0 %v1865_v8  ;;  %889 = vmatmul.bf16.gmra.mxu2 %v1993_v9 }
  0x6d   : > { %978 = vmatmul.bf16.gmra.mxu1 %v1869_v10  ;;  %1058 = vmatmul.bf16.gmra.mxu3 %v1997_v11 }
  0x7c   : > { %814 = vmatmul.bf16.gmra.mxu0 %v1873_v20  ;;  %894 = vmatmul.bf16.gmra.mxu2 %v2001_v21  ;;  %v2267_v20 = vld [vmem:[%s2586_s26 + $0x194] sm:$0xf]  ;;  %v2034_v21 = vld [vmem:[%s2586_s26 + $0x198] sm:$0xf0] }
  0x7d   : > { %983 = vmatmul.bf16.gmra.mxu1 %v1877_v22  ;;  %1063 = vmatmul.bf16.gmra.mxu3 %v2005_v23 }
  0x8c   : > { %819 = vmatmul.bf16.gmra.mxu0 %v1881_v32  ;;  %899 = vmatmul.bf16.gmra.mxu2 %v2009_v33  ;;  %v2037_v33 = vor.u32 %v2267_v20, %v2034_v21 }
  0x8d   : > { %988 = vmatmul.bf16.gmra.mxu1 %v1885_v34  ;;  %1068 = vmatmul.bf16.gmra.mxu3 %v2013_v35 }
  0x9c   : > { %824 = vmatmul.bf16.gmra.mxu0 %v1889_v44  ;;  %904 = vmatmul.bf16.gmra.mxu2 %v2017_v45 }
  0x9d   : > { %993 = vmatmul.bf16.gmra.mxu1 %v1893_v46  ;;  %1073 = vmatmul.bf16.gmra.mxu3 %v2021_v47 }
  0xa9   : > { %v790_v58 = vpop.f32.mrf.mxu0 }
  0xaa   : > { %v959_v62 = vpop.f32.mrf.mxu1 }
  0xab   : > { %v960_v63 = vadd.f32 %v959_v62, %v790_v58  ;;  %v1912_v58 = vld [vmem:[%s2586_s26 + $0xa0] sm:$0xf] }
  0xac   : > { %829 = vmatmul.bf16.gmra.mxu0 %v1897_v56  ;;  %909 = vmatmul.bf16.gmra.mxu2 %v2025_v57 }
  0xad   : > { %v1123_v1 = vmul.f32 %v2672_v59, %v960_v63  ;;  %998 = vmatmul.bf16.gmra.mxu1 %v1901_v60  ;;  %1078 = vmatmul.bf16.gmra.mxu3 %v2029_v61  ;;  %v2238_v60 = vld [vmem:[%s2586_s26 + $0xa4] sm:$0xf0]  ;;  %v2040_v63 = vld [vmem:[%s2586_s26 + $0x1a0] sm:$0xf] }
  0xae   : > { %v1913_v13 = vor.u32 %v2238_v60, %v1912_v58  ;;  %v2271_v60 = vld [vmem:[%s2586_s26 + $0x1b4] sm:$0xf] }
  0xaf   : > { %v1191_v2 = vadd.f32 %v2677_v0, %v1123_v1  ;;  %v870_v3 = vpop.f32.mrf.mxu2  ;;  %v2270_v1 = vld [vmem:[%s2586_s26 + $0x1a4] sm:$0xf0] }
  0xb0   : > { %v1039_v4 = vpop.f32.mrf.mxu3  ;;  %v2041_v14 = vor.u32 %v2270_v1, %v2040_v63 }
  0xb1   : > { %v1319_v5 = vmin.f32 %v1191_v2, 0.0  ;;  %v1040_v6 = vadd.f32 %v1039_v4, %v870_v3  ;;  %v792_v7 = vpop.f32.mrf.mxu0  ;;  %vm1255_vm0 = vcmp.gt.f32.partialorder %v1191_v2, 0.0  ;;  %v2237_v4 = vld [vmem:[%s2586_s26 + $0xa4] sm:$0xf] }
  0xb2   : > { %v961_v8 = vpop.f32.mrf.mxu1 }
  0xb3   : > { %v1383_v9 = vmul.f32 1.442695, %v1319_v5  ;;  %v1155_v10 = vmul.f32 %v2672_v59, %v1040_v6  ;;  %v962_v11 = vadd.f32 %v961_v8, %v792_v7  ;;  %v1914_v5 = vld [vmem:[%s2586_s26 + $0xa8] sm:$0xf0]  ;;  %v2269_v7 = vld [vmem:[%s2586_s26 + $0x1a4] sm:$0xf] }
  0xb4   : > { %v2042_v8 = vld [vmem:[%s2586_s26 + $0x1a8] sm:$0xf0] }
  0xb5   : > { %2339 = vpow2.f32 %v1383_v9  ;;  %v1223_v15 = vadd.f32 %v2677_v0, %v1155_v10  ;;  %v1124_v16 = vmul.f32 %v2672_v59, %v962_v11  ;;  %v2045_v21 = vor.u32 %v2269_v7, %v2042_v8 }
  0xb7   : > { %v1351_v22 = vmin.f32 %v1223_v15, 0.0  ;;  %v1192_v23 = vadd.f32 %v2677_v0, %v1124_v16  ;;  %v872_v24 = vpop.f32.mrf.mxu2  ;;  %vm1287_vm1 = vcmp.gt.f32.partialorder %v1223_v15, 0.0 }
  0xb8   : > { %v1041_v25 = vpop.f32.mrf.mxu3 }
  0xb9   : > { %v1447_v29 = vmul.f32 1.442695, %v1351_v22  ;;  %v1320_v30 = vmin.f32 %v1192_v23, 0.0  ;;  %v1042_v31 = vadd.f32 %v1041_v25, %v872_v24  ;;  %v795_v32 = vpop.f32.mrf.mxu0  ;;  %vm1256_vm2 = vcmp.gt.f32.partialorder %v1192_v23, 0.0 }
  0xba   : > { %v964_v34 = vpop.f32.mrf.mxu1 }
  0xbb   : > { %v2340_v35 = vpop.eup %2339  ;;  %2341 = vpow2.f32 %v1447_v29  ;;  %v1385_v36 = vmul.f32 1.442695, %v1320_v30  ;;  %v1156_v37 = vmul.f32 %v2672_v59, %v1042_v31  ;;  %v965_v38 = vadd.f32 %v964_v34, %v795_v32 }
  0xbc   : > { %v2150_v39 = vadd.f32 -1.0, %v2340_v35  ;;  %834 = vmatmul.bf16.gmra.mxu0 %v1905_v26  ;;  %914 = vmatmul.bf16.gmra.mxu2 %v2033_v27 }
  0xbd   : > { %2343 = vpow2.f32 %v1385_v36  ;;  %v1224_v40 = vadd.f32 %v2677_v0, %v1156_v37  ;;  %v1125_v41 = vmul.f32 %v2672_v59, %v965_v38  ;;  %1003 = vmatmul.bf16.gmra.mxu1 %v1909_v28  ;;  %1083 = vmatmul.bf16.gmra.mxu3 %v2037_v33 }
  0xbe   : > { %v1575_v42 = vsel %vm1255_vm0, %v1191_v2, %v2150_v39 }
  0xbf   : > { %1639 = vst [vmem:[%s2699_s14] sm:$0xff] %v1575_v42  ;;  %v1352_v43 = vmin.f32 %v1224_v40, 0.0  ;;  %v2705_v44 = vadd.f32 %v2677_v0, %v1125_v41  ;;  %v875_v45 = vpop.f32.mrf.mxu2  ;;  %vm1288_vm3 = vcmp.gt.f32.partialorder %v1224_v40, 0.0 }
  0xc0   : > { %v1044_v46 = vpop.f32.mrf.mxu3 }
  0xc1   : > { %v2342_v47 = vpop.eup %2341  ;;  %v1449_v48 = vmul.f32 1.442695, %v1352_v43  ;;  %v1321_v49 = vmin.f32 %v2705_v44, 0.0  ;;  %v1045_v50 = vadd.f32 %v1044_v46, %v875_v45  ;;  %v797_v51 = vpop.f32.mrf.mxu0  ;;  %vm1257_vm4 = vcmp.gt.f32.partialorder %v2705_v44, 0.0 }
  0xc2   : > { %v2182_v52 = vadd.f32 -1.0, %v2342_v47  ;;  %v966_v53 = vpop.f32.mrf.mxu1 }
  0xc3   : > { %v2344_v54 = vpop.eup %2343  ;;  %2345 = vpow2.f32 %v1449_v48  ;;  %v1387_v55 = vmul.f32 1.442695, %v1321_v49  ;;  %v1157_v56 = vmul.f32 %v2672_v59, %v1045_v50  ;;  %v967_v57 = vadd.f32 %v966_v53, %v797_v51  ;;  %v1920_v48 = vld [vmem:[%s2586_s26 + $0xb0] sm:$0xf]  ;;  %v2240_v49 = vld [vmem:[%s2586_s26 + $0xb4] sm:$0xf0] }
  0xc4   : > { %v1607_v61 = vsel %vm1287_vm1, %v1223_v15, %v2182_v52  ;;  %v2151_v62 = vadd.f32 -1.0, %v2344_v54  ;;  %v1917_v15 = vor.u32 %v2237_v4, %v1914_v5  ;;  %v2048_v52 = vld [vmem:[%s2586_s26 + $0x1b0] sm:$0xf]  ;;  %v2272_v53 = vld [vmem:[%s2586_s26 + $0x1b4] sm:$0xf0] }
  0xc5   : > { %1671 = vst [vmem:[%s2699_s14 + $0x100] sm:$0xff] %v1607_v61  ;;  %2347 = vpow2.f32 %v1387_v55  ;;  %v1225_v2 = vadd.f32 %v2677_v0, %v1157_v56  ;;  %v1126_v3 = vmul.f32 %v2672_v59, %v967_v57  ;;  %v2239_v56 = vld [vmem:[%s2586_s26 + $0xb4] sm:$0xf]  ;;  %v1922_v57 = vld [vmem:[%s2586_s26 + $0xb8] sm:$0xf0]  ;;  %v2049_v4 = vor.u32 %v2272_v53, %v2048_v52 }
  0xc6   : > { %v1576_v6 = vsel %vm1256_vm2, %v1192_v23, %v2151_v62  ;;  %v2050_v61 = vld [vmem:[%s2586_s26 + $0x1b8] sm:$0xf0]  ;;  %v1925_v5 = vor.u32 %v2239_v56, %v1922_v57 }
  0xc7   : > { %1640 = vst [vmem:[%s2699_s14 + $0x8] sm:$0xff] %v1576_v6  ;;  %v1353_v9 = vmin.f32 %v1225_v2, 0.0  ;;  %v2722_v10 = vadd.f32 %v2677_v0, %v1126_v3  ;;  %v877_v11 = vpop.f32.mrf.mxu2  ;;  %vm1289_vm5 = vcmp.gt.f32.partialorder %v1225_v2, 0.0  ;;  %v1921_v3 = vor.u32 %v2240_v49, %v1920_v48  ;;  %v2273_v49 = vld [vmem:[%s2586_s26 + $0x1c4] sm:$0xf] }
  0xc8   : > { %v1046_v12 = vpop.f32.mrf.mxu3 }
  0xc9   : > { %v2346_v16 = vpop.eup %2345  ;;  %v1451_v17 = vmul.f32 1.442695, %v1353_v9  ;;  %v1322_v18 = vmin.f32 %v2722_v10, 0.0  ;;  %v1047_v19 = vadd.f32 %v1046_v12, %v877_v11  ;;  %v800_v20 = vpop.f32.mrf.mxu0  ;;  %vm1258_vm6 = vcmp.gt.f32.partialorder %v2722_v10, 0.0 }
  0xca   : > { %v2183_v22 = vadd.f32 -1.0, %v2346_v16  ;;  %v969_v23 = vpop.f32.mrf.mxu1 }
  0xcb   : > { %v2348_v24 = vpop.eup %2347  ;;  %2349 = vpow2.f32 %v1451_v17  ;;  %v1389_v25 = vmul.f32 1.442695, %v1322_v18  ;;  %v1158_v26 = vmul.f32 %v2672_v59, %v1047_v19  ;;  %v970_v27 = vadd.f32 %v969_v23, %v800_v20 }
  0xcc   : > { %v1608_v28 = vsel %vm1288_vm3, %v1224_v40, %v2183_v22  ;;  %v2152_v29 = vadd.f32 -1.0, %v2348_v24  ;;  %839 = vmatmul.bf16.gmra.mxu0 %v1913_v13  ;;  %919 = vmatmul.bf16.gmra.mxu2 %v2041_v14 }
  0xcd   : > { %1672 = vst [vmem:[%s2699_s14 + $0x108] sm:$0xff] %v1608_v28  ;;  %2351 = vpow2.f32 %v1389_v25  ;;  %v1226_v30 = vadd.f32 %v2677_v0, %v1158_v26  ;;  %v1127_v31 = vmul.f32 %v2672_v59, %v970_v27  ;;  %1008 = vmatmul.bf16.gmra.mxu1 %v1917_v15  ;;  %1088 = vmatmul.bf16.gmra.mxu3 %v2045_v21 }
  0xce   : > { %v1577_v32 = vsel %vm1257_vm4, %v2705_v44, %v2152_v29 }
  0xcf   : > { %1641 = vst [vmem:[%s2699_s14 + $0x10] sm:$0xff] %v1577_v32  ;;  %v1354_v33 = vmin.f32 %v1226_v30, 0.0  ;;  %v2733_v34 = vadd.f32 %v2677_v0, %v1127_v31  ;;  %v880_v35 = vpop.f32.mrf.mxu2  ;;  %vm1290_vm7 = vcmp.gt.f32.partialorder %v1226_v30, 0.0 }
  0xd0   : > { %v1049_v36 = vpop.f32.mrf.mxu3 }
  0xd1   : > { %v2350_v37 = vpop.eup %2349  ;;  %v1453_v38 = vmul.f32 1.442695, %v1354_v33  ;;  %v1323_v39 = vmin.f32 %v2733_v34, 0.0  ;;  %v1050_v40 = vadd.f32 %v1049_v36, %v880_v35  ;;  %v802_v41 = vpop.f32.mrf.mxu0  ;;  %vm1259_vm8 = vcmp.gt.f32.partialorder %v2733_v34, 0.0 }
  0xd2   : > { %v2184_v42 = vadd.f32 -1.0, %v2350_v37  ;;  %v971_v43 = vpop.f32.mrf.mxu1 }
  0xd3   : > { %v2352_v44 = vpop.eup %2351  ;;  %2353 = vpow2.f32 %v1453_v38  ;;  %v1391_v45 = vmul.f32 1.442695, %v1323_v39  ;;  %v1159_v46 = vmul.f32 %v2672_v59, %v1050_v40  ;;  %v972_v47 = vadd.f32 %v971_v43, %v802_v41  ;;  %v1928_v38 = vld [vmem:[%s2586_s26 + $0xc0] sm:$0xf]  ;;  %v2242_v39 = vld [vmem:[%s2586_s26 + $0xc4] sm:$0xf0] }
  0xd4   : > { %v1609_v50 = vsel %vm1289_vm5, %v1225_v2, %v2184_v42  ;;  %v2153_v51 = vadd.f32 -1.0, %v2352_v44  ;;  %v2056_v42 = vld [vmem:[%s2586_s26 + $0x1c0] sm:$0xf]  ;;  %v2274_v43 = vld [vmem:[%s2586_s26 + $0x1c4] sm:$0xf0] }
  0xd5   : > { %1673 = vst [vmem:[%s2699_s14 + $0x110] sm:$0xff] %v1609_v50  ;;  %2355 = vpow2.f32 %v1391_v45  ;;  %v1227_v54 = vadd.f32 %v2677_v0, %v1159_v46  ;;  %v1128_v55 = vmul.f32 %v2672_v59, %v972_v47  ;;  %v2241_v46 = vld [vmem:[%s2586_s26 + $0xc4] sm:$0xf]  ;;  %v1930_v47 = vld [vmem:[%s2586_s26 + $0xc8] sm:$0xf0]  ;;  %v2057_v56 = vor.u32 %v2274_v43, %v2056_v42 }
  0xd6   : > { %v1578_v58 = vsel %vm1258_vm6, %v2722_v10, %v2153_v51  ;;  %v2053_v10 = vor.u32 %v2271_v60, %v2050_v61  ;;  %v2058_v50 = vld [vmem:[%s2586_s26 + $0x1c8] sm:$0xf0]  ;;  %v1933_v57 = vor.u32 %v2241_v46, %v1930_v47 }
  0xd7   : > { %1642 = vst [vmem:[%s2699_s14 + $0x18] sm:$0xff] %v1578_v58  ;;  %v1355_v62 = vmin.f32 %v1227_v54, 0.0  ;;  %v2752_v63 = vadd.f32 %v2677_v0, %v1128_v55  ;;  %v882_v1 = vpop.f32.mrf.mxu2  ;;  %vm1291_vm9 = vcmp.gt.f32.partialorder %v1227_v54, 0.0  ;;  %v1929_v55 = vor.u32 %v2242_v39, %v1928_v38  ;;  %v2275_v39 = vld [vmem:[%s2586_s26 + $0x1d4] sm:$0xf] }
  0xd8   : > { %v1051_v2 = vpop.f32.mrf.mxu3 }
  0xd9   : > { %v2354_v6 = vpop.eup %2353  ;;  %v1455_v7 = vmul.f32 1.442695, %v1355_v62  ;;  %v1324_v8 = vmin.f32 %v2752_v63, 0.0  ;;  %v1052_v9 = vadd.f32 %v1051_v2, %v882_v1  ;;  %v805_v11 = vpop.f32.mrf.mxu0  ;;  %vm1260_vm10 = vcmp.gt.f32.partialorder %v2752_v63, 0.0 }
  0xda   : > { %v2185_v12 = vadd.f32 -1.0, %v2354_v6  ;;  %v974_v13 = vpop.f32.mrf.mxu1 }
  0xdb   : > { %v2356_v14 = vpop.eup %2355  ;;  %2357 = vpow2.f32 %v1455_v7  ;;  %v1393_v15 = vmul.f32 1.442695, %v1324_v8  ;;  %v1160_v16 = vmul.f32 %v2672_v59, %v1052_v9  ;;  %v975_v17 = vadd.f32 %v974_v13, %v805_v11 }
  0xdc   : > { %v1610_v18 = vsel %vm1290_vm7, %v1226_v30, %v2185_v12  ;;  %v2154_v19 = vadd.f32 -1.0, %v2356_v14  ;;  %844 = vmatmul.bf16.gmra.mxu0 %v1921_v3  ;;  %924 = vmatmul.bf16.gmra.mxu2 %v2049_v4 }
  0xdd   : > { %1674 = vst [vmem:[%s2699_s14 + $0x118] sm:$0xff] %v1610_v18  ;;  %2359 = vpow2.f32 %v1393_v15  ;;  %v1228_v20 = vadd.f32 %v2677_v0, %v1160_v16  ;;  %v1129_v21 = vmul.f32 %v2672_v59, %v975_v17  ;;  %1013 = vmatmul.bf16.gmra.mxu1 %v1925_v5  ;;  %1093 = vmatmul.bf16.gmra.mxu3 %v2053_v10 }
  0xde   : > { %v1579_v22 = vsel %vm1259_vm8, %v2733_v34, %v2154_v19 }
  0xdf   : > { %1643 = vst [vmem:[%s2699_s14 + $0x20] sm:$0xff] %v1579_v22  ;;  %v1356_v23 = vmin.f32 %v1228_v20, 0.0  ;;  %v2763_v24 = vadd.f32 %v2677_v0, %v1129_v21  ;;  %v885_v25 = vpop.f32.mrf.mxu2  ;;  %vm1292_vm11 = vcmp.gt.f32.partialorder %v1228_v20, 0.0 }
  0xe0   : > { %v1054_v26 = vpop.f32.mrf.mxu3 }
  0xe1   : > { %v2358_v27 = vpop.eup %2357  ;;  %v1457_v28 = vmul.f32 1.442695, %v1356_v23  ;;  %v1325_v29 = vmin.f32 %v2763_v24, 0.0  ;;  %v1055_v30 = vadd.f32 %v1054_v26, %v885_v25  ;;  %v807_v31 = vpop.f32.mrf.mxu0  ;;  %vm1261_vm12 = vcmp.gt.f32.partialorder %v2763_v24, 0.0 }
  0xe2   : > { %v2186_v32 = vadd.f32 -1.0, %v2358_v27  ;;  %v976_v33 = vpop.f32.mrf.mxu1 }
  0xe3   : > { %v2360_v34 = vpop.eup %2359  ;;  %2361 = vpow2.f32 %v1457_v28  ;;  %v1395_v35 = vmul.f32 1.442695, %v1325_v29  ;;  %v1161_v36 = vmul.f32 %v2672_v59, %v1055_v30  ;;  %v977_v37 = vadd.f32 %v976_v33, %v807_v31  ;;  %v1936_v28 = vld [vmem:[%s2586_s26 + $0xd0] sm:$0xf]  ;;  %v2244_v29 = vld [vmem:[%s2586_s26 + $0xd4] sm:$0xf0] }
  0xe4   : > { %v1611_v40 = vsel %vm1291_vm9, %v1227_v54, %v2186_v32  ;;  %v2155_v41 = vadd.f32 -1.0, %v2360_v34  ;;  %v2064_v32 = vld [vmem:[%s2586_s26 + $0x1d0] sm:$0xf]  ;;  %v2276_v33 = vld [vmem:[%s2586_s26 + $0x1d4] sm:$0xf0] }
  0xe5   : > { %1675 = vst [vmem:[%s2699_s14 + $0x120] sm:$0xff] %v1611_v40  ;;  %2363 = vpow2.f32 %v1395_v35  ;;  %v1229_v44 = vadd.f32 %v2677_v0, %v1161_v36  ;;  %v1130_v45 = vmul.f32 %v2672_v59, %v977_v37  ;;  %v2243_v36 = vld [vmem:[%s2586_s26 + $0xd4] sm:$0xf]  ;;  %v1938_v37 = vld [vmem:[%s2586_s26 + $0xd8] sm:$0xf0]  ;;  %v2065_v46 = vor.u32 %v2276_v33, %v2064_v32 }
  0xe6   : > { %v1580_v48 = vsel %vm1260_vm10, %v2752_v63, %v2155_v41  ;;  %v2061_v63 = vor.u32 %v2273_v49, %v2058_v50  ;;  %v2066_v40 = vld [vmem:[%s2586_s26 + $0x1d8] sm:$0xf0]  ;;  %v1941_v47 = vor.u32 %v2243_v36, %v1938_v37 }
  0xe7   : > { %1644 = vst [vmem:[%s2699_s14 + $0x28] sm:$0xff] %v1580_v48  ;;  %v1357_v51 = vmin.f32 %v1229_v44, 0.0  ;;  %v2782_v52 = vadd.f32 %v2677_v0, %v1130_v45  ;;  %v887_v53 = vpop.f32.mrf.mxu2  ;;  %vm1293_vm13 = vcmp.gt.f32.partialorder %v1229_v44, 0.0  ;;  %v1937_v45 = vor.u32 %v2244_v29, %v1936_v28  ;;  %v2277_v29 = vld [vmem:[%s2586_s26 + $0x1e4] sm:$0xf] }
  0xe8   : > { %v1056_v54 = vpop.f32.mrf.mxu3 }
  0xe9   : > { %v2362_v58 = vpop.eup %2361  ;;  %v1459_v60 = vmul.f32 1.442695, %v1357_v51  ;;  %v1326_v61 = vmin.f32 %v2782_v52, 0.0  ;;  %v1057_v62 = vadd.f32 %v1056_v54, %v887_v53  ;;  %v810_v1 = vpop.f32.mrf.mxu0  ;;  %vm1262_vm14 = vcmp.gt.f32.partialorder %v2782_v52, 0.0 }
  0xea   : > { %v2187_v2 = vadd.f32 -1.0, %v2362_v58  ;;  %v979_v3 = vpop.f32.mrf.mxu1 }
  0xeb   : > { %v2364_v4 = vpop.eup %2363  ;;  %2365 = vpow2.f32 %v1459_v60  ;;  %v1397_v5 = vmul.f32 1.442695, %v1326_v61  ;;  %v1162_v6 = vmul.f32 %v2672_v59, %v1057_v62  ;;  %v980_v7 = vadd.f32 %v979_v3, %v810_v1 }
  0xec   : > { %v1612_v8 = vsel %vm1292_vm11, %v1228_v20, %v2187_v2  ;;  %v2156_v9 = vadd.f32 -1.0, %v2364_v4  ;;  %849 = vmatmul.bf16.gmra.mxu0 %v1929_v55  ;;  %929 = vmatmul.bf16.gmra.mxu2 %v2057_v56 }
  0xed   : > { %1676 = vst [vmem:[%s2699_s14 + $0x128] sm:$0xff] %v1612_v8  ;;  %2367 = vpow2.f32 %v1397_v5  ;;  %v1230_v11 = vadd.f32 %v2677_v0, %v1162_v6  ;;  %v1131_v10 = vmul.f32 %v2672_v59, %v980_v7  ;;  %1018 = vmatmul.bf16.gmra.mxu1 %v1933_v57  ;;  %1098 = vmatmul.bf16.gmra.mxu3 %v2061_v63 }
  0xee   : > { %v1581_v12 = vsel %vm1261_vm12, %v2763_v24, %v2156_v9 }
  0xef   : > { %1645 = vst [vmem:[%s2699_s14 + $0x30] sm:$0xff] %v1581_v12  ;;  %v1358_v13 = vmin.f32 %v1230_v11, 0.0  ;;  %v2793_v14 = vadd.f32 %v2677_v0, %v1131_v10  ;;  %v890_v15 = vpop.f32.mrf.mxu2  ;;  %vm1294_vm15 = vcmp.gt.f32.partialorder %v1230_v11, 0.0 }
  0xf0   : > { %v1059_v16 = vpop.f32.mrf.mxu3 }
  0xf1   : > { %v2366_v17 = vpop.eup %2365  ;;  %v1461_v18 = vmul.f32 1.442695, %v1358_v13  ;;  %v1327_v19 = vmin.f32 %v2793_v14, 0.0  ;;  %v1060_v20 = vadd.f32 %v1059_v16, %v890_v15  ;;  %v812_v21 = vpop.f32.mrf.mxu0  ;;  %vm1263_vm0 = vcmp.gt.f32.partialorder %v2793_v14, 0.0 }
  0xf2   : > { %v2188_v22 = vadd.f32 -1.0, %v2366_v17  ;;  %v981_v23 = vpop.f32.mrf.mxu1 }
  0xf3   : > { %v2368_v24 = vpop.eup %2367  ;;  %2369 = vpow2.f32 %v1461_v18  ;;  %v1399_v25 = vmul.f32 1.442695, %v1327_v19  ;;  %v1163_v26 = vmul.f32 %v2672_v59, %v1060_v20  ;;  %v982_v27 = vadd.f32 %v981_v23, %v812_v21  ;;  %v1944_v18 = vld [vmem:[%s2586_s26 + $0xe0] sm:$0xf]  ;;  %v2246_v19 = vld [vmem:[%s2586_s26 + $0xe4] sm:$0xf0] }
  0xf4   : > { %v1613_v30 = vsel %vm1293_vm13, %v1229_v44, %v2188_v22  ;;  %v2157_v31 = vadd.f32 -1.0, %v2368_v24  ;;  %v2072_v22 = vld [vmem:[%s2586_s26 + $0x1e0] sm:$0xf]  ;;  %v2278_v23 = vld [vmem:[%s2586_s26 + $0x1e4] sm:$0xf0] }
  0xf5   : > { %1677 = vst [vmem:[%s2699_s14 + $0x130] sm:$0xff] %v1613_v30  ;;  %2371 = vpow2.f32 %v1399_v25  ;;  %v1231_v34 = vadd.f32 %v2677_v0, %v1163_v26  ;;  %v1132_v35 = vmul.f32 %v2672_v59, %v982_v27  ;;  %v2245_v26 = vld [vmem:[%s2586_s26 + $0xe4] sm:$0xf]  ;;  %v1946_v27 = vld [vmem:[%s2586_s26 + $0xe8] sm:$0xf0]  ;;  %v2073_v36 = vor.u32 %v2278_v23, %v2072_v22 }
  0xf6   : > { %v1582_v38 = vsel %vm1262_vm14, %v2782_v52, %v2157_v31  ;;  %v2069_v52 = vor.u32 %v2275_v39, %v2066_v40  ;;  %v2074_v30 = vld [vmem:[%s2586_s26 + $0x1e8] sm:$0xf0]  ;;  %v1949_v37 = vor.u32 %v2245_v26, %v1946_v27 }
  0xf7   : > { %1646 = vst [vmem:[%s2699_s14 + $0x38] sm:$0xff] %v1582_v38  ;;  %v1359_v41 = vmin.f32 %v1231_v34, 0.0  ;;  %v2812_v42 = vadd.f32 %v2677_v0, %v1132_v35  ;;  %v892_v43 = vpop.f32.mrf.mxu2  ;;  %vm1295_vm1 = vcmp.gt.f32.partialorder %v1231_v34, 0.0  ;;  %v1945_v35 = vor.u32 %v2246_v19, %v1944_v18  ;;  %v2279_v19 = vld [vmem:[%s2586_s26 + $0x1f4] sm:$0xf] }
  0xf8   : > { %v1061_v44 = vpop.f32.mrf.mxu3 }
  0xf9   : > { %v2370_v48 = vpop.eup %2369  ;;  %v1463_v49 = vmul.f32 1.442695, %v1359_v41  ;;  %v1328_v50 = vmin.f32 %v2812_v42, 0.0  ;;  %v1062_v51 = vadd.f32 %v1061_v44, %v892_v43  ;;  %v815_v53 = vpop.f32.mrf.mxu0  ;;  %vm1264_vm2 = vcmp.gt.f32.partialorder %v2812_v42, 0.0 }
  0xfa   : > { %v2189_v54 = vadd.f32 -1.0, %v2370_v48  ;;  %v984_v55 = vpop.f32.mrf.mxu1 }
  0xfb   : > { %v2372_v56 = vpop.eup %2371  ;;  %2373 = vpow2.f32 %v1463_v49  ;;  %v1401_v57 = vmul.f32 1.442695, %v1328_v50  ;;  %v1164_v58 = vmul.f32 %v2672_v59, %v1062_v51  ;;  %v985_v60 = vadd.f32 %v984_v55, %v815_v53 }
  0xfc   : > { %v1614_v61 = vsel %vm1294_vm15, %v1230_v11, %v2189_v54  ;;  %v2158_v62 = vadd.f32 -1.0, %v2372_v56  ;;  %854 = vmatmul.bf16.gmra.mxu0 %v1937_v45  ;;  %934 = vmatmul.bf16.gmra.mxu2 %v2065_v46 }
  0xfd   : > { %1678 = vst [vmem:[%s2699_s14 + $0x138] sm:$0xff] %v1614_v61  ;;  %2375 = vpow2.f32 %v1401_v57  ;;  %v1232_v1 = vadd.f32 %v2677_v0, %v1164_v58  ;;  %v1133_v63 = vmul.f32 %v2672_v59, %v985_v60  ;;  %1023 = vmatmul.bf16.gmra.mxu1 %v1941_v47  ;;  %1103 = vmatmul.bf16.gmra.mxu3 %v2069_v52 }
  0xfe   : > { %v1583_v2 = vsel %vm1263_vm0, %v2793_v14, %v2158_v62 }
  0xff   : > { %1647 = vst [vmem:[%s2699_s14 + $0x40] sm:$0xff] %v1583_v2  ;;  %v1360_v3 = vmin.f32 %v1232_v1, 0.0  ;;  %v2823_v4 = vadd.f32 %v2677_v0, %v1133_v63  ;;  %v895_v5 = vpop.f32.mrf.mxu2  ;;  %vm1296_vm3 = vcmp.gt.f32.partialorder %v1232_v1, 0.0 }
 0x100   : > { %v1064_v6 = vpop.f32.mrf.mxu3 }
 0x101   : > { %v2374_v7 = vpop.eup %2373  ;;  %v1465_v8 = vmul.f32 1.442695, %v1360_v3  ;;  %v1329_v9 = vmin.f32 %v2823_v4, 0.0  ;;  %v1065_v11 = vadd.f32 %v1064_v6, %v895_v5  ;;  %v817_v10 = vpop.f32.mrf.mxu0  ;;  %vm1265_vm4 = vcmp.gt.f32.partialorder %v2823_v4, 0.0 }
 0x102   : > { %v2190_v12 = vadd.f32 -1.0, %v2374_v7  ;;  %v986_v13 = vpop.f32.mrf.mxu1 }
 0x103   : > { %v2376_v14 = vpop.eup %2375  ;;  %2377 = vpow2.f32 %v1465_v8  ;;  %v1403_v15 = vmul.f32 1.442695, %v1329_v9  ;;  %v1165_v16 = vmul.f32 %v2672_v59, %v1065_v11  ;;  %v987_v17 = vadd.f32 %v986_v13, %v817_v10  ;;  %v1952_v8 = vld [vmem:[%s2586_s26 + $0xf0] sm:$0xf]  ;;  %v2248_v9 = vld [vmem:[%s2586_s26 + $0xf4] sm:$0xf0] }
 0x104   : > { %v1615_v20 = vsel %vm1295_vm1, %v1231_v34, %v2190_v12  ;;  %v2159_v21 = vadd.f32 -1.0, %v2376_v14  ;;  %v2080_v12 = vld [vmem:[%s2586_s26 + $0x1f0] sm:$0xf]  ;;  %v2280_v13 = vld [vmem:[%s2586_s26 + $0x1f4] sm:$0xf0] }
 0x105   : > { %1679 = vst [vmem:[%s2699_s14 + $0x140] sm:$0xff] %v1615_v20  ;;  %2379 = vpow2.f32 %v1403_v15  ;;  %v1233_v24 = vadd.f32 %v2677_v0, %v1165_v16  ;;  %v1134_v25 = vmul.f32 %v2672_v59, %v987_v17  ;;  %v2247_v16 = vld [vmem:[%s2586_s26 + $0xf4] sm:$0xf]  ;;  %v1954_v17 = vld [vmem:[%s2586_s26 + $0xf8] sm:$0xf0]  ;;  %v2081_v26 = vor.u32 %v2280_v13, %v2080_v12 }
 0x106   : > { %v1584_v28 = vsel %vm1264_vm2, %v2812_v42, %v2159_v21  ;;  %v2077_v42 = vor.u32 %v2277_v29, %v2074_v30  ;;  %v2082_v20 = vld [vmem:[%s2586_s26 + $0x1f8] sm:$0xf0]  ;;  %v1957_v27 = vor.u32 %v2247_v16, %v1954_v17 }
 0x107   : > { %1648 = vst [vmem:[%s2699_s14 + $0x48] sm:$0xff] %v1584_v28  ;;  %v1361_v31 = vmin.f32 %v1233_v24, 0.0  ;;  %v2842_v32 = vadd.f32 %v2677_v0, %v1134_v25  ;;  %v897_v33 = vpop.f32.mrf.mxu2  ;;  %vm1297_vm5 = vcmp.gt.f32.partialorder %v1233_v24, 0.0  ;;  %v1953_v25 = vor.u32 %v2248_v9, %v1952_v8 }
 0x108   : > { %v1066_v34 = vpop.f32.mrf.mxu3 }
 0x109   : > { %v2378_v38 = vpop.eup %2377  ;;  %v1467_v39 = vmul.f32 1.442695, %v1361_v31  ;;  %v1330_v40 = vmin.f32 %v2842_v32, 0.0  ;;  %v1067_v41 = vadd.f32 %v1066_v34, %v897_v33  ;;  %v820_v43 = vpop.f32.mrf.mxu0  ;;  %vm1266_vm6 = vcmp.gt.f32.partialorder %v2842_v32, 0.0 }
 0x10a   : > { %v2191_v44 = vadd.f32 -1.0, %v2378_v38  ;;  %v989_v45 = vpop.f32.mrf.mxu1  ;;  %v2085_v34 = vor.u32 %v2279_v19, %v2082_v20  ;;  %v2891_v19 = vld [vmem:[%s3011_s3] ss:$0 sm:$0xff] }
 0x10b   : > { %v2380_v46 = vpop.eup %2379  ;;  %2381 = vpow2.f32 %v1467_v39  ;;  %v1405_v47 = vmul.f32 1.442695, %v1330_v40  ;;  %v1166_v48 = vmul.f32 %v2672_v59, %v1067_v41  ;;  %v990_v49 = vadd.f32 %v989_v45, %v820_v43 }
 0x10c   : > { %v1616_v50 = vsel %vm1296_vm3, %v1232_v1, %v2191_v44  ;;  %v2160_v51 = vadd.f32 -1.0, %v2380_v46  ;;  %859 = vmatmul.bf16.gmra.mxu0 %v1945_v35  ;;  %939 = vmatmul.bf16.gmra.mxu2 %v2073_v36 }
 0x10d   : > { %1680 = vst [vmem:[%s2699_s14 + $0x148] sm:$0xff] %v1616_v50  ;;  %2383 = vpow2.f32 %v1405_v47  ;;  %v1234_v53 = vadd.f32 %v2677_v0, %v1166_v48  ;;  %v1135_v52 = vmul.f32 %v2672_v59, %v990_v49  ;;  %1028 = vmatmul.bf16.gmra.mxu1 %v1949_v37  ;;  %1108 = vmatmul.bf16.gmra.mxu3 %v2077_v42 }
 0x10e   : > { %v1585_v54 = vsel %vm1265_vm4, %v2823_v4, %v2160_v51 }
 0x10f   : > { %1649 = vst [vmem:[%s2699_s14 + $0x50] sm:$0xff] %v1585_v54  ;;  %v1362_v55 = vmin.f32 %v1234_v53, 0.0  ;;  %v2853_v56 = vadd.f32 %v2677_v0, %v1135_v52  ;;  %v900_v57 = vpop.f32.mrf.mxu2  ;;  %vm1298_vm7 = vcmp.gt.f32.partialorder %v1234_v53, 0.0 }
 0x110   : > { %v1069_v58 = vpop.f32.mrf.mxu3 }
 0x111   : > { %v2382_v60 = vpop.eup %2381  ;;  %v1469_v61 = vmul.f32 1.442695, %v1362_v55  ;;  %v1331_v62 = vmin.f32 %v2853_v56, 0.0  ;;  %v1070_v1 = vadd.f32 %v1069_v58, %v900_v57  ;;  %v822_v63 = vpop.f32.mrf.mxu0  ;;  %vm1267_vm8 = vcmp.gt.f32.partialorder %v2853_v56, 0.0 }
 0x112   : > { %v2192_v2 = vadd.f32 -1.0, %v2382_v60  ;;  %v991_v3 = vpop.f32.mrf.mxu1 }
 0x113   : > { %v2384_v4 = vpop.eup %2383  ;;  %2385 = vpow2.f32 %v1469_v61  ;;  %v1407_v5 = vmul.f32 1.442695, %v1331_v62  ;;  %v1167_v6 = vmul.f32 %v2672_v59, %v1070_v1  ;;  %v992_v7 = vadd.f32 %v991_v3, %v822_v63 }
 0x114   : > { %v1617_v11 = vsel %vm1297_vm5, %v1233_v24, %v2192_v2  ;;  %v2161_v10 = vadd.f32 -1.0, %v2384_v4 }
 0x115   : > { %1681 = vst [vmem:[%s2699_s14 + $0x150] sm:$0xff] %v1617_v11  ;;  %2387 = vpow2.f32 %v1407_v5  ;;  %v1235_v14 = vadd.f32 %v2677_v0, %v1167_v6  ;;  %v1136_v15 = vmul.f32 %v2672_v59, %v992_v7 }
 0x116   : > { %v1586_v18 = vsel %vm1266_vm6, %v2842_v32, %v2161_v10 }
 0x117   : > { %1650 = vst [vmem:[%s2699_s14 + $0x58] sm:$0xff] %v1586_v18  ;;  %v1363_v21 = vmin.f32 %v1235_v14, 0.0  ;;  %v1204_v22 = vadd.f32 %v2677_v0, %v1136_v15  ;;  %v902_v23 = vpop.f32.mrf.mxu2  ;;  %vm1299_vm9 = vcmp.gt.f32.partialorder %v1235_v14, 0.0 }
 0x118   : > { %v1071_v24 = vpop.f32.mrf.mxu3 }
 0x119   : > { %v2386_v28 = vpop.eup %2385  ;;  %v1471_v29 = vmul.f32 1.442695, %v1363_v21  ;;  %v1332_v30 = vmin.f32 %v1204_v22, 0.0  ;;  %v1072_v31 = vadd.f32 %v1071_v24, %v902_v23  ;;  %v825_v33 = vpop.f32.mrf.mxu0  ;;  %vm1268_vm10 = vcmp.gt.f32.partialorder %v1204_v22, 0.0  ;;  %v2897_v21 = vld [vmem:[%s3010_s2] ss:$0 sm:$0xff] }
 0x11a   : > { %v2193_v32 = vadd.f32 -1.0, %v2386_v28  ;;  %v994_v35 = vpop.f32.mrf.mxu1 }
 0x11b   : > { %v2388_v36 = vpop.eup %2387  ;;  %2389 = vpow2.f32 %v1471_v29  ;;  %v1409_v37 = vmul.f32 1.442695, %v1332_v30  ;;  %v1168_v38 = vmul.f32 %v2672_v59, %v1072_v31  ;;  %v995_v39 = vadd.f32 %v994_v35, %v825_v33 }
 0x11c   : > { %v1618_v40 = vsel %vm1298_vm7, %v1234_v53, %v2193_v32  ;;  %v2162_v41 = vadd.f32 -1.0, %v2388_v36  ;;  %864 = vmatmul.bf16.gmra.mxu0 %v1953_v25  ;;  %944 = vmatmul.bf16.gmra.mxu2 %v2081_v26 }
 0x11d   : > { %1682 = vst [vmem:[%s2699_s14 + $0x158] sm:$0xff] %v1618_v40  ;;  %2391 = vpow2.f32 %v1409_v37  ;;  %v1236_v43 = vadd.f32 %v2677_v0, %v1168_v38  ;;  %v1137_v42 = vmul.f32 %v2672_v59, %v995_v39  ;;  %1033 = vmatmul.bf16.gmra.mxu1 %v1957_v27  ;;  %1113 = vmatmul.bf16.gmra.mxu3 %v2085_v34 }
 0x11e   : > { %v1587_v44 = vsel %vm1267_vm8, %v2853_v56, %v2162_v41 }
 0x11f   : > { %1651 = vst [vmem:[%s2699_s14 + $0x60] sm:$0xff] %v1587_v44  ;;  %v1364_v45 = vmin.f32 %v1236_v43, 0.0  ;;  %v1205_v46 = vadd.f32 %v2677_v0, %v1137_v42  ;;  %v905_v47 = vpop.f32.mrf.mxu2  ;;  %vm1300_vm11 = vcmp.gt.f32.partialorder %v1236_v43, 0.0 }
 0x120   : > { %v1074_v48 = vpop.f32.mrf.mxu3 }
 0x121   : > { %v2390_v49 = vpop.eup %2389  ;;  %v1473_v50 = vmul.f32 1.442695, %v1364_v45  ;;  %v1333_v51 = vmin.f32 %v1205_v46, 0.0  ;;  %v1075_v53 = vadd.f32 %v1074_v48, %v905_v47  ;;  %v827_v52 = vpop.f32.mrf.mxu0  ;;  %vm1269_vm12 = vcmp.gt.f32.partialorder %v1205_v46, 0.0 }
 0x122   : > { %v2194_v54 = vadd.f32 -1.0, %v2390_v49  ;;  %v996_v55 = vpop.f32.mrf.mxu1 }
 0x123   : > { %v2392_v57 = vpop.eup %2391  ;;  %2393 = vpow2.f32 %v1473_v50  ;;  %v1411_v58 = vmul.f32 1.442695, %v1333_v51  ;;  %v1169_v56 = vmul.f32 %v2672_v59, %v1075_v53  ;;  %v997_v60 = vadd.f32 %v996_v55, %v827_v52 }
 0x124   : > { %v1619_v61 = vsel %vm1299_vm9, %v1235_v14, %v2194_v54  ;;  %v2163_v62 = vadd.f32 -1.0, %v2392_v57 }
 0x125   : > { %1683 = vst [vmem:[%s2699_s14 + $0x160] sm:$0xff] %v1619_v61  ;;  %2395 = vpow2.f32 %v1411_v58  ;;  %v1237_v1 = vadd.f32 %v2677_v0, %v1169_v56  ;;  %v1138_v63 = vmul.f32 %v2672_v59, %v997_v60 }
 0x126   : > { %v1588_v2 = vsel %vm1268_vm10, %v1204_v22, %v2163_v62 }
 0x127   : > { %1652 = vst [vmem:[%s2699_s14 + $0x68] sm:$0xff] %v1588_v2  ;;  %v1365_v3 = vmin.f32 %v1237_v1, 0.0  ;;  %v1206_v4 = vadd.f32 %v2677_v0, %v1138_v63  ;;  %v907_v5 = vpop.f32.mrf.mxu2  ;;  %vm1301_vm13 = vcmp.gt.f32.partialorder %v1237_v1, 0.0 }
 0x128   : > { %v1076_v6 = vpop.f32.mrf.mxu3 }
 0x129   : > { %v2394_v7 = vpop.eup %2393  ;;  %v1475_v8 = vmul.f32 1.442695, %v1365_v3  ;;  %v1334_v9 = vmin.f32 %v1206_v4, 0.0  ;;  %v1077_v11 = vadd.f32 %v1076_v6, %v907_v5  ;;  %v830_v10 = vpop.f32.mrf.mxu0  ;;  %vm1270_vm14 = vcmp.gt.f32.partialorder %v1206_v4, 0.0 }
 0x12a   : > { %v2195_v12 = vadd.f32 -1.0, %v2394_v7  ;;  %v999_v13 = vpop.f32.mrf.mxu1 }
 0x12b   : > { %v2396_v14 = vpop.eup %2395  ;;  %2397 = vpow2.f32 %v1475_v8  ;;  %v1413_v15 = vmul.f32 1.442695, %v1334_v9  ;;  %v1170_v16 = vmul.f32 %v2672_v59, %v1077_v11  ;;  %v1000_v17 = vadd.f32 %v999_v13, %v830_v10 }
 0x12c   : > { %v1620_v18 = vsel %vm1300_vm11, %v1236_v43, %v2195_v12  ;;  %v2164_v0 = vadd.f32 -1.0, %v2396_v14 }
 0x12d   : > { %1684 = vst [vmem:[%s2699_s14 + $0x168] sm:$0xff] %v1620_v18  ;;  %2399 = vpow2.f32 %v1413_v15  ;;  %v1238_v20 = vadd.f32 %v2891_v19, %v1170_v16  ;;  %v1139_v59 = vmul.f32 %v2897_v21, %v1000_v17 }
 0x12e   : > { %v1589_v22 = vsel %vm1269_vm12, %v1205_v46, %v2164_v0 }
 0x12f   : > { %1653 = vst [vmem:[%s2699_s14 + $0x70] sm:$0xff] %v1589_v22  ;;  %v1366_v23 = vmin.f32 %v1238_v20, 0.0  ;;  %v1207_v24 = vadd.f32 %v2891_v19, %v1139_v59  ;;  %v910_v25 = vpop.f32.mrf.mxu2  ;;  %vm1302_vm15 = vcmp.gt.f32.partialorder %v1238_v20, 0.0 }
 0x130   : > { %v1079_v26 = vpop.f32.mrf.mxu3 }
 0x131   : > { %v2398_v27 = vpop.eup %2397  ;;  %v1477_v28 = vmul.f32 1.442695, %v1366_v23  ;;  %v1335_v29 = vmin.f32 %v1207_v24, 0.0  ;;  %v1080_v30 = vadd.f32 %v1079_v26, %v910_v25  ;;  %v832_v31 = vpop.f32.mrf.mxu0  ;;  %vm1271_vm0 = vcmp.gt.f32.partialorder %v1207_v24, 0.0 }
 0x132   : > { %v2196_v33 = vadd.f32 -1.0, %v2398_v27  ;;  %v1001_v34 = vpop.f32.mrf.mxu1 }
 0x133   : > { %v2400_v32 = vpop.eup %2399  ;;  %2401 = vpow2.f32 %v1477_v28  ;;  %v1415_v35 = vmul.f32 1.442695, %v1335_v29  ;;  %v1171_v36 = vmul.f32 %v2897_v21, %v1080_v30  ;;  %v1002_v37 = vadd.f32 %v1001_v34, %v832_v31 }
 0x134   : > { %v1621_v38 = vsel %vm1301_vm13, %v1237_v1, %v2196_v33  ;;  %v2165_v39 = vadd.f32 -1.0, %v2400_v32 }
 0x135   : > { %1685 = vst [vmem:[%s2699_s14 + $0x170] sm:$0xff] %v1621_v38  ;;  %2403 = vpow2.f32 %v1415_v35  ;;  %v1239_v40 = vadd.f32 %v2891_v19, %v1171_v36  ;;  %v1140_v41 = vmul.f32 %v2897_v21, %v1002_v37 }
 0x136   : > { %v1590_v43 = vsel %vm1270_vm14, %v1206_v4, %v2165_v39 }
 0x137   : > { %1654 = vst [vmem:[%s2699_s14 + $0x78] sm:$0xff] %v1590_v43  ;;  %v1367_v42 = vmin.f32 %v1239_v40, 0.0  ;;  %v1208_v44 = vadd.f32 %v2891_v19, %v1140_v41  ;;  %v912_v45 = vpop.f32.mrf.mxu2  ;;  %vm1303_vm1 = vcmp.gt.f32.partialorder %v1239_v40, 0.0 }
 0x138   : > { %v1081_v46 = vpop.f32.mrf.mxu3 }
 0x139   : > { %v2402_v47 = vpop.eup %2401  ;;  %v1479_v48 = vmul.f32 1.442695, %v1367_v42  ;;  %v1336_v49 = vmin.f32 %v1208_v44, 0.0  ;;  %v1082_v50 = vadd.f32 %v1081_v46, %v912_v45  ;;  %v835_v51 = vpop.f32.mrf.mxu0  ;;  %vm1272_vm2 = vcmp.gt.f32.partialorder %v1208_v44, 0.0 }
 0x13a   : > { %v2197_v53 = vadd.f32 -1.0, %v2402_v47  ;;  %v1004_v52 = vpop.f32.mrf.mxu1 }
 0x13b   : > { %v2404_v54 = vpop.eup %2403  ;;  %2405 = vpow2.f32 %v1479_v48  ;;  %v1417_v55 = vmul.f32 1.442695, %v1336_v49  ;;  %v1172_v57 = vmul.f32 %v2897_v21, %v1082_v50  ;;  %v1005_v58 = vadd.f32 %v1004_v52, %v835_v51 }
 0x13c   : > { %v1622_v56 = vsel %vm1302_vm15, %v1238_v20, %v2197_v53  ;;  %v2166_v60 = vadd.f32 -1.0, %v2404_v54 }
 0x13d   : > { %1686 = vst [vmem:[%s2699_s14 + $0x178] sm:$0xff] %v1622_v56  ;;  %2407 = vpow2.f32 %v1417_v55  ;;  %v1240_v61 = vadd.f32 %v2891_v19, %v1172_v57  ;;  %v1141_v62 = vmul.f32 %v2897_v21, %v1005_v58 }
 0x13e   : > { %v1591_v1 = vsel %vm1271_vm0, %v1207_v24, %v2166_v60 }
 0x13f   : > { %1655 = vst [vmem:[%s2699_s14 + $0x80] sm:$0xff] %v1591_v1  ;;  %v1368_v63 = vmin.f32 %v1240_v61, 0.0  ;;  %v1209_v2 = vadd.f32 %v2891_v19, %v1141_v62  ;;  %v915_v3 = vpop.f32.mrf.mxu2  ;;  %vm1304_vm3 = vcmp.gt.f32.partialorder %v1240_v61, 0.0 }
 0x140   : > { %v1084_v4 = vpop.f32.mrf.mxu3 }
 0x141   : > { %v2406_v5 = vpop.eup %2405  ;;  %v1481_v6 = vmul.f32 1.442695, %v1368_v63  ;;  %v1337_v7 = vmin.f32 %v1209_v2, 0.0  ;;  %v1085_v8 = vadd.f32 %v1084_v4, %v915_v3  ;;  %v837_v9 = vpop.f32.mrf.mxu0  ;;  %vm1273_vm4 = vcmp.gt.f32.partialorder %v1209_v2, 0.0 }
 0x142   : > { %v2198_v11 = vadd.f32 -1.0, %v2406_v5  ;;  %v1006_v10 = vpop.f32.mrf.mxu1 }
 0x143   : > { %v2408_v12 = vpop.eup %2407  ;;  %2409 = vpow2.f32 %v1481_v6  ;;  %v1419_v13 = vmul.f32 1.442695, %v1337_v7  ;;  %v1173_v14 = vmul.f32 %v2897_v21, %v1085_v8  ;;  %v1007_v15 = vadd.f32 %v1006_v10, %v837_v9 }
 0x144   : > { %v1623_v16 = vsel %vm1303_vm1, %v1239_v40, %v2198_v11  ;;  %v2167_v17 = vadd.f32 -1.0, %v2408_v12 }
 0x145   : > { %1687 = vst [vmem:[%s2699_s14 + $0x180] sm:$0xff] %v1623_v16  ;;  %2411 = vpow2.f32 %v1419_v13  ;;  %v1241_v18 = vadd.f32 %v2891_v19, %v1173_v14  ;;  %v1142_v0 = vmul.f32 %v2897_v21, %v1007_v15 }
 0x146   : > { %v1592_v20 = vsel %vm1272_vm2, %v1208_v44, %v2167_v17 }
 0x147   : > { %1656 = vst [vmem:[%s2699_s14 + $0x88] sm:$0xff] %v1592_v20  ;;  %v1369_v59 = vmin.f32 %v1241_v18, 0.0  ;;  %v1210_v22 = vadd.f32 %v2891_v19, %v1142_v0  ;;  %v917_v23 = vpop.f32.mrf.mxu2  ;;  %vm1305_vm5 = vcmp.gt.f32.partialorder %v1241_v18, 0.0 }
 0x148   : > { %v1086_v24 = vpop.f32.mrf.mxu3 }
 0x149   : > { %v2410_v25 = vpop.eup %2409  ;;  %v1483_v26 = vmul.f32 1.442695, %v1369_v59  ;;  %v1338_v27 = vmin.f32 %v1210_v22, 0.0  ;;  %v1087_v28 = vadd.f32 %v1086_v24, %v917_v23  ;;  %v840_v29 = vpop.f32.mrf.mxu0  ;;  %vm1274_vm6 = vcmp.gt.f32.partialorder %v1210_v22, 0.0 }
 0x14a   : > { %v2199_v30 = vadd.f32 -1.0, %v2410_v25  ;;  %v1009_v31 = vpop.f32.mrf.mxu1 }
 0x14b   : > { %v2412_v33 = vpop.eup %2411  ;;  %2413 = vpow2.f32 %v1483_v26  ;;  %v1421_v34 = vmul.f32 1.442695, %v1338_v27  ;;  %v1174_v32 = vmul.f32 %v2897_v21, %v1087_v28  ;;  %v1010_v35 = vadd.f32 %v1009_v31, %v840_v29 }
 0x14c   : > { %v1624_v36 = vsel %vm1304_vm3, %v1240_v61, %v2199_v30  ;;  %v2168_v37 = vadd.f32 -1.0, %v2412_v33 }
 0x14d   : > { %1688 = vst [vmem:[%s2699_s14 + $0x188] sm:$0xff] %v1624_v36  ;;  %2415 = vpow2.f32 %v1421_v34  ;;  %v1242_v38 = vadd.f32 %v2891_v19, %v1174_v32  ;;  %v1143_v39 = vmul.f32 %v2897_v21, %v1010_v35 }
 0x14e   : > { %v1593_v40 = vsel %vm1273_vm4, %v1209_v2, %v2168_v37 }
 0x14f   : > { %1657 = vst [vmem:[%s2699_s14 + $0x90] sm:$0xff] %v1593_v40  ;;  %v1370_v41 = vmin.f32 %v1242_v38, 0.0  ;;  %v1211_v43 = vadd.f32 %v2891_v19, %v1143_v39  ;;  %v920_v42 = vpop.f32.mrf.mxu2  ;;  %vm1306_vm7 = vcmp.gt.f32.partialorder %v1242_v38, 0.0 }
 0x150   : > { %v1089_v44 = vpop.f32.mrf.mxu3 }
 0x151   : > { %v2414_v45 = vpop.eup %2413  ;;  %v1485_v46 = vmul.f32 1.442695, %v1370_v41  ;;  %v1339_v47 = vmin.f32 %v1211_v43, 0.0  ;;  %v1090_v48 = vadd.f32 %v1089_v44, %v920_v42  ;;  %v842_v49 = vpop.f32.mrf.mxu0  ;;  %vm1275_vm8 = vcmp.gt.f32.partialorder %v1211_v43, 0.0 }
 0x152   : > { %v2200_v50 = vadd.f32 -1.0, %v2414_v45  ;;  %v1011_v51 = vpop.f32.mrf.mxu1 }
 0x153   : > { %v2416_v53 = vpop.eup %2415  ;;  %2417 = vpow2.f32 %v1485_v46  ;;  %v1423_v52 = vmul.f32 1.442695, %v1339_v47  ;;  %v1175_v54 = vmul.f32 %v2897_v21, %v1090_v48  ;;  %v1012_v55 = vadd.f32 %v1011_v51, %v842_v49 }
 0x154   : > { %v1625_v57 = vsel %vm1305_vm5, %v1241_v18, %v2200_v50  ;;  %v2169_v58 = vadd.f32 -1.0, %v2416_v53 }
 0x155   : > { %1689 = vst [vmem:[%s2699_s14 + $0x190] sm:$0xff] %v1625_v57  ;;  %2419 = vpow2.f32 %v1423_v52  ;;  %v1243_v56 = vadd.f32 %v2891_v19, %v1175_v54  ;;  %v1144_v60 = vmul.f32 %v2897_v21, %v1012_v55 }
 0x156   : > { %v1594_v61 = vsel %vm1274_vm6, %v1210_v22, %v2169_v58 }
 0x157   : > { %1658 = vst [vmem:[%s2699_s14 + $0x98] sm:$0xff] %v1594_v61  ;;  %v1371_v62 = vmin.f32 %v1243_v56, 0.0  ;;  %v1212_v1 = vadd.f32 %v2891_v19, %v1144_v60  ;;  %v922_v63 = vpop.f32.mrf.mxu2  ;;  %vm1307_vm9 = vcmp.gt.f32.partialorder %v1243_v56, 0.0 }
 0x158   : > { %v1091_v2 = vpop.f32.mrf.mxu3 }
 0x159   : > { %v2418_v3 = vpop.eup %2417  ;;  %v1487_v4 = vmul.f32 1.442695, %v1371_v62  ;;  %v1340_v5 = vmin.f32 %v1212_v1, 0.0  ;;  %v1092_v6 = vadd.f32 %v1091_v2, %v922_v63  ;;  %v845_v7 = vpop.f32.mrf.mxu0  ;;  %vm1276_vm10 = vcmp.gt.f32.partialorder %v1212_v1, 0.0 }
 0x15a   : > { %v2201_v8 = vadd.f32 -1.0, %v2418_v3  ;;  %v1014_v9 = vpop.f32.mrf.mxu1 }
 0x15b   : > { %v2420_v11 = vpop.eup %2419  ;;  %2421 = vpow2.f32 %v1487_v4  ;;  %v1425_v10 = vmul.f32 1.442695, %v1340_v5  ;;  %v1176_v12 = vmul.f32 %v2897_v21, %v1092_v6  ;;  %v1015_v13 = vadd.f32 %v1014_v9, %v845_v7 }
 0x15c   : > { %v1626_v14 = vsel %vm1306_vm7, %v1242_v38, %v2201_v8  ;;  %v2170_v15 = vadd.f32 -1.0, %v2420_v11 }
 0x15d   : > { %1690 = vst [vmem:[%s2699_s14 + $0x198] sm:$0xff] %v1626_v14  ;;  %2423 = vpow2.f32 %v1425_v10  ;;  %v1244_v16 = vadd.f32 %v2891_v19, %v1176_v12  ;;  %v1145_v17 = vmul.f32 %v2897_v21, %v1015_v13 }
 0x15e   : > { %v1595_v18 = vsel %vm1275_vm8, %v1211_v43, %v2170_v15 }
 0x15f   : > { %1659 = vst [vmem:[%s2699_s14 + $0xa0] sm:$0xff] %v1595_v18  ;;  %v1372_v0 = vmin.f32 %v1244_v16, 0.0  ;;  %v1213_v20 = vadd.f32 %v2891_v19, %v1145_v17  ;;  %v925_v59 = vpop.f32.mrf.mxu2  ;;  %vm1308_vm11 = vcmp.gt.f32.partialorder %v1244_v16, 0.0 }
 0x160   : > { %v1094_v22 = vpop.f32.mrf.mxu3 }
 0x161   : > { %v2422_v23 = vpop.eup %2421  ;;  %v1489_v24 = vmul.f32 1.442695, %v1372_v0  ;;  %v1341_v25 = vmin.f32 %v1213_v20, 0.0  ;;  %v1095_v26 = vadd.f32 %v1094_v22, %v925_v59  ;;  %v847_v27 = vpop.f32.mrf.mxu0  ;;  %vm1277_vm12 = vcmp.gt.f32.partialorder %v1213_v20, 0.0 }
 0x162   : > { %v2202_v28 = vadd.f32 -1.0, %v2422_v23  ;;  %v1016_v29 = vpop.f32.mrf.mxu1 }
 0x163   : > { %v2424_v30 = vpop.eup %2423  ;;  %2425 = vpow2.f32 %v1489_v24  ;;  %v1427_v31 = vmul.f32 1.442695, %v1341_v25  ;;  %v1177_v33 = vmul.f32 %v2897_v21, %v1095_v26  ;;  %v1017_v34 = vadd.f32 %v1016_v29, %v847_v27 }
 0x164   : > { %v1627_v32 = vsel %vm1307_vm9, %v1243_v56, %v2202_v28  ;;  %v2171_v35 = vadd.f32 -1.0, %v2424_v30 }
 0x165   : > { %1691 = vst [vmem:[%s2699_s14 + $0x1a0] sm:$0xff] %v1627_v32  ;;  %2427 = vpow2.f32 %v1427_v31  ;;  %v1245_v36 = vadd.f32 %v2891_v19, %v1177_v33  ;;  %v1146_v37 = vmul.f32 %v2897_v21, %v1017_v34 }
 0x166   : > { %v1596_v38 = vsel %vm1276_vm10, %v1212_v1, %v2171_v35 }
 0x167   : > { %1660 = vst [vmem:[%s2699_s14 + $0xa8] sm:$0xff] %v1596_v38  ;;  %v1373_v39 = vmin.f32 %v1245_v36, 0.0  ;;  %v1214_v40 = vadd.f32 %v2891_v19, %v1146_v37  ;;  %v927_v41 = vpop.f32.mrf.mxu2  ;;  %vm1309_vm13 = vcmp.gt.f32.partialorder %v1245_v36, 0.0 }
 0x168   : > { %v1096_v43 = vpop.f32.mrf.mxu3 }
 0x169   : > { %v2426_v42 = vpop.eup %2425  ;;  %v1491_v44 = vmul.f32 1.442695, %v1373_v39  ;;  %v1342_v45 = vmin.f32 %v1214_v40, 0.0  ;;  %v1097_v46 = vadd.f32 %v1096_v43, %v927_v41  ;;  %v850_v47 = vpop.f32.mrf.mxu0  ;;  %vm1278_vm14 = vcmp.gt.f32.partialorder %v1214_v40, 0.0 }
 0x16a   : > { %v2203_v48 = vadd.f32 -1.0, %v2426_v42  ;;  %v1019_v49 = vpop.f32.mrf.mxu1 }
 0x16b   : > { %v2428_v50 = vpop.eup %2427  ;;  %2429 = vpow2.f32 %v1491_v44  ;;  %v1429_v51 = vmul.f32 1.442695, %v1342_v45  ;;  %v1178_v53 = vmul.f32 %v2897_v21, %v1097_v46  ;;  %v1020_v52 = vadd.f32 %v1019_v49, %v850_v47 }
 0x16c   : > { %v1628_v54 = vsel %vm1308_vm11, %v1244_v16, %v2203_v48  ;;  %v2172_v55 = vadd.f32 -1.0, %v2428_v50 }
 0x16d   : > { %1692 = vst [vmem:[%s2699_s14 + $0x1a8] sm:$0xff] %v1628_v54  ;;  %2431 = vpow2.f32 %v1429_v51  ;;  %v1246_v57 = vadd.f32 %v2891_v19, %v1178_v53  ;;  %v1147_v58 = vmul.f32 %v2897_v21, %v1020_v52 }
 0x16e   : > { %v1597_v56 = vsel %vm1277_vm12, %v1213_v20, %v2172_v55 }
 0x16f   : > { %1661 = vst [vmem:[%s2699_s14 + $0xb0] sm:$0xff] %v1597_v56  ;;  %v1374_v60 = vmin.f32 %v1246_v57, 0.0  ;;  %v1215_v61 = vadd.f32 %v2891_v19, %v1147_v58  ;;  %v930_v62 = vpop.f32.mrf.mxu2  ;;  %vm1310_vm15 = vcmp.gt.f32.partialorder %v1246_v57, 0.0 }
 0x170   : > { %v1099_v1 = vpop.f32.mrf.mxu3 }
 0x171   : > { %v2430_v63 = vpop.eup %2429  ;;  %v1493_v2 = vmul.f32 1.442695, %v1374_v60  ;;  %v1343_v3 = vmin.f32 %v1215_v61, 0.0  ;;  %v1100_v4 = vadd.f32 %v1099_v1, %v930_v62  ;;  %v852_v5 = vpop.f32.mrf.mxu0  ;;  %vm1279_vm0 = vcmp.gt.f32.partialorder %v1215_v61, 0.0 }
 0x172   : > { %v2204_v6 = vadd.f32 -1.0, %v2430_v63  ;;  %v1021_v7 = vpop.f32.mrf.mxu1 }
 0x173   : > { %v2432_v8 = vpop.eup %2431  ;;  %2433 = vpow2.f32 %v1493_v2  ;;  %v1431_v9 = vmul.f32 1.442695, %v1343_v3  ;;  %v1179_v11 = vmul.f32 %v2897_v21, %v1100_v4  ;;  %v1022_v10 = vadd.f32 %v1021_v7, %v852_v5 }
 0x174   : > { %v1629_v12 = vsel %vm1309_vm13, %v1245_v36, %v2204_v6  ;;  %v2173_v13 = vadd.f32 -1.0, %v2432_v8 }
 0x175   : > { %1693 = vst [vmem:[%s2699_s14 + $0x1b0] sm:$0xff] %v1629_v12  ;;  %2435 = vpow2.f32 %v1431_v9  ;;  %v1247_v14 = vadd.f32 %v2891_v19, %v1179_v11  ;;  %v1148_v15 = vmul.f32 %v2897_v21, %v1022_v10 }
 0x176   : > { %v1598_v16 = vsel %vm1278_vm14, %v1214_v40, %v2173_v13 }
 0x177   : > { %1662 = vst [vmem:[%s2699_s14 + $0xb8] sm:$0xff] %v1598_v16  ;;  %v1375_v17 = vmin.f32 %v1247_v14, 0.0  ;;  %v1216_v18 = vadd.f32 %v2891_v19, %v1148_v15  ;;  %v932_v0 = vpop.f32.mrf.mxu2  ;;  %vm1311_vm1 = vcmp.gt.f32.partialorder %v1247_v14, 0.0 }
 0x178   : > { %v1101_v20 = vpop.f32.mrf.mxu3 }
 0x179   : > { %v2434_v59 = vpop.eup %2433  ;;  %v1495_v22 = vmul.f32 1.442695, %v1375_v17  ;;  %v1344_v23 = vmin.f32 %v1216_v18, 0.0  ;;  %v1102_v24 = vadd.f32 %v1101_v20, %v932_v0  ;;  %v855_v25 = vpop.f32.mrf.mxu0  ;;  %vm1280_vm2 = vcmp.gt.f32.partialorder %v1216_v18, 0.0 }
 0x17a   : > { %v2205_v26 = vadd.f32 -1.0, %v2434_v59  ;;  %v1024_v27 = vpop.f32.mrf.mxu1 }
 0x17b   : > { %v2436_v28 = vpop.eup %2435  ;;  %2437 = vpow2.f32 %v1495_v22  ;;  %v1433_v29 = vmul.f32 1.442695, %v1344_v23  ;;  %v1180_v30 = vmul.f32 %v2897_v21, %v1102_v24  ;;  %v1025_v31 = vadd.f32 %v1024_v27, %v855_v25 }
 0x17c   : > { %v1630_v33 = vsel %vm1310_vm15, %v1246_v57, %v2205_v26  ;;  %v2174_v34 = vadd.f32 -1.0, %v2436_v28 }
 0x17d   : > { %1694 = vst [vmem:[%s2699_s14 + $0x1b8] sm:$0xff] %v1630_v33  ;;  %2439 = vpow2.f32 %v1433_v29  ;;  %v1248_v32 = vadd.f32 %v2891_v19, %v1180_v30  ;;  %v1149_v35 = vmul.f32 %v2897_v21, %v1025_v31 }
 0x17e   : > { %v1599_v36 = vsel %vm1279_vm0, %v1215_v61, %v2174_v34 }
 0x17f   : > { %1663 = vst [vmem:[%s2699_s14 + $0xc0] sm:$0xff] %v1599_v36  ;;  %v1376_v37 = vmin.f32 %v1248_v32, 0.0  ;;  %v1217_v38 = vadd.f32 %v2891_v19, %v1149_v35  ;;  %v935_v39 = vpop.f32.mrf.mxu2  ;;  %vm1312_vm3 = vcmp.gt.f32.partialorder %v1248_v32, 0.0 }
 0x180   : > { %v1104_v40 = vpop.f32.mrf.mxu3 }
 0x181   : > { %v2438_v41 = vpop.eup %2437  ;;  %v1497_v43 = vmul.f32 1.442695, %v1376_v37  ;;  %v1345_v42 = vmin.f32 %v1217_v38, 0.0  ;;  %v1105_v44 = vadd.f32 %v1104_v40, %v935_v39  ;;  %v857_v45 = vpop.f32.mrf.mxu0  ;;  %vm1281_vm4 = vcmp.gt.f32.partialorder %v1217_v38, 0.0 }
 0x182   : > { %v2206_v46 = vadd.f32 -1.0, %v2438_v41  ;;  %v1026_v47 = vpop.f32.mrf.mxu1 }
 0x183   : > { %v2440_v48 = vpop.eup %2439  ;;  %2441 = vpow2.f32 %v1497_v43  ;;  %v1435_v49 = vmul.f32 1.442695, %v1345_v42  ;;  %v1181_v50 = vmul.f32 %v2897_v21, %v1105_v44  ;;  %v1027_v51 = vadd.f32 %v1026_v47, %v857_v45 }
 0x184   : > { %v1631_v53 = vsel %vm1311_vm1, %v1247_v14, %v2206_v46  ;;  %v2175_v52 = vadd.f32 -1.0, %v2440_v48 }
 0x185   : > { %1695 = vst [vmem:[%s2699_s14 + $0x1c0] sm:$0xff] %v1631_v53  ;;  %2443 = vpow2.f32 %v1435_v49  ;;  %v1249_v54 = vadd.f32 %v2891_v19, %v1181_v50  ;;  %v1150_v55 = vmul.f32 %v2897_v21, %v1027_v51 }
 0x186   : > { %v1600_v57 = vsel %vm1280_vm2, %v1216_v18, %v2175_v52 }
 0x187   : > { %1664 = vst [vmem:[%s2699_s14 + $0xc8] sm:$0xff] %v1600_v57  ;;  %v1377_v58 = vmin.f32 %v1249_v54, 0.0  ;;  %v1218_v56 = vadd.f32 %v2891_v19, %v1150_v55  ;;  %v937_v60 = vpop.f32.mrf.mxu2  ;;  %vm1313_vm5 = vcmp.gt.f32.partialorder %v1249_v54, 0.0 }
 0x188   : > { %v1106_v61 = vpop.f32.mrf.mxu3 }
 0x189   : > { %v2442_v62 = vpop.eup %2441  ;;  %v1499_v1 = vmul.f32 1.442695, %v1377_v58  ;;  %v1346_v63 = vmin.f32 %v1218_v56, 0.0  ;;  %v1107_v2 = vadd.f32 %v1106_v61, %v937_v60  ;;  %v860_v3 = vpop.f32.mrf.mxu0  ;;  %vm1282_vm6 = vcmp.gt.f32.partialorder %v1218_v56, 0.0 }
 0x18a   : > { %v2207_v4 = vadd.f32 -1.0, %v2442_v62  ;;  %v1029_v5 = vpop.f32.mrf.mxu1 }
 0x18b   : > { %v2444_v6 = vpop.eup %2443  ;;  %2445 = vpow2.f32 %v1499_v1  ;;  %v1437_v7 = vmul.f32 1.442695, %v1346_v63  ;;  %v1182_v8 = vmul.f32 %v2897_v21, %v1107_v2  ;;  %v1030_v9 = vadd.f32 %v1029_v5, %v860_v3 }
 0x18c   : > { %v1632_v11 = vsel %vm1312_vm3, %v1248_v32, %v2207_v4  ;;  %v2176_v10 = vadd.f32 -1.0, %v2444_v6 }
 0x18d   : > { %1696 = vst [vmem:[%s2699_s14 + $0x1c8] sm:$0xff] %v1632_v11  ;;  %2447 = vpow2.f32 %v1437_v7  ;;  %v1250_v12 = vadd.f32 %v2891_v19, %v1182_v8  ;;  %v1151_v13 = vmul.f32 %v2897_v21, %v1030_v9 }
 0x18e   : > { %v1601_v14 = vsel %vm1281_vm4, %v1217_v38, %v2176_v10 }
 0x18f   : > { %1665 = vst [vmem:[%s2699_s14 + $0xd0] sm:$0xff] %v1601_v14  ;;  %v1378_v15 = vmin.f32 %v1250_v12, 0.0  ;;  %v1219_v16 = vadd.f32 %v2891_v19, %v1151_v13  ;;  %v940_v17 = vpop.f32.mrf.mxu2  ;;  %vm1314_vm7 = vcmp.gt.f32.partialorder %v1250_v12, 0.0 }
 0x190   : > { %v1109_v18 = vpop.f32.mrf.mxu3 }
 0x191   : > { %v2446_v0 = vpop.eup %2445  ;;  %v1501_v20 = vmul.f32 1.442695, %v1378_v15  ;;  %v1347_v59 = vmin.f32 %v1219_v16, 0.0  ;;  %v1110_v22 = vadd.f32 %v1109_v18, %v940_v17  ;;  %v862_v23 = vpop.f32.mrf.mxu0  ;;  %vm1283_vm8 = vcmp.gt.f32.partialorder %v1219_v16, 0.0 }
 0x192   : > { %v2208_v24 = vadd.f32 -1.0, %v2446_v0  ;;  %v1031_v25 = vpop.f32.mrf.mxu1 }
 0x193   : > { %v2448_v26 = vpop.eup %2447  ;;  %2449 = vpow2.f32 %v1501_v20  ;;  %v1439_v27 = vmul.f32 1.442695, %v1347_v59  ;;  %v1183_v28 = vmul.f32 %v2897_v21, %v1110_v22  ;;  %v1032_v29 = vadd.f32 %v1031_v25, %v862_v23 }
 0x194   : > { %v1633_v30 = vsel %vm1313_vm5, %v1249_v54, %v2208_v24  ;;  %v2177_v31 = vadd.f32 -1.0, %v2448_v26 }
 0x195   : > { %1697 = vst [vmem:[%s2699_s14 + $0x1d0] sm:$0xff] %v1633_v30  ;;  %2451 = vpow2.f32 %v1439_v27  ;;  %v1251_v33 = vadd.f32 %v2891_v19, %v1183_v28  ;;  %v1152_v34 = vmul.f32 %v2897_v21, %v1032_v29 }
 0x196   : > { %v1602_v32 = vsel %vm1282_vm6, %v1218_v56, %v2177_v31 }
 0x197   : > { %1666 = vst [vmem:[%s2699_s14 + $0xd8] sm:$0xff] %v1602_v32  ;;  %v1379_v35 = vmin.f32 %v1251_v33, 0.0  ;;  %v1220_v36 = vadd.f32 %v2891_v19, %v1152_v34  ;;  %v942_v37 = vpop.f32.mrf.mxu2  ;;  %vm1315_vm9 = vcmp.gt.f32.partialorder %v1251_v33, 0.0 }
 0x198   : > { %v1111_v38 = vpop.f32.mrf.mxu3 }
 0x199   : > { %v2450_v39 = vpop.eup %2449  ;;  %v1503_v40 = vmul.f32 1.442695, %v1379_v35  ;;  %v1348_v41 = vmin.f32 %v1220_v36, 0.0  ;;  %v1112_v43 = vadd.f32 %v1111_v38, %v942_v37  ;;  %v865_v42 = vpop.f32.mrf.mxu0  ;;  %vm1284_vm10 = vcmp.gt.f32.partialorder %v1220_v36, 0.0 }
 0x19a   : > { %v2209_v44 = vadd.f32 -1.0, %v2450_v39  ;;  %v1034_v45 = vpop.f32.mrf.mxu1 }
 0x19b   : > { %v2452_v46 = vpop.eup %2451  ;;  %2453 = vpow2.f32 %v1503_v40  ;;  %v1441_v47 = vmul.f32 1.442695, %v1348_v41  ;;  %v1184_v48 = vmul.f32 %v2897_v21, %v1112_v43  ;;  %v1035_v49 = vadd.f32 %v1034_v45, %v865_v42 }
 0x19c   : > { %v1634_v50 = vsel %vm1314_vm7, %v1250_v12, %v2209_v44  ;;  %v2178_v51 = vadd.f32 -1.0, %v2452_v46 }
 0x19d   : > { %1698 = vst [vmem:[%s2699_s14 + $0x1d8] sm:$0xff] %v1634_v50  ;;  %2455 = vpow2.f32 %v1441_v47  ;;  %v1252_v53 = vadd.f32 %v2891_v19, %v1184_v48  ;;  %v1153_v52 = vmul.f32 %v2897_v21, %v1035_v49 }
 0x19e   : > { %v1603_v54 = vsel %vm1283_vm8, %v1219_v16, %v2178_v51 }
 0x19f   : > { %1667 = vst [vmem:[%s2699_s14 + $0xe0] sm:$0xff] %v1603_v54  ;;  %v1380_v55 = vmin.f32 %v1252_v53, 0.0  ;;  %v1221_v57 = vadd.f32 %v2891_v19, %v1153_v52  ;;  %v945_v58 = vpop.f32.mrf.mxu2  ;;  %vm1316_vm11 = vcmp.gt.f32.partialorder %v1252_v53, 0.0 }
 0x1a0   : > { %v1114_v56 = vpop.f32.mrf.mxu3 }
 0x1a1   : > { %v2454_v60 = vpop.eup %2453  ;;  %v1505_v61 = vmul.f32 1.442695, %v1380_v55  ;;  %v1349_v62 = vmin.f32 %v1221_v57, 0.0  ;;  %v1115_v1 = vadd.f32 %v1114_v56, %v945_v58  ;;  %v867_v63 = vpop.f32.mrf.mxu0  ;;  %vm1285_vm12 = vcmp.gt.f32.partialorder %v1221_v57, 0.0 }
 0x1a2   : > { %v2210_v2 = vadd.f32 -1.0, %v2454_v60  ;;  %v1036_v3 = vpop.f32.mrf.mxu1 }
 0x1a3   : > { %v2456_v4 = vpop.eup %2455  ;;  %2457 = vpow2.f32 %v1505_v61  ;;  %v1443_v5 = vmul.f32 1.442695, %v1349_v62  ;;  %v1185_v6 = vmul.f32 %v2897_v21, %v1115_v1  ;;  %v1037_v7 = vadd.f32 %v1036_v3, %v867_v63 }
 0x1a4   : > { %v1635_v8 = vsel %vm1315_vm9, %v1251_v33, %v2210_v2  ;;  %v2179_v9 = vadd.f32 -1.0, %v2456_v4 }
 0x1a5   : > { %1699 = vst [vmem:[%s2699_s14 + $0x1e0] sm:$0xff] %v1635_v8  ;;  %2459 = vpow2.f32 %v1443_v5  ;;  %v1253_v11 = vadd.f32 %v2891_v19, %v1185_v6  ;;  %v1154_v10 = vmul.f32 %v2897_v21, %v1037_v7 }
 0x1a6   : > { %v1604_v12 = vsel %vm1284_vm10, %v1220_v36, %v2179_v9 }
 0x1a7   : > { %1668 = vst [vmem:[%s2699_s14 + $0xe8] sm:$0xff] %v1604_v12  ;;  %v1381_v13 = vmin.f32 %v1253_v11, 0.0  ;;  %v1222_v14 = vadd.f32 %v2891_v19, %v1154_v10  ;;  %v947_v15 = vpop.f32.mrf.mxu2  ;;  %vm1317_vm13 = vcmp.gt.f32.partialorder %v1253_v11, 0.0 }
 0x1a8   : > { %v1116_v16 = vpop.f32.mrf.mxu3 }
 0x1a9   : > { %v2458_v17 = vpop.eup %2457  ;;  %v1507_v18 = vmul.f32 1.442695, %v1381_v13  ;;  %v1350_v0 = vmin.f32 %v1222_v14, 0.0  ;;  %v1117_v20 = vadd.f32 %v1116_v16, %v947_v15  ;;  %vm1286_vm14 = vcmp.gt.f32.partialorder %v1222_v14, 0.0 }
 0x1aa   : > { %v2211_v59 = vadd.f32 -1.0, %v2458_v17 }
 0x1ab   : > { %v2460_v22 = vpop.eup %2459  ;;  %2461 = vpow2.f32 %v1507_v18  ;;  %v1445_v23 = vmul.f32 1.442695, %v1350_v0  ;;  %v1186_v24 = vmul.f32 %v2897_v21, %v1117_v20 }
 0x1ac   : > { %v1636_v25 = vsel %vm1316_vm11, %v1252_v53, %v2211_v59  ;;  %v2180_v26 = vadd.f32 -1.0, %v2460_v22 }
 0x1ad   : > { %1700 = vst [vmem:[%s2699_s14 + $0x1e8] sm:$0xff] %v1636_v25  ;;  %2463 = vpow2.f32 %v1445_v23  ;;  %v1254_v27 = vadd.f32 %v2891_v19, %v1186_v24 }
 0x1ae   : > { %v1605_v28 = vsel %vm1285_vm12, %v1221_v57, %v2180_v26 }
 0x1af   : > { %1669 = vst [vmem:[%s2699_s14 + $0xf0] sm:$0xff] %v1605_v28  ;;  %v1382_v29 = vmin.f32 %v1254_v27, 0.0  ;;  %vm1318_vm15 = vcmp.gt.f32.partialorder %v1254_v27, 0.0 }
 0x1b1   : > { %v2462_v30 = vpop.eup %2461  ;;  %v1509_v31 = vmul.f32 1.442695, %v1382_v29 }
 0x1b2   : > { %v2212_v33 = vadd.f32 -1.0, %v2462_v30 }
 0x1b3   : > { %v2464_v34 = vpop.eup %2463  ;;  %2465 = vpow2.f32 %v1509_v31 }
 0x1b4   : > { %v1637_v21 = vsel %vm1317_vm13, %v1253_v11, %v2212_v33  ;;  %v2181_v32 = vadd.f32 -1.0, %v2464_v34 }
 0x1b5   : > { %1701 = vst [vmem:[%s2699_s14 + $0x1f0] sm:$0xff] %v1637_v21 }
 0x1b6   : > { %v1606_v35 = vsel %vm1286_vm14, %v1222_v14, %v2181_v32 }
 0x1b7   : > { %1670 = vst [vmem:[%s2699_s14 + $0xf8] sm:$0xff] %v1606_v35 }
 0x1b9   : > { %v2466_v36 = vpop.eup %2465 }
 0x1ba   : > { %v2213_v37 = vadd.f32 -1.0, %v2466_v36 }
 0x1bc   : > { %v1638_v19 = vsel %vm1318_vm15, %v1254_v27, %v2213_v37 }
 0x1bd   : > { %1702 = vst [vmem:[%s2699_s14 + $0x1f8] sm:$0xff] %v1638_v19 }
 0x1be PF: > { %s14_s17 = sadd.s32 1, %s2491_s17   ;;  %s3013_s15 = smov %s2487_s16 }
 0x1bf   : > { %p11_p5 = scmp.ge.s32.totalorder %s14_s17, 49   ;;  %s3014_s16 = smov %s3016_s18 }
 0x1c1   :  { %13 = sbr.rel (!%p11_p5) target bundleno = 2 (0x2), region = 75 }

// kernel: _lambda_.7
= control target key start
LH: loop header
LB: loop body
LE: loop exit
PB: predicated region body
PF: predicated region fallthrough
CT: control target
= control target key end

     0   :  { %s1760_s1 = inlined_call_operand.vmem [shape: bf16[256,128], index: 1, kind: input, shape index: {}]   ;;  %s1761_s0 = inlined_call_operand.vmem [shape: bf16[288,256], index: 0, kind: input, shape index: {}]   ;;  %s1762_s2 = inlined_call_operand.vmem [shape: f32[1,128], index: 2, kind: input, shape index: {}]   ;;  %s1763_s3 = inlined_call_operand.vmem [shape: f32[1,128], index: 3, kind: input, shape index: {}]   ;;  %s1764_s4 = inlined_call_operand.vmem [shape: f32[288,128], index: 4, kind: output, shape index: {}]  }
   0x1   :  { %v1182_v0 = vld [vmem:[%s1760_s1 + $0x38] sm:$0xff]  ;;  %v1181_v2 = vld [vmem:[%s1760_s1 + $0x30] sm:$0xff]  ;;  %v1180_v4 = vld [vmem:[%s1760_s1 + $0x28] sm:$0xff] }
   0x2   :  { %v1190_v1 = vld [vmem:[%s1760_s1 + $0x78] sm:$0xff]  ;;  %361 = vmatpush.bf16.msra.mxu0 %v1182_v0  ;;  %1191 = vmatpush.bf16.msra.mxu2 %v1182_v0  ;;  %v1189_v3 = vld [vmem:[%s1760_s1 + $0x70] sm:$0xff]  ;;  %v1188_v5 = vld [vmem:[%s1760_s1 + $0x68] sm:$0xff] }
   0x3   :  { %460 = vmatpush.bf16.msra.mxu1 %v1190_v1  ;;  %1199 = vmatpush.bf16.msra.mxu3 %v1190_v1  ;;  %v1179_v6 = vld [vmem:[%s1760_s1 + $0x20] sm:$0xff]  ;;  %v1178_v8 = vld [vmem:[%s1760_s1 + $0x18] sm:$0xff]  ;;  %v1177_v10 = vld [vmem:[%s1760_s1 + $0x10] sm:$0xff] }
   0x4   :  { %v1187_v7 = vld [vmem:[%s1760_s1 + $0x60] sm:$0xff]  ;;  %v1186_v9 = vld [vmem:[%s1760_s1 + $0x58] sm:$0xff]  ;;  %v1185_v11 = vld [vmem:[%s1760_s1 + $0x50] sm:$0xff] }
   0x5   :  { %v1176_v12 = vld [vmem:[%s1760_s1 + $0x8] sm:$0xff]  ;;  %v1175_v14 = vld [vmem:[%s1760_s1] sm:$0xff]  ;;  %v969_v18 = vld [vmem:[%s1761_s0 + $0x90] sm:$0xf] }
   0x6   :  { %362 = vmatpush.bf16.msra.mxu0 %v1181_v2  ;;  %1192 = vmatpush.bf16.msra.mxu2 %v1181_v2  ;;  %v1184_v13 = vld [vmem:[%s1760_s1 + $0x48] sm:$0xff]  ;;  %v1183_v15 = vld [vmem:[%s1760_s1 + $0x40] sm:$0xff]  ;;  %v1158_v19 = vld [vmem:[%s1761_s0 + $0x94] sm:$0xf0] }
   0x7   :  { %461 = vmatpush.bf16.msra.mxu1 %v1189_v3  ;;  %1200 = vmatpush.bf16.msra.mxu3 %v1189_v3  ;;  %v897_v16 = vld [vmem:[%s1761_s0] sm:$0xf]  ;;  %v1140_v17 = vld [vmem:[%s1761_s0 + $0x4] sm:$0xf0]  ;;  %v1139_v20 = vld [vmem:[%s1761_s0 + $0x4] sm:$0xf]  ;;  %v970_v25 = vor.u32 %v1158_v19, %v969_v18 }
   0x8   :  { %v899_v21 = vld [vmem:[%s1761_s0 + $0x8] sm:$0xf0]  ;;  %v1157_v22 = vld [vmem:[%s1761_s0 + $0x94] sm:$0xf]  ;;  %v971_v23 = vld [vmem:[%s1761_s0 + $0x98] sm:$0xf0]  ;;  %v898_v24 = vor.u32 %v1140_v17, %v897_v16 }
   0x9   :  { %v902_v26 = vor.u32 %v1139_v20, %v899_v21  ;;  %v974_v27 = vor.u32 %v1157_v22, %v971_v23  ;;  %v905_v28 = vld [vmem:[%s1761_s0 + $0x10] sm:$0xf]  ;;  %v1142_v29 = vld [vmem:[%s1761_s0 + $0x14] sm:$0xf0]  ;;  %v977_v30 = vld [vmem:[%s1761_s0 + $0xa0] sm:$0xf] }
   0xa   :  { %363 = vmatpush.bf16.msra.mxu0 %v1180_v4  ;;  %1193 = vmatpush.bf16.msra.mxu2 %v1180_v4  ;;  %v1160_v31 = vld [vmem:[%s1761_s0 + $0xa4] sm:$0xf0]  ;;  %v1141_v32 = vld [vmem:[%s1761_s0 + $0x14] sm:$0xf]  ;;  %v907_v33 = vld [vmem:[%s1761_s0 + $0x18] sm:$0xf0]  ;;  %v906_v36 = vor.u32 %v1142_v29, %v905_v28 }
   0xb   :  { %462 = vmatpush.bf16.msra.mxu1 %v1188_v5  ;;  %1201 = vmatpush.bf16.msra.mxu3 %v1188_v5  ;;  %v1159_v34 = vld [vmem:[%s1761_s0 + $0xa4] sm:$0xf]  ;;  %v979_v35 = vld [vmem:[%s1761_s0 + $0xa8] sm:$0xf0]  ;;  %v978_v37 = vor.u32 %v1160_v31, %v977_v30  ;;  %v910_v38 = vor.u32 %v1141_v32, %v907_v33  ;;  %v913_v40 = vld [vmem:[%s1761_s0 + $0x20] sm:$0xf] }
   0xc   :  { %v982_v39 = vor.u32 %v1159_v34, %v979_v35  ;;  %v1144_v41 = vld [vmem:[%s1761_s0 + $0x24] sm:$0xf0]  ;;  %v985_v42 = vld [vmem:[%s1761_s0 + $0xb0] sm:$0xf]  ;;  %v1162_v43 = vld [vmem:[%s1761_s0 + $0xb4] sm:$0xf0] }
   0xd   :  { %v1143_v44 = vld [vmem:[%s1761_s0 + $0x24] sm:$0xf]  ;;  %v915_v45 = vld [vmem:[%s1761_s0 + $0x28] sm:$0xf0]  ;;  %v1161_v46 = vld [vmem:[%s1761_s0 + $0xb4] sm:$0xf]  ;;  %v914_v48 = vor.u32 %v1144_v41, %v913_v40  ;;  %v986_v49 = vor.u32 %v1162_v43, %v985_v42 }
   0xe   :  { %364 = vmatpush.bf16.msra.mxu0 %v1179_v6  ;;  %1194 = vmatpush.bf16.msra.mxu2 %v1179_v6  ;;  %v987_v47 = vld [vmem:[%s1761_s0 + $0xb8] sm:$0xf0]  ;;  %v918_v50 = vor.u32 %v1143_v44, %v915_v45  ;;  %v921_v52 = vld [vmem:[%s1761_s0 + $0x30] sm:$0xf]  ;;  %v1146_v53 = vld [vmem:[%s1761_s0 + $0x34] sm:$0xf0] }
   0xf   :  { %463 = vmatpush.bf16.msra.mxu1 %v1187_v7  ;;  %1202 = vmatpush.bf16.msra.mxu3 %v1187_v7  ;;  %v990_v51 = vor.u32 %v1161_v46, %v987_v47  ;;  %v993_v54 = vld [vmem:[%s1761_s0 + $0xc0] sm:$0xf]  ;;  %v1164_v55 = vld [vmem:[%s1761_s0 + $0xc4] sm:$0xf0]  ;;  %v1145_v56 = vld [vmem:[%s1761_s0 + $0x34] sm:$0xf]  ;;  %v922_v60 = vor.u32 %v1146_v53, %v921_v52 }
  0x10   :  { %v923_v57 = vld [vmem:[%s1761_s0 + $0x38] sm:$0xf0]  ;;  %v1163_v58 = vld [vmem:[%s1761_s0 + $0xc4] sm:$0xf]  ;;  %v995_v59 = vld [vmem:[%s1761_s0 + $0xc8] sm:$0xf0]  ;;  %v994_v61 = vor.u32 %v1164_v55, %v993_v54 }
  0x11   :  { %v926_v62 = vor.u32 %v1145_v56, %v923_v57  ;;  %v998_v63 = vor.u32 %v1163_v58, %v995_v59  ;;  %v929_v0 = vld [vmem:[%s1761_s0 + $0x40] sm:$0xf]  ;;  %v1148_v1 = vld [vmem:[%s1761_s0 + $0x44] sm:$0xf0]  ;;  %v1001_v2 = vld [vmem:[%s1761_s0 + $0xd0] sm:$0xf] }
  0x12   :  { %365 = vmatpush.bf16.msra.mxu0 %v1178_v8  ;;  %1195 = vmatpush.bf16.msra.mxu2 %v1178_v8  ;;  %v1166_v3 = vld [vmem:[%s1761_s0 + $0xd4] sm:$0xf0]  ;;  %v1147_v4 = vld [vmem:[%s1761_s0 + $0x44] sm:$0xf]  ;;  %v931_v5 = vld [vmem:[%s1761_s0 + $0x48] sm:$0xf0]  ;;  %v930_v8 = vor.u32 %v1148_v1, %v929_v0 }
  0x13   :  { %464 = vmatpush.bf16.msra.mxu1 %v1186_v9  ;;  %1203 = vmatpush.bf16.msra.mxu3 %v1186_v9  ;;  %v1165_v6 = vld [vmem:[%s1761_s0 + $0xd4] sm:$0xf]  ;;  %v1003_v7 = vld [vmem:[%s1761_s0 + $0xd8] sm:$0xf0]  ;;  %v1002_v9 = vor.u32 %v1166_v3, %v1001_v2  ;;  %v1167_v18 = vld [vmem:[%s1761_s0 + $0xe4] sm:$0xf] }
  0x14   :  { %v1149_v16 = vld [vmem:[%s1761_s0 + $0x54] sm:$0xf]  ;;  %v939_v17 = vld [vmem:[%s1761_s0 + $0x58] sm:$0xf0]  ;;  %v1011_v19 = vld [vmem:[%s1761_s0 + $0xe8] sm:$0xf0] }
  0x15   :  { %v942_v22 = vor.u32 %v1149_v16, %v939_v17  ;;  %v1014_v23 = vor.u32 %v1167_v18, %v1011_v19  ;;  %v1151_v28 = vld [vmem:[%s1761_s0 + $0x64] sm:$0xf]  ;;  %v947_v29 = vld [vmem:[%s1761_s0 + $0x68] sm:$0xf0]  ;;  %v1169_v30 = vld [vmem:[%s1761_s0 + $0xf4] sm:$0xf] }
  0x16   :  { %366 = vmatpush.bf16.msra.mxu0 %v1177_v10  ;;  %1196 = vmatpush.bf16.msra.mxu2 %v1177_v10  ;;  %v934_v10 = vor.u32 %v1147_v4, %v931_v5  ;;  %v1019_v31 = vld [vmem:[%s1761_s0 + $0xf8] sm:$0xf0]  ;;  %v950_v34 = vor.u32 %v1151_v28, %v947_v29  ;;  %v1153_v40 = vld [vmem:[%s1761_s0 + $0x74] sm:$0xf]  ;;  %v1171_v42 = vld [vmem:[%s1761_s0 + $0x104] sm:$0xf] }
  0x17   :  { %465 = vmatpush.bf16.msra.mxu1 %v1185_v11  ;;  %1204 = vmatpush.bf16.msra.mxu3 %v1185_v11  ;;  %v1006_v11 = vor.u32 %v1165_v6, %v1003_v7  ;;  %v1022_v35 = vor.u32 %v1169_v30, %v1019_v31  ;;  %v955_v41 = vld [vmem:[%s1761_s0 + $0x78] sm:$0xf0]  ;;  %v1027_v43 = vld [vmem:[%s1761_s0 + $0x108] sm:$0xf0]  ;;  %v1155_v52 = vld [vmem:[%s1761_s0 + $0x84] sm:$0xf] }
  0x18   :  { %v958_v46 = vor.u32 %v1153_v40, %v955_v41  ;;  %v1030_v47 = vor.u32 %v1171_v42, %v1027_v43  ;;  %v963_v53 = vld [vmem:[%s1761_s0 + $0x88] sm:$0xf0]  ;;  %v1173_v54 = vld [vmem:[%s1761_s0 + $0x114] sm:$0xf]  ;;  %v1035_v55 = vld [vmem:[%s1761_s0 + $0x118] sm:$0xf0] }
  0x19   :  { %v1573_v59 = vld [vmem:[%s1762_s2] ss:$0 sm:$0xff] }
  0x1a   :  { %367 = vmatpush.bf16.msra.mxu0 %v1176_v12  ;;  %1197 = vmatpush.bf16.msra.mxu2 %v1176_v12  ;;  %v937_v12 = vld [vmem:[%s1761_s0 + $0x50] sm:$0xf]  ;;  %v1578_v0 = vld [vmem:[%s1763_s3] ss:$0 sm:$0xff] }
  0x1b   :  { %466 = vmatpush.bf16.msra.mxu1 %v1184_v13  ;;  %1205 = vmatpush.bf16.msra.mxu3 %v1184_v13  ;;  %v1150_v13 = vld [vmem:[%s1761_s0 + $0x54] sm:$0xf0] }
  0x1c   :  { %v938_v20 = vor.u32 %v1150_v13, %v937_v12 }
  0x1e   :  { %368 = vmatpush.bf16.msra.mxu0 %v1175_v14  ;;  %1198 = vmatpush.bf16.msra.mxu2 %v1175_v14  ;;  %v1009_v14 = vld [vmem:[%s1761_s0 + $0xe0] sm:$0xf] }
  0x1f   :  { %467 = vmatpush.bf16.msra.mxu1 %v1183_v15  ;;  %1206 = vmatpush.bf16.msra.mxu3 %v1183_v15  ;;  %v1168_v15 = vld [vmem:[%s1761_s0 + $0xe4] sm:$0xf0] }
  0x20   :  { %v1010_v21 = vor.u32 %v1168_v15, %v1009_v14 }
  0x21   :  { %369 = vmatmul.bf16.vlgmr.msra.gmra.mxu0 %v898_v24  ;;  %414 = vmatmul.bf16.vlgmr.msra.gmra.mxu2 %v970_v25  ;;  %v945_v24 = vld [vmem:[%s1761_s0 + $0x60] sm:$0xf]  ;;  %v1152_v25 = vld [vmem:[%s1761_s0 + $0x64] sm:$0xf0] }
  0x22   :  { %468 = vmatmul.bf16.vlgmr.msra.gmra.mxu1 %v902_v26  ;;  %513 = vmatmul.bf16.vlgmr.msra.gmra.mxu3 %v974_v27  ;;  %v1017_v26 = vld [vmem:[%s1761_s0 + $0xf0] sm:$0xf]  ;;  %v1170_v27 = vld [vmem:[%s1761_s0 + $0xf4] sm:$0xf0]  ;;  %v946_v32 = vor.u32 %v1152_v25, %v945_v24 }
  0x23   :  { %v1018_v33 = vor.u32 %v1170_v27, %v1017_v26 }
  0x31   :  { %374 = vmatmul.bf16.gmra.mxu0 %v906_v36  ;;  %419 = vmatmul.bf16.gmra.mxu2 %v978_v37  ;;  %v953_v36 = vld [vmem:[%s1761_s0 + $0x70] sm:$0xf]  ;;  %v1154_v37 = vld [vmem:[%s1761_s0 + $0x74] sm:$0xf0] }
  0x32   :  { %473 = vmatmul.bf16.gmra.mxu1 %v910_v38  ;;  %518 = vmatmul.bf16.gmra.mxu3 %v982_v39  ;;  %v1025_v38 = vld [vmem:[%s1761_s0 + $0x100] sm:$0xf]  ;;  %v1172_v39 = vld [vmem:[%s1761_s0 + $0x104] sm:$0xf0]  ;;  %v954_v44 = vor.u32 %v1154_v37, %v953_v36 }
  0x33   :  { %v1026_v45 = vor.u32 %v1172_v39, %v1025_v38 }
  0x41   :  { %379 = vmatmul.bf16.gmra.mxu0 %v914_v48  ;;  %424 = vmatmul.bf16.gmra.mxu2 %v986_v49  ;;  %v961_v48 = vld [vmem:[%s1761_s0 + $0x80] sm:$0xf]  ;;  %v1156_v49 = vld [vmem:[%s1761_s0 + $0x84] sm:$0xf0] }
  0x42   :  { %478 = vmatmul.bf16.gmra.mxu1 %v918_v50  ;;  %523 = vmatmul.bf16.gmra.mxu3 %v990_v51  ;;  %v1033_v50 = vld [vmem:[%s1761_s0 + $0x110] sm:$0xf]  ;;  %v1174_v51 = vld [vmem:[%s1761_s0 + $0x114] sm:$0xf0]  ;;  %v962_v56 = vor.u32 %v1156_v49, %v961_v48 }
  0x43   :  { %v1034_v57 = vor.u32 %v1174_v51, %v1033_v50 }
  0x51   :  { %384 = vmatmul.bf16.gmra.mxu0 %v922_v60  ;;  %429 = vmatmul.bf16.gmra.mxu2 %v994_v61  ;;  %v966_v60 = vor.u32 %v1155_v52, %v963_v53  ;;  %v1038_v61 = vor.u32 %v1173_v54, %v1035_v55 }
  0x52   :  { %483 = vmatmul.bf16.gmra.mxu1 %v926_v62  ;;  %528 = vmatmul.bf16.gmra.mxu3 %v998_v63 }
  0x61   :  { %389 = vmatmul.bf16.gmra.mxu0 %v930_v8  ;;  %434 = vmatmul.bf16.gmra.mxu2 %v1002_v9 }
  0x62   :  { %488 = vmatmul.bf16.gmra.mxu1 %v934_v10  ;;  %533 = vmatmul.bf16.gmra.mxu3 %v1006_v11 }
  0x71   :  { %394 = vmatmul.bf16.gmra.mxu0 %v938_v20  ;;  %439 = vmatmul.bf16.gmra.mxu2 %v1010_v21 }
  0x72   :  { %493 = vmatmul.bf16.gmra.mxu1 %v942_v22  ;;  %538 = vmatmul.bf16.gmra.mxu3 %v1014_v23 }
  0x81   :  { %399 = vmatmul.bf16.gmra.mxu0 %v946_v32  ;;  %444 = vmatmul.bf16.gmra.mxu2 %v1018_v33 }
  0x82   :  { %498 = vmatmul.bf16.gmra.mxu1 %v950_v34  ;;  %543 = vmatmul.bf16.gmra.mxu3 %v1022_v35 }
  0x91   :  { %404 = vmatmul.bf16.gmra.mxu0 %v954_v44  ;;  %449 = vmatmul.bf16.gmra.mxu2 %v1026_v45 }
  0x92   :  { %503 = vmatmul.bf16.gmra.mxu1 %v958_v46  ;;  %548 = vmatmul.bf16.gmra.mxu3 %v1030_v47 }
  0x9e   :  { %v370_v58 = vpop.f32.mrf.mxu0 }
  0x9f   :  { %v469_v62 = vpop.f32.mrf.mxu1 }
  0xa0   :  { %v470_v63 = vadd.f32 %v469_v62, %v370_v58 }
  0xa1   :  { %409 = vmatmul.bf16.gmra.mxu0 %v962_v56  ;;  %454 = vmatmul.bf16.gmra.mxu2 %v1034_v57 }
  0xa2   :  { %v563_v1 = vmul.f32 %v1573_v59, %v470_v63  ;;  %508 = vmatmul.bf16.gmra.mxu1 %v966_v60  ;;  %553 = vmatmul.bf16.gmra.mxu3 %v1038_v61 }
  0xa4   :  { %v603_v2 = vadd.f32 %v1578_v0, %v563_v1  ;;  %v415_v3 = vpop.f32.mrf.mxu2 }
  0xa5   :  { %v514_v4 = vpop.f32.mrf.mxu3 }
  0xa6   :  { %v675_v5 = vmin.f32 %v603_v2, 0.0  ;;  %v515_v6 = vadd.f32 %v514_v4, %v415_v3  ;;  %v372_v7 = vpop.f32.mrf.mxu0  ;;  %vm639_vm0 = vcmp.gt.f32.partialorder %v603_v2, 0.0 }
  0xa7   :  { %v471_v8 = vpop.f32.mrf.mxu1 }
  0xa8   :  { %v711_v9 = vmul.f32 1.442695, %v675_v5  ;;  %v581_v10 = vmul.f32 %v1573_v59, %v515_v6  ;;  %v472_v11 = vadd.f32 %v471_v8, %v372_v7 }
  0xaa   :  { %1209 = vpow2.f32 %v711_v9  ;;  %v621_v12 = vadd.f32 %v1578_v0, %v581_v10  ;;  %v564_v13 = vmul.f32 %v1573_v59, %v472_v11 }
  0xac   :  { %v693_v14 = vmin.f32 %v621_v12, 0.0  ;;  %v604_v15 = vadd.f32 %v1578_v0, %v564_v13  ;;  %v417_v16 = vpop.f32.mrf.mxu2  ;;  %vm657_vm1 = vcmp.gt.f32.partialorder %v621_v12, 0.0 }
  0xad   :  { %v516_v17 = vpop.f32.mrf.mxu3 }
  0xae   :  { %v747_v18 = vmul.f32 1.442695, %v693_v14  ;;  %v676_v19 = vmin.f32 %v604_v15, 0.0  ;;  %v517_v20 = vadd.f32 %v516_v17, %v417_v16  ;;  %v375_v21 = vpop.f32.mrf.mxu0  ;;  %vm640_vm2 = vcmp.gt.f32.partialorder %v604_v15, 0.0 }
  0xaf   :  { %v474_v22 = vpop.f32.mrf.mxu1 }
  0xb0   :  { %v1210_v23 = vpop.eup %1209  ;;  %1211 = vpow2.f32 %v747_v18  ;;  %v713_v24 = vmul.f32 1.442695, %v676_v19  ;;  %v582_v25 = vmul.f32 %v1573_v59, %v517_v20  ;;  %v475_v26 = vadd.f32 %v474_v22, %v375_v21 }
  0xb1   :  { %v1103_v27 = vadd.f32 -1.0, %v1210_v23 }
  0xb2   :  { %1213 = vpow2.f32 %v713_v24  ;;  %v622_v28 = vadd.f32 %v1578_v0, %v582_v25  ;;  %v565_v29 = vmul.f32 %v1573_v59, %v475_v26 }
  0xb3   :  { %v819_v30 = vsel %vm639_vm0, %v603_v2, %v1103_v27 }
  0xb4   :  { %855 = vst [vmem:[%s1764_s4] sm:$0xff] %v819_v30  ;;  %v694_v31 = vmin.f32 %v622_v28, 0.0  ;;  %v605_v32 = vadd.f32 %v1578_v0, %v565_v29  ;;  %v420_v33 = vpop.f32.mrf.mxu2  ;;  %vm658_vm3 = vcmp.gt.f32.partialorder %v622_v28, 0.0 }
  0xb5   :  { %v519_v34 = vpop.f32.mrf.mxu3 }
  0xb6   :  { %v1212_v35 = vpop.eup %1211  ;;  %v749_v36 = vmul.f32 1.442695, %v694_v31  ;;  %v677_v37 = vmin.f32 %v605_v32, 0.0  ;;  %v520_v38 = vadd.f32 %v519_v34, %v420_v33  ;;  %v377_v39 = vpop.f32.mrf.mxu0  ;;  %vm641_vm4 = vcmp.gt.f32.partialorder %v605_v32, 0.0 }
  0xb7   :  { %v1121_v40 = vadd.f32 -1.0, %v1212_v35  ;;  %v476_v41 = vpop.f32.mrf.mxu1 }
  0xb8   :  { %v1214_v42 = vpop.eup %1213  ;;  %1215 = vpow2.f32 %v749_v36  ;;  %v715_v43 = vmul.f32 1.442695, %v677_v37  ;;  %v583_v44 = vmul.f32 %v1573_v59, %v520_v38  ;;  %v477_v45 = vadd.f32 %v476_v41, %v377_v39 }
  0xb9   :  { %v837_v46 = vsel %vm657_vm1, %v621_v12, %v1121_v40  ;;  %v1104_v47 = vadd.f32 -1.0, %v1214_v42 }
  0xba   :  { %873 = vst [vmem:[%s1764_s4 + $0x90] sm:$0xff] %v837_v46  ;;  %1217 = vpow2.f32 %v715_v43  ;;  %v623_v48 = vadd.f32 %v1578_v0, %v583_v44  ;;  %v566_v49 = vmul.f32 %v1573_v59, %v477_v45 }
  0xbb   :  { %v820_v50 = vsel %vm640_vm2, %v604_v15, %v1104_v47 }
  0xbc   :  { %856 = vst [vmem:[%s1764_s4 + $0x8] sm:$0xff] %v820_v50  ;;  %v695_v51 = vmin.f32 %v623_v48, 0.0  ;;  %v606_v52 = vadd.f32 %v1578_v0, %v566_v49  ;;  %v422_v53 = vpop.f32.mrf.mxu2  ;;  %vm659_vm5 = vcmp.gt.f32.partialorder %v623_v48, 0.0 }
  0xbd   :  { %v521_v54 = vpop.f32.mrf.mxu3 }
  0xbe   :  { %v1216_v55 = vpop.eup %1215  ;;  %v751_v56 = vmul.f32 1.442695, %v695_v51  ;;  %v678_v57 = vmin.f32 %v606_v52, 0.0  ;;  %v522_v58 = vadd.f32 %v521_v54, %v422_v53  ;;  %v380_v60 = vpop.f32.mrf.mxu0  ;;  %vm642_vm6 = vcmp.gt.f32.partialorder %v606_v52, 0.0 }
  0xbf   :  { %v1122_v61 = vadd.f32 -1.0, %v1216_v55  ;;  %v479_v62 = vpop.f32.mrf.mxu1 }
  0xc0   :  { %v1218_v63 = vpop.eup %1217  ;;  %1219 = vpow2.f32 %v751_v56  ;;  %v717_v1 = vmul.f32 1.442695, %v678_v57  ;;  %v584_v2 = vmul.f32 %v1573_v59, %v522_v58  ;;  %v480_v3 = vadd.f32 %v479_v62, %v380_v60 }
  0xc1   :  { %v838_v4 = vsel %vm658_vm3, %v622_v28, %v1122_v61  ;;  %v1105_v5 = vadd.f32 -1.0, %v1218_v63 }
  0xc2   :  { %874 = vst [vmem:[%s1764_s4 + $0x98] sm:$0xff] %v838_v4  ;;  %1221 = vpow2.f32 %v717_v1  ;;  %v624_v6 = vadd.f32 %v1578_v0, %v584_v2  ;;  %v567_v7 = vmul.f32 %v1573_v59, %v480_v3 }
  0xc3   :  { %v821_v8 = vsel %vm641_vm4, %v605_v32, %v1105_v5 }
  0xc4   :  { %857 = vst [vmem:[%s1764_s4 + $0x10] sm:$0xff] %v821_v8  ;;  %v696_v9 = vmin.f32 %v624_v6, 0.0  ;;  %v607_v10 = vadd.f32 %v1578_v0, %v567_v7  ;;  %v425_v11 = vpop.f32.mrf.mxu2  ;;  %vm660_vm7 = vcmp.gt.f32.partialorder %v624_v6, 0.0 }
  0xc5   :  { %v524_v12 = vpop.f32.mrf.mxu3 }
  0xc6   :  { %v1220_v13 = vpop.eup %1219  ;;  %v753_v14 = vmul.f32 1.442695, %v696_v9  ;;  %v679_v15 = vmin.f32 %v607_v10, 0.0  ;;  %v525_v16 = vadd.f32 %v524_v12, %v425_v11  ;;  %v382_v17 = vpop.f32.mrf.mxu0  ;;  %vm643_vm8 = vcmp.gt.f32.partialorder %v607_v10, 0.0 }
  0xc7   :  { %v1123_v18 = vadd.f32 -1.0, %v1220_v13  ;;  %v481_v19 = vpop.f32.mrf.mxu1 }
  0xc8   :  { %v1222_v20 = vpop.eup %1221  ;;  %1223 = vpow2.f32 %v753_v14  ;;  %v719_v21 = vmul.f32 1.442695, %v679_v15  ;;  %v585_v22 = vmul.f32 %v1573_v59, %v525_v16  ;;  %v482_v23 = vadd.f32 %v481_v19, %v382_v17 }
  0xc9   :  { %v839_v24 = vsel %vm659_vm5, %v623_v48, %v1123_v18  ;;  %v1106_v25 = vadd.f32 -1.0, %v1222_v20 }
  0xca   :  { %875 = vst [vmem:[%s1764_s4 + $0xa0] sm:$0xff] %v839_v24  ;;  %1225 = vpow2.f32 %v719_v21  ;;  %v625_v26 = vadd.f32 %v1578_v0, %v585_v22  ;;  %v568_v27 = vmul.f32 %v1573_v59, %v482_v23 }
  0xcb   :  { %v822_v28 = vsel %vm642_vm6, %v606_v52, %v1106_v25 }
  0xcc   :  { %858 = vst [vmem:[%s1764_s4 + $0x18] sm:$0xff] %v822_v28  ;;  %v697_v29 = vmin.f32 %v625_v26, 0.0  ;;  %v608_v30 = vadd.f32 %v1578_v0, %v568_v27  ;;  %v427_v31 = vpop.f32.mrf.mxu2  ;;  %vm661_vm9 = vcmp.gt.f32.partialorder %v625_v26, 0.0 }
  0xcd   :  { %v526_v32 = vpop.f32.mrf.mxu3 }
  0xce   :  { %v1224_v33 = vpop.eup %1223  ;;  %v755_v34 = vmul.f32 1.442695, %v697_v29  ;;  %v680_v35 = vmin.f32 %v608_v30, 0.0  ;;  %v527_v36 = vadd.f32 %v526_v32, %v427_v31  ;;  %v385_v37 = vpop.f32.mrf.mxu0  ;;  %vm644_vm10 = vcmp.gt.f32.partialorder %v608_v30, 0.0 }
  0xcf   :  { %v1124_v38 = vadd.f32 -1.0, %v1224_v33  ;;  %v484_v39 = vpop.f32.mrf.mxu1 }
  0xd0   :  { %v1226_v40 = vpop.eup %1225  ;;  %1227 = vpow2.f32 %v755_v34  ;;  %v721_v41 = vmul.f32 1.442695, %v680_v35  ;;  %v586_v42 = vmul.f32 %v1573_v59, %v527_v36  ;;  %v485_v43 = vadd.f32 %v484_v39, %v385_v37 }
  0xd1   :  { %v840_v44 = vsel %vm660_vm7, %v624_v6, %v1124_v38  ;;  %v1107_v45 = vadd.f32 -1.0, %v1226_v40 }
  0xd2   :  { %876 = vst [vmem:[%s1764_s4 + $0xa8] sm:$0xff] %v840_v44  ;;  %1229 = vpow2.f32 %v721_v41  ;;  %v626_v46 = vadd.f32 %v1578_v0, %v586_v42  ;;  %v569_v47 = vmul.f32 %v1573_v59, %v485_v43 }
  0xd3   :  { %v823_v48 = vsel %vm643_vm8, %v607_v10, %v1107_v45 }
  0xd4   :  { %859 = vst [vmem:[%s1764_s4 + $0x20] sm:$0xff] %v823_v48  ;;  %v698_v49 = vmin.f32 %v626_v46, 0.0  ;;  %v609_v50 = vadd.f32 %v1578_v0, %v569_v47  ;;  %v430_v51 = vpop.f32.mrf.mxu2  ;;  %vm662_vm11 = vcmp.gt.f32.partialorder %v626_v46, 0.0 }
  0xd5   :  { %v529_v52 = vpop.f32.mrf.mxu3 }
  0xd6   :  { %v1228_v53 = vpop.eup %1227  ;;  %v757_v54 = vmul.f32 1.442695, %v698_v49  ;;  %v681_v55 = vmin.f32 %v609_v50, 0.0  ;;  %v530_v56 = vadd.f32 %v529_v52, %v430_v51  ;;  %v387_v57 = vpop.f32.mrf.mxu0  ;;  %vm645_vm12 = vcmp.gt.f32.partialorder %v609_v50, 0.0 }
  0xd7   :  { %v1125_v58 = vadd.f32 -1.0, %v1228_v53  ;;  %v486_v60 = vpop.f32.mrf.mxu1 }
  0xd8   :  { %v1230_v61 = vpop.eup %1229  ;;  %1231 = vpow2.f32 %v757_v54  ;;  %v723_v62 = vmul.f32 1.442695, %v681_v55  ;;  %v587_v63 = vmul.f32 %v1573_v59, %v530_v56  ;;  %v487_v1 = vadd.f32 %v486_v60, %v387_v57 }
  0xd9   :  { %v841_v2 = vsel %vm661_vm9, %v625_v26, %v1125_v58  ;;  %v1108_v3 = vadd.f32 -1.0, %v1230_v61 }
  0xda   :  { %877 = vst [vmem:[%s1764_s4 + $0xb0] sm:$0xff] %v841_v2  ;;  %1233 = vpow2.f32 %v723_v62  ;;  %v627_v4 = vadd.f32 %v1578_v0, %v587_v63  ;;  %v570_v5 = vmul.f32 %v1573_v59, %v487_v1 }
  0xdb   :  { %v824_v6 = vsel %vm644_vm10, %v608_v30, %v1108_v3 }
  0xdc   :  { %860 = vst [vmem:[%s1764_s4 + $0x28] sm:$0xff] %v824_v6  ;;  %v699_v7 = vmin.f32 %v627_v4, 0.0  ;;  %v610_v8 = vadd.f32 %v1578_v0, %v570_v5  ;;  %v432_v9 = vpop.f32.mrf.mxu2  ;;  %vm663_vm13 = vcmp.gt.f32.partialorder %v627_v4, 0.0 }
  0xdd   :  { %v531_v10 = vpop.f32.mrf.mxu3 }
  0xde   :  { %v1232_v11 = vpop.eup %1231  ;;  %v759_v12 = vmul.f32 1.442695, %v699_v7  ;;  %v682_v13 = vmin.f32 %v610_v8, 0.0  ;;  %v532_v14 = vadd.f32 %v531_v10, %v432_v9  ;;  %v390_v15 = vpop.f32.mrf.mxu0  ;;  %vm646_vm14 = vcmp.gt.f32.partialorder %v610_v8, 0.0 }
  0xdf   :  { %v1126_v16 = vadd.f32 -1.0, %v1232_v11  ;;  %v489_v17 = vpop.f32.mrf.mxu1 }
  0xe0   :  { %v1234_v18 = vpop.eup %1233  ;;  %1235 = vpow2.f32 %v759_v12  ;;  %v725_v19 = vmul.f32 1.442695, %v682_v13  ;;  %v588_v20 = vmul.f32 %v1573_v59, %v532_v14  ;;  %v490_v21 = vadd.f32 %v489_v17, %v390_v15 }
  0xe1   :  { %v842_v22 = vsel %vm662_vm11, %v626_v46, %v1126_v16  ;;  %v1109_v23 = vadd.f32 -1.0, %v1234_v18 }
  0xe2   :  { %878 = vst [vmem:[%s1764_s4 + $0xb8] sm:$0xff] %v842_v22  ;;  %1237 = vpow2.f32 %v725_v19  ;;  %v628_v24 = vadd.f32 %v1578_v0, %v588_v20  ;;  %v571_v25 = vmul.f32 %v1573_v59, %v490_v21 }
  0xe3   :  { %v825_v26 = vsel %vm645_vm12, %v609_v50, %v1109_v23 }
  0xe4   :  { %861 = vst [vmem:[%s1764_s4 + $0x30] sm:$0xff] %v825_v26  ;;  %v700_v27 = vmin.f32 %v628_v24, 0.0  ;;  %v611_v28 = vadd.f32 %v1578_v0, %v571_v25  ;;  %v435_v29 = vpop.f32.mrf.mxu2  ;;  %vm664_vm15 = vcmp.gt.f32.partialorder %v628_v24, 0.0 }
  0xe5   :  { %v534_v30 = vpop.f32.mrf.mxu3 }
  0xe6   :  { %v1236_v31 = vpop.eup %1235  ;;  %v761_v32 = vmul.f32 1.442695, %v700_v27  ;;  %v683_v33 = vmin.f32 %v611_v28, 0.0  ;;  %v535_v34 = vadd.f32 %v534_v30, %v435_v29  ;;  %v392_v35 = vpop.f32.mrf.mxu0  ;;  %vm647_vm0 = vcmp.gt.f32.partialorder %v611_v28, 0.0 }
  0xe7   :  { %v1127_v36 = vadd.f32 -1.0, %v1236_v31  ;;  %v491_v37 = vpop.f32.mrf.mxu1 }
  0xe8   :  { %v1238_v38 = vpop.eup %1237  ;;  %1239 = vpow2.f32 %v761_v32  ;;  %v727_v39 = vmul.f32 1.442695, %v683_v33  ;;  %v589_v40 = vmul.f32 %v1573_v59, %v535_v34  ;;  %v492_v41 = vadd.f32 %v491_v37, %v392_v35 }
  0xe9   :  { %v843_v42 = vsel %vm663_vm13, %v627_v4, %v1127_v36  ;;  %v1110_v43 = vadd.f32 -1.0, %v1238_v38 }
  0xea   :  { %879 = vst [vmem:[%s1764_s4 + $0xc0] sm:$0xff] %v843_v42  ;;  %1241 = vpow2.f32 %v727_v39  ;;  %v629_v44 = vadd.f32 %v1578_v0, %v589_v40  ;;  %v572_v45 = vmul.f32 %v1573_v59, %v492_v41 }
  0xeb   :  { %v826_v46 = vsel %vm646_vm14, %v610_v8, %v1110_v43 }
  0xec   :  { %862 = vst [vmem:[%s1764_s4 + $0x38] sm:$0xff] %v826_v46  ;;  %v701_v47 = vmin.f32 %v629_v44, 0.0  ;;  %v612_v48 = vadd.f32 %v1578_v0, %v572_v45  ;;  %v437_v49 = vpop.f32.mrf.mxu2  ;;  %vm665_vm1 = vcmp.gt.f32.partialorder %v629_v44, 0.0 }
  0xed   :  { %v536_v50 = vpop.f32.mrf.mxu3 }
  0xee   :  { %v1240_v51 = vpop.eup %1239  ;;  %v763_v52 = vmul.f32 1.442695, %v701_v47  ;;  %v684_v53 = vmin.f32 %v612_v48, 0.0  ;;  %v537_v54 = vadd.f32 %v536_v50, %v437_v49  ;;  %v395_v55 = vpop.f32.mrf.mxu0  ;;  %vm648_vm2 = vcmp.gt.f32.partialorder %v612_v48, 0.0 }
  0xef   :  { %v1128_v56 = vadd.f32 -1.0, %v1240_v51  ;;  %v494_v57 = vpop.f32.mrf.mxu1 }
  0xf0   :  { %v1242_v58 = vpop.eup %1241  ;;  %1243 = vpow2.f32 %v763_v52  ;;  %v729_v60 = vmul.f32 1.442695, %v684_v53  ;;  %v590_v61 = vmul.f32 %v1573_v59, %v537_v54  ;;  %v495_v62 = vadd.f32 %v494_v57, %v395_v55 }
  0xf1   :  { %v844_v63 = vsel %vm664_vm15, %v628_v24, %v1128_v56  ;;  %v1111_v1 = vadd.f32 -1.0, %v1242_v58 }
  0xf2   :  { %880 = vst [vmem:[%s1764_s4 + $0xc8] sm:$0xff] %v844_v63  ;;  %1245 = vpow2.f32 %v729_v60  ;;  %v630_v2 = vadd.f32 %v1578_v0, %v590_v61  ;;  %v573_v3 = vmul.f32 %v1573_v59, %v495_v62 }
  0xf3   :  { %v827_v4 = vsel %vm647_vm0, %v611_v28, %v1111_v1 }
  0xf4   :  { %863 = vst [vmem:[%s1764_s4 + $0x40] sm:$0xff] %v827_v4  ;;  %v702_v5 = vmin.f32 %v630_v2, 0.0  ;;  %v613_v6 = vadd.f32 %v1578_v0, %v573_v3  ;;  %v440_v7 = vpop.f32.mrf.mxu2  ;;  %vm666_vm3 = vcmp.gt.f32.partialorder %v630_v2, 0.0 }
  0xf5   :  { %v539_v8 = vpop.f32.mrf.mxu3 }
  0xf6   :  { %v1244_v9 = vpop.eup %1243  ;;  %v765_v10 = vmul.f32 1.442695, %v702_v5  ;;  %v685_v11 = vmin.f32 %v613_v6, 0.0  ;;  %v540_v12 = vadd.f32 %v539_v8, %v440_v7  ;;  %v397_v13 = vpop.f32.mrf.mxu0  ;;  %vm649_vm4 = vcmp.gt.f32.partialorder %v613_v6, 0.0 }
  0xf7   :  { %v1129_v14 = vadd.f32 -1.0, %v1244_v9  ;;  %v496_v15 = vpop.f32.mrf.mxu1 }
  0xf8   :  { %v1246_v16 = vpop.eup %1245  ;;  %1247 = vpow2.f32 %v765_v10  ;;  %v731_v17 = vmul.f32 1.442695, %v685_v11  ;;  %v591_v18 = vmul.f32 %v1573_v59, %v540_v12  ;;  %v497_v19 = vadd.f32 %v496_v15, %v397_v13 }
  0xf9   :  { %v845_v20 = vsel %vm665_vm1, %v629_v44, %v1129_v14  ;;  %v1112_v21 = vadd.f32 -1.0, %v1246_v16 }
  0xfa   :  { %881 = vst [vmem:[%s1764_s4 + $0xd0] sm:$0xff] %v845_v20  ;;  %1249 = vpow2.f32 %v731_v17  ;;  %v631_v22 = vadd.f32 %v1578_v0, %v591_v18  ;;  %v574_v23 = vmul.f32 %v1573_v59, %v497_v19 }
  0xfb   :  { %v828_v24 = vsel %vm648_vm2, %v612_v48, %v1112_v21 }
  0xfc   :  { %864 = vst [vmem:[%s1764_s4 + $0x48] sm:$0xff] %v828_v24  ;;  %v703_v25 = vmin.f32 %v631_v22, 0.0  ;;  %v614_v26 = vadd.f32 %v1578_v0, %v574_v23  ;;  %v442_v27 = vpop.f32.mrf.mxu2  ;;  %vm667_vm5 = vcmp.gt.f32.partialorder %v631_v22, 0.0 }
  0xfd   :  { %v541_v28 = vpop.f32.mrf.mxu3 }
  0xfe   :  { %v1248_v29 = vpop.eup %1247  ;;  %v767_v30 = vmul.f32 1.442695, %v703_v25  ;;  %v686_v31 = vmin.f32 %v614_v26, 0.0  ;;  %v542_v32 = vadd.f32 %v541_v28, %v442_v27  ;;  %v400_v33 = vpop.f32.mrf.mxu0  ;;  %vm650_vm6 = vcmp.gt.f32.partialorder %v614_v26, 0.0 }
  0xff   :  { %v1130_v34 = vadd.f32 -1.0, %v1248_v29  ;;  %v499_v35 = vpop.f32.mrf.mxu1 }
 0x100   :  { %v1250_v36 = vpop.eup %1249  ;;  %1251 = vpow2.f32 %v767_v30  ;;  %v733_v37 = vmul.f32 1.442695, %v686_v31  ;;  %v592_v38 = vmul.f32 %v1573_v59, %v542_v32  ;;  %v500_v39 = vadd.f32 %v499_v35, %v400_v33 }
 0x101   :  { %v846_v40 = vsel %vm666_vm3, %v630_v2, %v1130_v34  ;;  %v1113_v41 = vadd.f32 -1.0, %v1250_v36 }
 0x102   :  { %882 = vst [vmem:[%s1764_s4 + $0xd8] sm:$0xff] %v846_v40  ;;  %1253 = vpow2.f32 %v733_v37  ;;  %v632_v42 = vadd.f32 %v1578_v0, %v592_v38  ;;  %v575_v43 = vmul.f32 %v1573_v59, %v500_v39 }
 0x103   :  { %v829_v44 = vsel %vm649_vm4, %v613_v6, %v1113_v41 }
 0x104   :  { %865 = vst [vmem:[%s1764_s4 + $0x50] sm:$0xff] %v829_v44  ;;  %v704_v45 = vmin.f32 %v632_v42, 0.0  ;;  %v615_v46 = vadd.f32 %v1578_v0, %v575_v43  ;;  %v445_v47 = vpop.f32.mrf.mxu2  ;;  %vm668_vm7 = vcmp.gt.f32.partialorder %v632_v42, 0.0 }
 0x105   :  { %v544_v48 = vpop.f32.mrf.mxu3 }
 0x106   :  { %v1252_v49 = vpop.eup %1251  ;;  %v769_v50 = vmul.f32 1.442695, %v704_v45  ;;  %v687_v51 = vmin.f32 %v615_v46, 0.0  ;;  %v545_v52 = vadd.f32 %v544_v48, %v445_v47  ;;  %v402_v53 = vpop.f32.mrf.mxu0  ;;  %vm651_vm8 = vcmp.gt.f32.partialorder %v615_v46, 0.0 }
 0x107   :  { %v1131_v54 = vadd.f32 -1.0, %v1252_v49  ;;  %v501_v55 = vpop.f32.mrf.mxu1 }
 0x108   :  { %v1254_v56 = vpop.eup %1253  ;;  %1255 = vpow2.f32 %v769_v50  ;;  %v735_v57 = vmul.f32 1.442695, %v687_v51  ;;  %v593_v58 = vmul.f32 %v1573_v59, %v545_v52  ;;  %v502_v60 = vadd.f32 %v501_v55, %v402_v53 }
 0x109   :  { %v847_v61 = vsel %vm667_vm5, %v631_v22, %v1131_v54  ;;  %v1114_v62 = vadd.f32 -1.0, %v1254_v56 }
 0x10a   :  { %883 = vst [vmem:[%s1764_s4 + $0xe0] sm:$0xff] %v847_v61  ;;  %1257 = vpow2.f32 %v735_v57  ;;  %v633_v63 = vadd.f32 %v1578_v0, %v593_v58  ;;  %v576_v1 = vmul.f32 %v1573_v59, %v502_v60 }
 0x10b   :  { %v830_v2 = vsel %vm650_vm6, %v614_v26, %v1114_v62 }
 0x10c   :  { %866 = vst [vmem:[%s1764_s4 + $0x58] sm:$0xff] %v830_v2  ;;  %v705_v3 = vmin.f32 %v633_v63, 0.0  ;;  %v616_v4 = vadd.f32 %v1578_v0, %v576_v1  ;;  %v447_v5 = vpop.f32.mrf.mxu2  ;;  %vm669_vm9 = vcmp.gt.f32.partialorder %v633_v63, 0.0 }
 0x10d   :  { %v546_v6 = vpop.f32.mrf.mxu3 }
 0x10e   :  { %v1256_v7 = vpop.eup %1255  ;;  %v771_v8 = vmul.f32 1.442695, %v705_v3  ;;  %v688_v9 = vmin.f32 %v616_v4, 0.0  ;;  %v547_v10 = vadd.f32 %v546_v6, %v447_v5  ;;  %v405_v11 = vpop.f32.mrf.mxu0  ;;  %vm652_vm10 = vcmp.gt.f32.partialorder %v616_v4, 0.0 }
 0x10f   :  { %v1132_v12 = vadd.f32 -1.0, %v1256_v7  ;;  %v504_v13 = vpop.f32.mrf.mxu1 }
 0x110   :  { %v1258_v14 = vpop.eup %1257  ;;  %1259 = vpow2.f32 %v771_v8  ;;  %v737_v15 = vmul.f32 1.442695, %v688_v9  ;;  %v594_v16 = vmul.f32 %v1573_v59, %v547_v10  ;;  %v505_v17 = vadd.f32 %v504_v13, %v405_v11 }
 0x111   :  { %v848_v18 = vsel %vm668_vm7, %v632_v42, %v1132_v12  ;;  %v1115_v19 = vadd.f32 -1.0, %v1258_v14 }
 0x112   :  { %884 = vst [vmem:[%s1764_s4 + $0xe8] sm:$0xff] %v848_v18  ;;  %1261 = vpow2.f32 %v737_v15  ;;  %v634_v20 = vadd.f32 %v1578_v0, %v594_v16  ;;  %v577_v21 = vmul.f32 %v1573_v59, %v505_v17 }
 0x113   :  { %v831_v22 = vsel %vm651_vm8, %v615_v46, %v1115_v19 }
 0x114   :  { %867 = vst [vmem:[%s1764_s4 + $0x60] sm:$0xff] %v831_v22  ;;  %v706_v23 = vmin.f32 %v634_v20, 0.0  ;;  %v617_v24 = vadd.f32 %v1578_v0, %v577_v21  ;;  %v450_v25 = vpop.f32.mrf.mxu2  ;;  %vm670_vm11 = vcmp.gt.f32.partialorder %v634_v20, 0.0 }
 0x115   :  { %v549_v26 = vpop.f32.mrf.mxu3 }
 0x116   :  { %v1260_v27 = vpop.eup %1259  ;;  %v773_v28 = vmul.f32 1.442695, %v706_v23  ;;  %v689_v29 = vmin.f32 %v617_v24, 0.0  ;;  %v550_v30 = vadd.f32 %v549_v26, %v450_v25  ;;  %v407_v31 = vpop.f32.mrf.mxu0  ;;  %vm653_vm12 = vcmp.gt.f32.partialorder %v617_v24, 0.0 }
 0x117   :  { %v1133_v32 = vadd.f32 -1.0, %v1260_v27  ;;  %v506_v33 = vpop.f32.mrf.mxu1 }
 0x118   :  { %v1262_v34 = vpop.eup %1261  ;;  %1263 = vpow2.f32 %v773_v28  ;;  %v739_v35 = vmul.f32 1.442695, %v689_v29  ;;  %v595_v36 = vmul.f32 %v1573_v59, %v550_v30  ;;  %v507_v37 = vadd.f32 %v506_v33, %v407_v31 }
 0x119   :  { %v849_v38 = vsel %vm669_vm9, %v633_v63, %v1133_v32  ;;  %v1116_v39 = vadd.f32 -1.0, %v1262_v34 }
 0x11a   :  { %885 = vst [vmem:[%s1764_s4 + $0xf0] sm:$0xff] %v849_v38  ;;  %1265 = vpow2.f32 %v739_v35  ;;  %v635_v40 = vadd.f32 %v1578_v0, %v595_v36  ;;  %v578_v41 = vmul.f32 %v1573_v59, %v507_v37 }
 0x11b   :  { %v832_v42 = vsel %vm652_vm10, %v616_v4, %v1116_v39 }
 0x11c   :  { %868 = vst [vmem:[%s1764_s4 + $0x68] sm:$0xff] %v832_v42  ;;  %v707_v43 = vmin.f32 %v635_v40, 0.0  ;;  %v618_v44 = vadd.f32 %v1578_v0, %v578_v41  ;;  %v452_v45 = vpop.f32.mrf.mxu2  ;;  %vm671_vm13 = vcmp.gt.f32.partialorder %v635_v40, 0.0 }
 0x11d   :  { %v551_v46 = vpop.f32.mrf.mxu3 }
 0x11e   :  { %v1264_v47 = vpop.eup %1263  ;;  %v775_v48 = vmul.f32 1.442695, %v707_v43  ;;  %v690_v49 = vmin.f32 %v618_v44, 0.0  ;;  %v552_v50 = vadd.f32 %v551_v46, %v452_v45  ;;  %v410_v51 = vpop.f32.mrf.mxu0  ;;  %vm654_vm14 = vcmp.gt.f32.partialorder %v618_v44, 0.0 }
 0x11f   :  { %v1134_v52 = vadd.f32 -1.0, %v1264_v47  ;;  %v509_v53 = vpop.f32.mrf.mxu1 }
 0x120   :  { %v1266_v54 = vpop.eup %1265  ;;  %1267 = vpow2.f32 %v775_v48  ;;  %v741_v55 = vmul.f32 1.442695, %v690_v49  ;;  %v596_v56 = vmul.f32 %v1573_v59, %v552_v50  ;;  %v510_v57 = vadd.f32 %v509_v53, %v410_v51 }
 0x121   :  { %v850_v58 = vsel %vm670_vm11, %v634_v20, %v1134_v52  ;;  %v1117_v60 = vadd.f32 -1.0, %v1266_v54 }
 0x122   :  { %886 = vst [vmem:[%s1764_s4 + $0xf8] sm:$0xff] %v850_v58  ;;  %1269 = vpow2.f32 %v741_v55  ;;  %v636_v61 = vadd.f32 %v1578_v0, %v596_v56  ;;  %v579_v62 = vmul.f32 %v1573_v59, %v510_v57 }
 0x123   :  { %v833_v63 = vsel %vm653_vm12, %v617_v24, %v1117_v60 }
 0x124   :  { %869 = vst [vmem:[%s1764_s4 + $0x70] sm:$0xff] %v833_v63  ;;  %v708_v1 = vmin.f32 %v636_v61, 0.0  ;;  %v619_v2 = vadd.f32 %v1578_v0, %v579_v62  ;;  %v455_v3 = vpop.f32.mrf.mxu2  ;;  %vm672_vm15 = vcmp.gt.f32.partialorder %v636_v61, 0.0 }
 0x125   :  { %v554_v4 = vpop.f32.mrf.mxu3 }
 0x126   :  { %v1268_v5 = vpop.eup %1267  ;;  %v777_v6 = vmul.f32 1.442695, %v708_v1  ;;  %v691_v7 = vmin.f32 %v619_v2, 0.0  ;;  %v555_v8 = vadd.f32 %v554_v4, %v455_v3  ;;  %v412_v9 = vpop.f32.mrf.mxu0  ;;  %vm655_vm0 = vcmp.gt.f32.partialorder %v619_v2, 0.0 }
 0x127   :  { %v1135_v10 = vadd.f32 -1.0, %v1268_v5  ;;  %v511_v11 = vpop.f32.mrf.mxu1 }
 0x128   :  { %v1270_v12 = vpop.eup %1269  ;;  %1271 = vpow2.f32 %v777_v6  ;;  %v743_v13 = vmul.f32 1.442695, %v691_v7  ;;  %v597_v14 = vmul.f32 %v1573_v59, %v555_v8  ;;  %v512_v15 = vadd.f32 %v511_v11, %v412_v9 }
 0x129   :  { %v851_v16 = vsel %vm671_vm13, %v635_v40, %v1135_v10  ;;  %v1118_v17 = vadd.f32 -1.0, %v1270_v12 }
 0x12a   :  { %887 = vst [vmem:[%s1764_s4 + $0x100] sm:$0xff] %v851_v16  ;;  %1273 = vpow2.f32 %v743_v13  ;;  %v637_v18 = vadd.f32 %v1578_v0, %v597_v14  ;;  %v580_v19 = vmul.f32 %v1573_v59, %v512_v15 }
 0x12b   :  { %v834_v20 = vsel %vm654_vm14, %v618_v44, %v1118_v17 }
 0x12c   :  { %870 = vst [vmem:[%s1764_s4 + $0x78] sm:$0xff] %v834_v20  ;;  %v709_v21 = vmin.f32 %v637_v18, 0.0  ;;  %v620_v22 = vadd.f32 %v1578_v0, %v580_v19  ;;  %v457_v23 = vpop.f32.mrf.mxu2  ;;  %vm673_vm1 = vcmp.gt.f32.partialorder %v637_v18, 0.0 }
 0x12d   :  { %v556_v24 = vpop.f32.mrf.mxu3 }
 0x12e   :  { %v1272_v25 = vpop.eup %1271  ;;  %v779_v26 = vmul.f32 1.442695, %v709_v21  ;;  %v692_v27 = vmin.f32 %v620_v22, 0.0  ;;  %v557_v28 = vadd.f32 %v556_v24, %v457_v23  ;;  %vm656_vm2 = vcmp.gt.f32.partialorder %v620_v22, 0.0 }
 0x12f   :  { %v1136_v29 = vadd.f32 -1.0, %v1272_v25 }
 0x130   :  { %v1274_v30 = vpop.eup %1273  ;;  %1275 = vpow2.f32 %v779_v26  ;;  %v745_v31 = vmul.f32 1.442695, %v692_v27  ;;  %v598_v32 = vmul.f32 %v1573_v59, %v557_v28 }
 0x131   :  { %v852_v33 = vsel %vm672_vm15, %v636_v61, %v1136_v29  ;;  %v1119_v34 = vadd.f32 -1.0, %v1274_v30 }
 0x132   :  { %888 = vst [vmem:[%s1764_s4 + $0x108] sm:$0xff] %v852_v33  ;;  %1277 = vpow2.f32 %v745_v31  ;;  %v638_v35 = vadd.f32 %v1578_v0, %v598_v32 }
 0x133   :  { %v835_v36 = vsel %vm655_vm0, %v619_v2, %v1119_v34 }
 0x134   :  { %871 = vst [vmem:[%s1764_s4 + $0x80] sm:$0xff] %v835_v36  ;;  %v710_v37 = vmin.f32 %v638_v35, 0.0  ;;  %vm674_vm3 = vcmp.gt.f32.partialorder %v638_v35, 0.0 }
 0x136   :  { %v1276_v38 = vpop.eup %1275  ;;  %v781_v39 = vmul.f32 1.442695, %v710_v37 }
 0x137   :  { %v1137_v40 = vadd.f32 -1.0, %v1276_v38 }
 0x138   :  { %v1278_v59 = vpop.eup %1277  ;;  %1279 = vpow2.f32 %v781_v39 }
 0x139   :  { %v853_v41 = vsel %vm673_vm1, %v637_v18, %v1137_v40  ;;  %v1120_v42 = vadd.f32 -1.0, %v1278_v59 }
 0x13a   :  { %889 = vst [vmem:[%s1764_s4 + $0x110] sm:$0xff] %v853_v41 }
 0x13b   :  { %v836_v0 = vsel %vm656_vm2, %v620_v22, %v1120_v42 }
 0x13c   :  { %872 = vst [vmem:[%s1764_s4 + $0x88] sm:$0xff] %v836_v0 }
 0x13e   :  { %v1280_v43 = vpop.eup %1279 }
 0x13f   :  { %v1138_v44 = vadd.f32 -1.0, %v1280_v43 }
 0x141   :  { %v854_v45 = vsel %vm674_vm3, %v638_v35, %v1138_v44 }
 0x142   :  { %890 = vst [vmem:[%s1764_s4 + $0x118] sm:$0xff] %v854_v45 }

// kernel: _lambda_.8
= control target key start
LH: loop header
LB: loop body
LE: loop exit
PB: predicated region body
PF: predicated region fallthrough
CT: control target
= control target key end

     0   :  { %s502_s1 = inlined_call_operand.vmem [shape: bf16[128,128], index: 1, kind: input, shape index: {}]   ;;  %s503_s2 = inlined_call_operand.vmem [shape: f32[1,128], index: 2, kind: input, shape index: {}]   ;;  %s504_s3 = inlined_call_operand.vmem [shape: f32[1,128], index: 3, kind: input, shape index: {}]   ;;  %s505_s0 = inlined_call_operand.vmem [shape: bf16[80,128], index: 0, kind: input, shape index: {}]   ;;  %s506_s4 = inlined_call_operand.vmem [shape: f32[80,128], index: 4, kind: output, shape index: {}]  }
   0x1   :  { %v331_v0 = vld [vmem:[%s502_s1 + $0x38] sm:$0xff]  ;;  %v330_v1 = vld [vmem:[%s502_s1 + $0x30] sm:$0xff]  ;;  %v329_v2 = vld [vmem:[%s502_s1 + $0x28] sm:$0xff] }
   0x2   :  { %333 = vmatpush.bf16.msra.mxu2 %v331_v0  ;;  %334 = vmatpush.bf16.msra.mxu3 %v331_v0  ;;  %v328_v3 = vld [vmem:[%s502_s1 + $0x20] sm:$0xff]  ;;  %v327_v4 = vld [vmem:[%s502_s1 + $0x18] sm:$0xff]  ;;  %v326_v5 = vld [vmem:[%s502_s1 + $0x10] sm:$0xff] }
   0x3   :  { %121 = vmatpush.bf16.msra.mxu0 %v331_v0  ;;  %332 = vmatpush.bf16.msra.mxu1 %v331_v0  ;;  %v325_v6 = vld [vmem:[%s502_s1 + $0x8] sm:$0xff]  ;;  %v324_v7 = vld [vmem:[%s502_s1] sm:$0xff]  ;;  %v321_v8 = vld [vmem:[%s505_s0 + $0x10] sm:$0xff] }
   0x4   :  { %v322_v9 = vld [vmem:[%s505_s0 + $0x18] sm:$0xff]  ;;  %v319_v10 = vld [vmem:[%s505_s0] sm:$0xff]  ;;  %v320_v11 = vld [vmem:[%s505_s0 + $0x8] sm:$0xff] }
   0x5   :  { %v323_v12 = vld [vmem:[%s505_s0 + $0x20] sm:$0xff] }
   0x6   :  { %336 = vmatpush.bf16.msra.mxu2 %v330_v1  ;;  %337 = vmatpush.bf16.msra.mxu3 %v330_v1  ;;  %v445_v13 = vld [vmem:[%s503_s2] ss:$0 sm:$0xff] }
   0x7   :  { %122 = vmatpush.bf16.msra.mxu0 %v330_v1  ;;  %335 = vmatpush.bf16.msra.mxu1 %v330_v1  ;;  %v451_v17 = vld [vmem:[%s504_s3] ss:$0 sm:$0xff] }
   0xa   :  { %339 = vmatpush.bf16.msra.mxu2 %v329_v2  ;;  %340 = vmatpush.bf16.msra.mxu3 %v329_v2 }
   0xb   :  { %123 = vmatpush.bf16.msra.mxu0 %v329_v2  ;;  %338 = vmatpush.bf16.msra.mxu1 %v329_v2 }
   0xe   :  { %342 = vmatpush.bf16.msra.mxu2 %v328_v3  ;;  %343 = vmatpush.bf16.msra.mxu3 %v328_v3 }
   0xf   :  { %124 = vmatpush.bf16.msra.mxu0 %v328_v3  ;;  %341 = vmatpush.bf16.msra.mxu1 %v328_v3 }
  0x12   :  { %345 = vmatpush.bf16.msra.mxu2 %v327_v4  ;;  %346 = vmatpush.bf16.msra.mxu3 %v327_v4 }
  0x13   :  { %125 = vmatpush.bf16.msra.mxu0 %v327_v4  ;;  %344 = vmatpush.bf16.msra.mxu1 %v327_v4 }
  0x16   :  { %348 = vmatpush.bf16.msra.mxu2 %v326_v5  ;;  %349 = vmatpush.bf16.msra.mxu3 %v326_v5 }
  0x17   :  { %126 = vmatpush.bf16.msra.mxu0 %v326_v5  ;;  %347 = vmatpush.bf16.msra.mxu1 %v326_v5 }
  0x1a   :  { %351 = vmatpush.bf16.msra.mxu2 %v325_v6  ;;  %352 = vmatpush.bf16.msra.mxu3 %v325_v6 }
  0x1b   :  { %127 = vmatpush.bf16.msra.mxu0 %v325_v6  ;;  %350 = vmatpush.bf16.msra.mxu1 %v325_v6 }
  0x1e   :  { %354 = vmatpush.bf16.msra.mxu2 %v324_v7  ;;  %355 = vmatpush.bf16.msra.mxu3 %v324_v7 }
  0x1f   :  { %128 = vmatpush.bf16.msra.mxu0 %v324_v7  ;;  %353 = vmatpush.bf16.msra.mxu1 %v324_v7 }
  0x21   :  { %139 = vmatmul.bf16.vlgmr.msra.gmra.mxu2 %v321_v8  ;;  %144 = vmatmul.bf16.vlgmr.msra.gmra.mxu3 %v322_v9 }
  0x22   :  { %129 = vmatmul.bf16.vlgmr.msra.gmra.mxu0 %v319_v10  ;;  %134 = vmatmul.bf16.vlgmr.msra.gmra.mxu1 %v320_v11 }
  0x31   :  { %149 = vmatmul.bf16.gmra.mxu3 %v323_v12 }
  0x9f   :  { %v130_v14 = vpop.f32.mrf.mxu0  ;;  %v135_v15 = vpop.f32.mrf.mxu1 }
  0xa0   :  { %v159_v16 = vmul.f32 %v445_v13, %v130_v14  ;;  %v161_v18 = vmul.f32 %v445_v13, %v135_v15 }
  0xa2   :  { %v173_v19 = vadd.f32 %v451_v17, %v159_v16  ;;  %v175_v20 = vadd.f32 %v451_v17, %v161_v18 }
  0xa4   :  { %v193_v21 = vmin.f32 %v173_v19, 0.0  ;;  %v195_v22 = vmin.f32 %v175_v20, 0.0  ;;  %v140_v23 = vpop.f32.mrf.mxu2  ;;  %v145_v24 = vpop.f32.mrf.mxu3  ;;  %vm183_vm0 = vcmp.gt.f32.partialorder %v173_v19, 0.0  ;;  %vm185_vm1 = vcmp.gt.f32.partialorder %v175_v20, 0.0 }
  0xa5   :  { %v163_v25 = vmul.f32 %v445_v13, %v140_v23  ;;  %v165_v26 = vmul.f32 %v445_v13, %v145_v24 }
  0xa6   :  { %v203_v27 = vmul.f32 1.442695, %v193_v21  ;;  %v207_v28 = vmul.f32 1.442695, %v195_v22 }
  0xa7   :  { %v177_v29 = vadd.f32 %v451_v17, %v163_v25  ;;  %v179_v30 = vadd.f32 %v451_v17, %v165_v26  ;;  %v132_v31 = vpop.f32.mrf.mxu0  ;;  %v137_v32 = vpop.f32.mrf.mxu1 }
  0xa8   :  { %358 = vpow2.f32 %v203_v27  ;;  %v160_v33 = vmul.f32 %v445_v13, %v132_v31  ;;  %v162_v34 = vmul.f32 %v445_v13, %v137_v32 }
  0xa9   :  { %360 = vpow2.f32 %v207_v28  ;;  %v197_v35 = vmin.f32 %v177_v29, 0.0  ;;  %v199_v36 = vmin.f32 %v179_v30, 0.0  ;;  %vm187_vm2 = vcmp.gt.f32.partialorder %v177_v29, 0.0 }
  0xaa   :  { %v174_v37 = vadd.f32 %v451_v17, %v160_v33  ;;  %v176_v38 = vadd.f32 %v451_v17, %v162_v34  ;;  %vm189_vm3 = vcmp.gt.f32.partialorder %v179_v30, 0.0 }
  0xab   :  { %v211_v39 = vmul.f32 1.442695, %v197_v35  ;;  %v215_v40 = vmul.f32 1.442695, %v199_v36 }
  0xac   :  { %v194_v41 = vmin.f32 %v174_v37, 0.0  ;;  %v142_v42 = vpop.f32.mrf.mxu2  ;;  %v147_v43 = vpop.f32.mrf.mxu3  ;;  %v196_v44 = vmin.f32 %v176_v38, 0.0  ;;  %vm184_vm4 = vcmp.gt.f32.partialorder %v174_v37, 0.0  ;;  %vm186_vm5 = vcmp.gt.f32.partialorder %v176_v38, 0.0 }
  0xad   :  { %362 = vpow2.f32 %v211_v39  ;;  %v164_v45 = vmul.f32 %v445_v13, %v142_v42  ;;  %v166_v46 = vmul.f32 %v445_v13, %v147_v43 }
  0xae   :  { %v359_v47 = vpop.eup %358  ;;  %364 = vpow2.f32 %v215_v40  ;;  %v205_v48 = vmul.f32 1.442695, %v194_v41  ;;  %v209_v51 = vmul.f32 1.442695, %v196_v44 }
  0xaf   :  { %v361_v49 = vpop.eup %360  ;;  %v309_v50 = vadd.f32 -1.0, %v359_v47  ;;  %v178_v52 = vadd.f32 %v451_v17, %v164_v45  ;;  %v180_v53 = vadd.f32 %v451_v17, %v166_v46 }
  0xb0   :  { %v311_v54 = vadd.f32 -1.0, %v361_v49  ;;  %366 = vpow2.f32 %v205_v48 }
  0xb1   :  { %v233_v55 = vsel %vm183_vm0, %v173_v19, %v309_v50  ;;  %368 = vpow2.f32 %v209_v51  ;;  %v198_v56 = vmin.f32 %v178_v52, 0.0  ;;  %v200_v58 = vmin.f32 %v180_v53, 0.0 }
  0xb2   :  { %243 = vst [vmem:[%s506_s4] sm:$0xff] %v233_v55  ;;  %v235_v57 = vsel %vm185_vm1, %v175_v20, %v311_v54  ;;  %vm188_vm6 = vcmp.gt.f32.partialorder %v178_v52, 0.0  ;;  %vm190_vm7 = vcmp.gt.f32.partialorder %v180_v53, 0.0 }
  0xb3   :  { %v363_v59 = vpop.eup %362  ;;  %245 = vst [vmem:[%s506_s4 + $0x10] sm:$0xff] %v235_v57  ;;  %v213_v60 = vmul.f32 1.442695, %v198_v56  ;;  %v217_v63 = vmul.f32 1.442695, %v200_v58 }
  0xb4   :  { %v365_v61 = vpop.eup %364  ;;  %v313_v62 = vadd.f32 -1.0, %v363_v59  ;;  %v150_v0 = vpop.f32.mrf.mxu3 }
  0xb5   :  { %v315_v1 = vadd.f32 -1.0, %v365_v61  ;;  %370 = vpow2.f32 %v213_v60  ;;  %v167_v2 = vmul.f32 %v445_v13, %v150_v0 }
  0xb6   :  { %v367_v3 = vpop.eup %366  ;;  %v237_v4 = vsel %vm187_vm2, %v177_v29, %v313_v62  ;;  %372 = vpow2.f32 %v217_v63 }
  0xb7   :  { %v369_v5 = vpop.eup %368  ;;  %247 = vst [vmem:[%s506_s4 + $0x20] sm:$0xff] %v237_v4  ;;  %v239_v6 = vsel %vm189_vm3, %v179_v30, %v315_v1  ;;  %v310_v7 = vadd.f32 -1.0, %v367_v3  ;;  %v181_v8 = vadd.f32 %v451_v17, %v167_v2 }
  0xb8   :  { %249 = vst [vmem:[%s506_s4 + $0x30] sm:$0xff] %v239_v6  ;;  %v312_v9 = vadd.f32 -1.0, %v369_v5 }
  0xb9   :  { %v234_v10 = vsel %vm184_vm4, %v174_v37, %v310_v7  ;;  %v201_v11 = vmin.f32 %v181_v8, 0.0  ;;  %vm191_vm8 = vcmp.gt.f32.partialorder %v181_v8, 0.0 }
  0xba   :  { %244 = vst [vmem:[%s506_s4 + $0x8] sm:$0xff] %v234_v10  ;;  %v236_v12 = vsel %vm186_vm5, %v176_v38, %v312_v9 }
  0xbb   :  { %v371_v14 = vpop.eup %370  ;;  %246 = vst [vmem:[%s506_s4 + $0x18] sm:$0xff] %v236_v12  ;;  %v219_v15 = vmul.f32 1.442695, %v201_v11 }
  0xbc   :  { %v373_v16 = vpop.eup %372  ;;  %v314_v18 = vadd.f32 -1.0, %v371_v14  ;;  %v152_v19 = vpop.f32.mrf.mxu3 }
  0xbd   :  { %v316_v20 = vadd.f32 -1.0, %v373_v16  ;;  %374 = vpow2.f32 %v219_v15  ;;  %v168_v21 = vmul.f32 %v445_v13, %v152_v19 }
  0xbe   :  { %v238_v22 = vsel %vm188_vm6, %v178_v52, %v314_v18 }
  0xbf   :  { %248 = vst [vmem:[%s506_s4 + $0x28] sm:$0xff] %v238_v22  ;;  %v240_v23 = vsel %vm190_vm7, %v180_v53, %v316_v20  ;;  %v182_v24 = vadd.f32 %v451_v17, %v168_v21 }
  0xc0   :  { %250 = vst [vmem:[%s506_s4 + $0x38] sm:$0xff] %v240_v23 }
  0xc1   :  { %v202_v25 = vmin.f32 %v182_v24, 0.0  ;;  %vm192_vm9 = vcmp.gt.f32.partialorder %v182_v24, 0.0 }
  0xc3   :  { %v375_v26 = vpop.eup %374  ;;  %v221_v27 = vmul.f32 1.442695, %v202_v25 }
  0xc4   :  { %v317_v28 = vadd.f32 -1.0, %v375_v26 }
  0xc5   :  { %376 = vpow2.f32 %v221_v27 }
  0xc6   :  { %v241_v13 = vsel %vm191_vm8, %v181_v8, %v317_v28 }
  0xc7   :  { %251 = vst [vmem:[%s506_s4 + $0x40] sm:$0xff] %v241_v13 }
  0xcb   :  { %v377_v29 = vpop.eup %376 }
  0xcc   :  { %v318_v30 = vadd.f32 -1.0, %v377_v29 }
  0xce   :  { %v242_v31 = vsel %vm192_vm9, %v182_v24, %v318_v30 }
  0xcf   :  { %252 = vst [vmem:[%s506_s4 + $0x48] sm:$0xff] %v242_v31 }

// kernel: _lambda_.10
= control target key start
LH: loop header
LB: loop body
LE: loop exit
PB: predicated region body
PF: predicated region fallthrough
CT: control target
= control target key end

     0   :  { %s309_s1 = inlined_call_operand.vmem [shape: bf16[128,128], index: 1, kind: input, shape index: {}]   ;;  %s310_s2 = inlined_call_operand.vmem [shape: f32[1,128], index: 2, kind: input, shape index: {}]   ;;  %s311_s3 = inlined_call_operand.vmem [shape: f32[1,128], index: 3, kind: input, shape index: {}]   ;;  %s312_s0 = inlined_call_operand.vmem [shape: bf16[32,128], index: 0, kind: input, shape index: {}]   ;;  %s313_s4 = inlined_call_operand.vmem [shape: f32[32,128], index: 4, kind: output, shape index: {}]  }
   0x1   :  { %v217_v0 = vld [vmem:[%s309_s1 + $0x38] sm:$0xff]  ;;  %v216_v1 = vld [vmem:[%s309_s1 + $0x30] sm:$0xff]  ;;  %v215_v2 = vld [vmem:[%s309_s1 + $0x28] sm:$0xff] }
   0x2   :  { %97 = vmatpush.bf16.msra.mxu0 %v217_v0  ;;  %218 = vmatpush.bf16.msra.mxu1 %v217_v0  ;;  %v214_v3 = vld [vmem:[%s309_s1 + $0x20] sm:$0xff]  ;;  %v213_v4 = vld [vmem:[%s309_s1 + $0x18] sm:$0xff]  ;;  %v212_v5 = vld [vmem:[%s309_s1 + $0x10] sm:$0xff] }
   0x3   :  { %v211_v6 = vld [vmem:[%s309_s1 + $0x8] sm:$0xff]  ;;  %v210_v7 = vld [vmem:[%s309_s1] sm:$0xff] }
   0x4   :  { %v208_v8 = vld [vmem:[%s312_s0] sm:$0xff]  ;;  %v209_v9 = vld [vmem:[%s312_s0 + $0x8] sm:$0xff] }
   0x5   :  { %v226_v10 = vld [vmem:[%s310_s2] ss:$0 sm:$0xff] }
   0x6   :  { %98 = vmatpush.bf16.msra.mxu0 %v216_v1  ;;  %219 = vmatpush.bf16.msra.mxu1 %v216_v1  ;;  %v227_v11 = vld [vmem:[%s311_s3] ss:$0 sm:$0xff] }
   0xa   :  { %99 = vmatpush.bf16.msra.mxu0 %v215_v2  ;;  %220 = vmatpush.bf16.msra.mxu1 %v215_v2 }
   0xe   :  { %100 = vmatpush.bf16.msra.mxu0 %v214_v3  ;;  %221 = vmatpush.bf16.msra.mxu1 %v214_v3 }
  0x12   :  { %101 = vmatpush.bf16.msra.mxu0 %v213_v4  ;;  %222 = vmatpush.bf16.msra.mxu1 %v213_v4 }
  0x16   :  { %102 = vmatpush.bf16.msra.mxu0 %v212_v5  ;;  %223 = vmatpush.bf16.msra.mxu1 %v212_v5 }
  0x1a   :  { %103 = vmatpush.bf16.msra.mxu0 %v211_v6  ;;  %224 = vmatpush.bf16.msra.mxu1 %v211_v6 }
  0x1e   :  { %104 = vmatpush.bf16.msra.mxu0 %v210_v7  ;;  %225 = vmatpush.bf16.msra.mxu1 %v210_v7 }
  0x21   :  { %105 = vmatmul.bf16.vlgmr.msra.gmra.mxu0 %v208_v8  ;;  %110 = vmatmul.bf16.vlgmr.msra.gmra.mxu1 %v209_v9 }
  0x9e   :  { %v106_v12 = vpop.f32.mrf.mxu0  ;;  %v111_v13 = vpop.f32.mrf.mxu1 }
  0x9f   :  { %v120_v14 = vmul.f32 %v226_v10, %v106_v12  ;;  %v122_v15 = vmul.f32 %v226_v10, %v111_v13 }
  0xa1   :  { %v128_v16 = vadd.f32 %v227_v11, %v120_v14  ;;  %v130_v17 = vadd.f32 %v227_v11, %v122_v15 }
  0xa3   :  { %v136_v18 = vmin.f32 %v128_v16, 0.0  ;;  %v138_v19 = vmin.f32 %v130_v17, 0.0  ;;  %vm132_vm0 = vcmp.gt.f32.partialorder %v128_v16, 0.0  ;;  %vm134_vm1 = vcmp.gt.f32.partialorder %v130_v17, 0.0 }
  0xa5   :  { %v140_v20 = vmul.f32 1.442695, %v136_v18  ;;  %v144_v21 = vmul.f32 1.442695, %v138_v19 }
  0xa6   :  { %v108_v22 = vpop.f32.mrf.mxu0  ;;  %v113_v23 = vpop.f32.mrf.mxu1 }
  0xa7   :  { %228 = vpow2.f32 %v140_v20  ;;  %v121_v24 = vmul.f32 %v226_v10, %v108_v22  ;;  %v123_v25 = vmul.f32 %v226_v10, %v113_v23 }
  0xa8   :  { %230 = vpow2.f32 %v144_v21 }
  0xa9   :  { %v129_v26 = vadd.f32 %v227_v11, %v121_v24  ;;  %v131_v27 = vadd.f32 %v227_v11, %v123_v25 }
  0xab   :  { %v137_v28 = vmin.f32 %v129_v26, 0.0  ;;  %v139_v29 = vmin.f32 %v131_v27, 0.0  ;;  %vm133_vm2 = vcmp.gt.f32.partialorder %v129_v26, 0.0  ;;  %vm135_vm3 = vcmp.gt.f32.partialorder %v131_v27, 0.0 }
  0xad   :  { %v229_v30 = vpop.eup %228  ;;  %v142_v31 = vmul.f32 1.442695, %v137_v28  ;;  %v146_v32 = vmul.f32 1.442695, %v139_v29 }
  0xae   :  { %v231_v33 = vpop.eup %230  ;;  %v204_v34 = vadd.f32 -1.0, %v229_v30 }
  0xaf   :  { %v206_v35 = vadd.f32 -1.0, %v231_v33  ;;  %232 = vpow2.f32 %v142_v31 }
  0xb0   :  { %v152_v36 = vsel %vm132_vm0, %v128_v16, %v204_v34  ;;  %234 = vpow2.f32 %v146_v32 }
  0xb1   :  { %156 = vst [vmem:[%s313_s4] sm:$0xff] %v152_v36  ;;  %v154_v37 = vsel %vm134_vm1, %v130_v17, %v206_v35 }
  0xb2   :  { %158 = vst [vmem:[%s313_s4 + $0x10] sm:$0xff] %v154_v37 }
  0xb5   :  { %v233_v38 = vpop.eup %232 }
  0xb6   :  { %v235_v39 = vpop.eup %234  ;;  %v205_v40 = vadd.f32 -1.0, %v233_v38 }
  0xb7   :  { %v207_v41 = vadd.f32 -1.0, %v235_v39 }
  0xb8   :  { %v153_v42 = vsel %vm133_vm2, %v129_v26, %v205_v40 }
  0xb9   :  { %157 = vst [vmem:[%s313_s4 + $0x8] sm:$0xff] %v153_v42  ;;  %v155_v43 = vsel %vm135_vm3, %v131_v27, %v207_v41 }
  0xba   :  { %159 = vst [vmem:[%s313_s4 + $0x18] sm:$0xff] %v155_v43 }

// kernel: _lambda_.11
= control target key start
LH: loop header
LB: loop body
LE: loop exit
PB: predicated region body
PF: predicated region fallthrough
CT: control target
= control target key end

     0   :  { %s576_s1 = inlined_call_operand.vmem [shape: bf16[256,128], index: 1, kind: input, shape index: {}]   ;;  %s577_s3 = inlined_call_operand.vmem [shape: bf16[128,128], index: 3, kind: input, shape index: {}]   ;;  %s578_s2 = inlined_call_operand.vmem [shape: f32[1,128], index: 2, kind: input, shape index: {}]   ;;  %s579_s0 = inlined_call_operand.vmem [shape: bf16[16,256], index: 0, kind: input, shape index: {}]   ;;  %s580_s4 = inlined_call_operand.vmem [shape: f32[1,128], index: 4, kind: input, shape index: {}]   ;;  %s581_s5 = inlined_call_operand.vmem [shape: f32[16,128], index: 5, kind: output, shape index: {0}]   ;;  %s582_s6 = inlined_call_operand.vmem [shape: f32[16,128], index: 6, kind: output, shape index: {1}]  }
   0x1   :  { %v416_v0 = vld [vmem:[%s576_s1 + $0x38] sm:$0xff]  ;;  %v415_v2 = vld [vmem:[%s576_s1 + $0x30] sm:$0xff]  ;;  %v414_v4 = vld [vmem:[%s576_s1 + $0x28] sm:$0xff] }
   0x2   :  { %v424_v1 = vld [vmem:[%s576_s1 + $0x78] sm:$0xff]  ;;  %166 = vmatpush.bf16.msra.mxu0 %v416_v0  ;;  %v423_v3 = vld [vmem:[%s576_s1 + $0x70] sm:$0xff]  ;;  %v422_v5 = vld [vmem:[%s576_s1 + $0x68] sm:$0xff] }
   0x3   :  { %180 = vmatpush.bf16.msra.mxu1 %v424_v1  ;;  %v432_v6 = vld [vmem:[%s577_s3 + $0x38] sm:$0xff]  ;;  %v413_v7 = vld [vmem:[%s576_s1 + $0x20] sm:$0xff]  ;;  %v411_v11 = vld [vmem:[%s576_s1 + $0x10] sm:$0xff] }
   0x4   :  { %277 = vmatpush.bf16.msra.mxu2 %v432_v6  ;;  %v421_v8 = vld [vmem:[%s576_s1 + $0x60] sm:$0xff]  ;;  %v412_v9 = vld [vmem:[%s576_s1 + $0x18] sm:$0xff]  ;;  %v419_v12 = vld [vmem:[%s576_s1 + $0x50] sm:$0xff] }
   0x5   :  { %v420_v10 = vld [vmem:[%s576_s1 + $0x58] sm:$0xff]  ;;  %v410_v13 = vld [vmem:[%s576_s1 + $0x8] sm:$0xff]  ;;  %v409_v15 = vld [vmem:[%s576_s1] sm:$0xff] }
   0x6   :  { %167 = vmatpush.bf16.msra.mxu0 %v415_v2  ;;  %v418_v14 = vld [vmem:[%s576_s1 + $0x48] sm:$0xff]  ;;  %v417_v16 = vld [vmem:[%s576_s1 + $0x40] sm:$0xff]  ;;  %v431_v23 = vld [vmem:[%s577_s3 + $0x30] sm:$0xff] }
   0x7   :  { %181 = vmatpush.bf16.msra.mxu1 %v423_v3  ;;  %v303_v17 = vld [vmem:[%s579_s0] sm:$0xf]  ;;  %v408_v18 = vld [vmem:[%s579_s0 + $0x4] sm:$0xf0]  ;;  %v407_v19 = vld [vmem:[%s579_s0 + $0x4] sm:$0xf] }
   0x8   :  { %v305_v20 = vld [vmem:[%s579_s0 + $0x8] sm:$0xf0]  ;;  %v304_v21 = vor.u32 %v408_v18, %v303_v17  ;;  %278 = vmatpush.bf16.msra.mxu2 %v431_v23  ;;  %v429_v25 = vld [vmem:[%s577_s3 + $0x20] sm:$0xff]  ;;  %v428_v26 = vld [vmem:[%s577_s3 + $0x18] sm:$0xff] }
   0x9   :  { %v308_v22 = vor.u32 %v407_v19, %v305_v20  ;;  %v430_v24 = vld [vmem:[%s577_s3 + $0x28] sm:$0xff]  ;;  %v427_v27 = vld [vmem:[%s577_s3 + $0x10] sm:$0xff]  ;;  %v425_v29 = vld [vmem:[%s577_s3] sm:$0xff] }
   0xa   :  { %168 = vmatpush.bf16.msra.mxu0 %v414_v4  ;;  %v426_v28 = vld [vmem:[%s577_s3 + $0x8] sm:$0xff]  ;;  %v433_v30 = vld [vmem:[%s578_s2] ss:$0 sm:$0xff] }
   0xb   :  { %182 = vmatpush.bf16.msra.mxu1 %v422_v5  ;;  %v434_v50 = vld [vmem:[%s580_s4] ss:$0 sm:$0xff] }
   0xc   :  { %279 = vmatpush.bf16.msra.mxu2 %v430_v24 }
   0xe   :  { %169 = vmatpush.bf16.msra.mxu0 %v413_v7 }
   0xf   :  { %183 = vmatpush.bf16.msra.mxu1 %v421_v8 }
  0x10   :  { %280 = vmatpush.bf16.msra.mxu2 %v429_v25 }
  0x12   :  { %170 = vmatpush.bf16.msra.mxu0 %v412_v9 }
  0x13   :  { %184 = vmatpush.bf16.msra.mxu1 %v420_v10 }
  0x14   :  { %281 = vmatpush.bf16.msra.mxu2 %v428_v26 }
  0x16   :  { %171 = vmatpush.bf16.msra.mxu0 %v411_v11 }
  0x17   :  { %185 = vmatpush.bf16.msra.mxu1 %v419_v12 }
  0x18   :  { %282 = vmatpush.bf16.msra.mxu2 %v427_v27 }
  0x1a   :  { %172 = vmatpush.bf16.msra.mxu0 %v410_v13 }
  0x1b   :  { %186 = vmatpush.bf16.msra.mxu1 %v418_v14 }
  0x1c   :  { %283 = vmatpush.bf16.msra.mxu2 %v426_v28 }
  0x1e   :  { %173 = vmatpush.bf16.msra.mxu0 %v409_v15 }
  0x1f   :  { %187 = vmatpush.bf16.msra.mxu1 %v417_v16 }
  0x20   :  { %284 = vmatpush.bf16.msra.mxu2 %v425_v29 }
  0x21   :  { %174 = vmatmul.bf16.vlgmr.msra.gmra.mxu0 %v304_v21 }
  0x22   :  { %188 = vmatmul.bf16.vlgmr.msra.gmra.mxu1 %v308_v22 }
  0x9e   :  { %v175_v31 = vpop.f32.mrf.mxu0 }
  0x9f   :  { %v189_v32 = vpop.f32.mrf.mxu1  ;;  %v176_v33 = vadd.f32 %v433_v30, %v175_v31 }
  0xa1   :  { %v190_v34 = vadd.f32 %v189_v32, %v176_v33 }
  0xa3   :  { %194 = vst [vmem:[%s581_s5] sm:$0xff] %v190_v34  ;;  %v198_v35 = vmin.f32 %v190_v34, 0.0  ;;  %vm196_vm0 = vcmp.gt.f32.partialorder %v190_v34, 0.0 }
  0xa5   :  { %v200_v37 = vmul.f32 1.442695, %v198_v35 }
  0xa6   :  { %v177_v36 = vpop.f32.mrf.mxu0 }
  0xa7   :  { %v178_v38 = vadd.f32 %v433_v30, %v177_v36  ;;  %v191_v39 = vpop.f32.mrf.mxu1  ;;  %435 = vpow2.f32 %v200_v37 }
  0xa9   :  { %v192_v40 = vadd.f32 %v191_v39, %v178_v38 }
  0xab   :  { %195 = vst [vmem:[%s581_s5 + $0x8] sm:$0xff] %v192_v40  ;;  %v199_v41 = vmin.f32 %v192_v40, 0.0  ;;  %vm197_vm1 = vcmp.gt.f32.partialorder %v192_v40, 0.0 }
  0xad   :  { %v202_v42 = vmul.f32 1.442695, %v199_v41  ;;  %v436_v43 = vpop.eup %435 }
  0xae   :  { %v373_v44 = vadd.f32 -1.0, %v436_v43 }
  0xaf   :  { %437 = vpow2.f32 %v202_v42 }
  0xb0   :  { %v206_v47 = vsel %vm196_vm0, %v190_v34, %v373_v44 }
  0xb5   :  { %v438_v45 = vpop.eup %437 }
  0xb6   :  { %v374_v46 = vadd.f32 -1.0, %v438_v45 }
  0xb8   :  { %v207_v48 = vsel %vm197_vm1, %v192_v40, %v374_v46 }
  0xb9   :  { %v208_v49 = vpack.c.bf16 %v207_v48, %v206_v47 }
  0xbb   :  { %285 = vmatmul.bf16.vlgmr.msra.gmra.mxu2 %v208_v49 }
 0x13e   :  { %v286_v51 = vpop.f32.mrf.mxu2 }
 0x13f   :  { %v287_v52 = vadd.f32 %v434_v50, %v286_v51 }
 0x141   :  { %291 = vst [vmem:[%s582_s6] sm:$0xff] %v287_v52 }
 0x146   :  { %v288_v53 = vpop.f32.mrf.mxu2 }
 0x147   :  { %v289_v54 = vadd.f32 %v434_v50, %v288_v53 }
 0x149   :  { %292 = vst [vmem:[%s582_s6 + $0x8] sm:$0xff] %v289_v54 }

</bundles_post_ra>
